<compile_context>
chip_gen: v6e
topology: v6e:2x2x1
jax: 0.10.0
libtpu: 0.0.40
codegen_flags: <defaults>
</compile_context>

<pallas_src>
import functools

import jax
import jax.numpy as jnp
from jax.experimental import pallas as pl
from jax.experimental.pallas import tpu as pltpu

# ----- static configuration (matches __init__ shapes) -----
LAYERS = 2
CHANNELS = [2, 4, 2]
CIN = CHANNELS[0] * 2      # 4  channels into block (x already carries 2*channels[0])
CMID = CHANNELS[1] * 2     # 8
COUT = CHANNELS[2] * 2     # 4
KH = KW = 3


def _ode_block_kernel(x_ref, w1_ref, w2_ref, alpha_ref, out_ref, *, H, W):
    """One batch element per grid step, fully lane-dense.

    x_ref    : VMEM (1, CIN*H*W)   channel-major flattened input slab
    w1_ref   : SMEM (CMID*CIN*9,)  conv1 weights, OIHW flattened
    w2_ref   : SMEM (COUT*CMID,)   conv2 (1x1) weights, OI flattened
    alpha_ref: SMEM (1,)           PReLU shared slope
    out_ref  : VMEM (1, COUT*H*W)  channel-major flattened output slab
    """
    NB = x_ref.shape[0]                      # == 1
    HW = H * W
    assert x_ref.shape[1] == CIN * HW
    alpha = alpha_ref[0]

    # ---- boundary-condition masks (shared across all taps / channels, computed once) ----
    pos = jax.lax.broadcasted_iota(jnp.int32, (NB, HW), 1)      # flattened (y*W + x) index
    if (W & (W - 1)) == 0:
        col = pos & (W - 1)
    else:
        col = pos % W
    row_ok_up = pos >= W                    # y-1 >= 0    (needed for dy = -1)
    row_ok_dn = pos < (H - 1) * W           # y+1 <= H-1  (needed for dy = +1)
    col_ok_lf = col >= 1                    # x-1 >= 0    (needed for dx = -1)
    col_ok_rt = col <= W - 2                # x+1 <= W-1  (needed for dx = +1)

    # ---- per-channel input slabs, loaded once (128-aligned lane slices) ----
    slabs = [x_ref[:, ci * HW:(ci + 1) * HW] for ci in range(CIN)]      # each (NB, HW)

    # ---- conv1: 3x3, padding=1, bias=False — roll + mask taps, scalar-broadcast FMAs ----
    mids = [jnp.zeros((NB, HW), jnp.float32) for _ in range(CMID)]
    for kh in range(KH):
        dy = kh - 1
        for kw in range(KW):
            dx = kw - 1
            # combine the per-tap boundary mask (None for the centre tap)
            conds = []
            if dy == -1:
                conds.append(row_ok_up)
            if dy == 1:
                conds.append(row_ok_dn)
            if dx == -1:
                conds.append(col_ok_lf)
            if dx == 1:
                conds.append(col_ok_rt)
            mask = None
            for c in conds:
                mask = c if mask is None else (mask & c)

            off = dy * W + dx                      # tap[p] = slab[p + off] (masked at borders)
            shift = (-off) % HW                    # roll(x, s)[p] = x[(p - s) mod HW]
            for ci in range(CIN):
                tap = slabs[ci] if shift == 0 else pltpu.roll(slabs[ci], shift, axis=1)
                if mask is not None:
                    tap = jnp.where(mask, tap, 0.0)
                base = (ci * KH + kh) * KW + kw
                for co in range(CMID):
                    w = w1_ref[co * (CIN * KH * KW) + base]
                    mids[co] = mids[co] + w * tap

    # ---- PReLU (single shared parameter) + conv2 (1x1), fused, all lane-dense ----
    outs = [jnp.zeros((NB, HW), jnp.float32) for _ in range(COUT)]
    for ci in range(CMID):
        h = mids[ci]
        h = jnp.where(h > 0, h, alpha * h)
        for co in range(COUT):
            outs[co] = outs[co] + w2_ref[co * CMID + ci] * h

    # ---- direct per-channel stores (offsets are multiples of 128 -> unmasked vst) ----
    for co in range(COUT):
        out_ref[:, co * HW:(co + 1) * HW] = outs[co].astype(out_ref.dtype)


def conv_sode_func(t, x, w1, w2, alpha):
    """Pallas implementation of ConvSODEFunc.forward(t, x). `t` is unused (as in PyTorch)."""
    del t
    # The module's split/concat along the channel axis is an exact identity; skip materializing it
    # (the previous wrapper concat cost a full extra HBM read+write of the input).
    N, C, H, W = x.shape
    assert C == CIN, f"expected {CIN} input channels, got {C}"
    HW = H * W

    x_slab = x.astype(jnp.float32).reshape(N, 1, C * HW)      # lane-dense (N, 1, 1024) view
    w1_flat = w1.reshape(-1).astype(jnp.float32)              # (CMID*CIN*9,)
    w2_flat = w2.reshape(-1).astype(jnp.float32)              # (COUT*CMID,)
    alpha_arr = jnp.reshape(alpha, (1,)).astype(jnp.float32)

    kernel = functools.partial(_ode_block_kernel, H=H, W=W)

    out_slab = pl.pallas_call(
        kernel,
        out_shape=jax.ShapeDtypeStruct((N, 1, COUT * HW), jnp.float32),
        grid_spec=pltpu.PrefetchScalarGridSpec(
            num_scalar_prefetch=0,
            grid=(N,),                                        # one batch element per step
            in_specs=[
                pl.BlockSpec((None, 1, CIN * HW), lambda b: (b, 0, 0)),
                pl.BlockSpec(memory_space=pltpu.MemorySpace.SMEM),
                pl.BlockSpec(memory_space=pltpu.MemorySpace.SMEM),
                pl.BlockSpec(memory_space=pltpu.MemorySpace.SMEM),
            ],
            out_specs=pl.BlockSpec((None, 1, COUT * HW), lambda b: (b, 0, 0)),
        ),
        compiler_params=pltpu.CompilerParams(dimension_semantics=("parallel",)),
    )(x_slab, w1_flat, w2_flat, alpha_arr)

    return out_slab.reshape(N, COUT, H, W)


def _reference(t, x, w1, w2, alpha):
    """Pure-JAX reference (same math as the PyTorch module)."""
    del t
    y = jax.lax.conv_general_dilated(
        x, w1, window_strides=(1, 1), padding="SAME",
        dimension_numbers=("NCHW", "OIHW", "NCHW"))
    y = jnp.where(y > 0, y, alpha * y)
    y = jax.lax.conv_general_dilated(
        y, w2, window_strides=(1, 1), padding="VALID",
        dimension_numbers=("NCHW", "OIHW", "NCHW"))
    return y


if __name__ == "__main__":
    key = jax.random.PRNGKey(0)
    k_x, k_w1, k_w2 = jax.random.split(key, 3)

    # deterministic synthetic parameters (shapes dictated by the module's __init__)
    x = jax.random.normal(k_x, (2, CIN, 16, 16), dtype=jnp.float32)      # (N, 2*channels[0], H, W)
    w1 = jax.random.normal(k_w1, (CMID, CIN, 3, 3), dtype=jnp.float32) * 0.1
    w2 = jax.random.normal(k_w2, (COUT, CMID, 1, 1), dtype=jnp.float32) * 0.1
    alpha = jnp.float32(0.25)                                            # nn.PReLU() default init
    t = jnp.float32(0.0)                                                 # unused by forward

    out = conv_sode_func(t, x, w1, w2, alpha)
    out = jax.block_until_ready(out)

    ref = jax.block_until_ready(_reference(t, x, w1, w2, alpha))
    assert out.shape == ref.shape == (2, COUT, 16, 16)
    assert jnp.allclose(out, ref, atol=1e-4, rtol=1e-4), "mismatch vs JAX reference"

    # TODO(synk): self.nfe (Python-side call counter) is host state, not numerical output; not modeled.
    print("KERNEL_OK")
</pallas_src>

<mosaic_0001>
module attributes {stable_mosaic.version = 11 : i64} {
  func.func @_ode_block_kernel(%arg0: i32, %arg1: memref<1x1x1024xf32, #tpu.memory_space<vmem>>, %arg2: memref<288xf32, #tpu.memory_space<smem>>, %arg3: memref<32xf32, #tpu.memory_space<smem>>, %arg4: memref<1xf32, #tpu.memory_space<smem>>, %arg5: memref<1x1x1024xf32, #tpu.memory_space<vmem>>) attributes {dimension_semantics = [#tpu.dimension_semantics<parallel>], iteration_bounds = array<i64: 2>, scalar_prefetch = 0 : i64, scratch_operands = 0 : i64, tpu.core_type = #tpu.core_type<tc>, window_params = [{transform_indices = @transform_0, window_bounds = array<i64: 1, 1, 1024>}, {transform_indices = @transform_1, window_bounds = array<i64: 288>}, {transform_indices = @transform_2, window_bounds = array<i64: 32>}, {transform_indices = @transform_3, window_bounds = array<i64: 1>}, {transform_indices = @transform_4, window_bounds = array<i64: 1, 1, 1024>}]} {
    %c0 = arith.constant 0 : index
    %0 = memref.load %arg4[%c0] : memref<1xf32, #tpu.memory_space<smem>>
    %1 = tpu.iota {dimensions = array<i32: 1>} : vector<1x256xi32>
    %c15_i32 = arith.constant 15 : i32
    %2 = vector.broadcast %c15_i32 : i32 to vector<1x256xi32>
    %3 = arith.andi %1, %2 : vector<1x256xi32>
    %c16_i32 = arith.constant 16 : i32
    %4 = vector.broadcast %c16_i32 : i32 to vector<1x256xi32>
    %5 = arith.cmpi sge, %1, %4 : vector<1x256xi32>
    %c240_i32 = arith.constant 240 : i32
    %6 = vector.broadcast %c240_i32 : i32 to vector<1x256xi32>
    %7 = arith.cmpi slt, %1, %6 : vector<1x256xi32>
    %c1_i32 = arith.constant 1 : i32
    %8 = vector.broadcast %c1_i32 : i32 to vector<1x256xi32>
    %9 = arith.cmpi sge, %3, %8 : vector<1x256xi32>
    %c14_i32 = arith.constant 14 : i32
    %10 = vector.broadcast %c14_i32 : i32 to vector<1x256xi32>
    %11 = arith.cmpi sle, %3, %10 : vector<1x256xi32>
    %c0_0 = arith.constant 0 : index
    %c0_1 = arith.constant 0 : index
    %c0_2 = arith.constant 0 : index
    %12 = vector.load %arg1[%c0_0, %c0_1, %c0_2] : memref<1x1x1024xf32, #tpu.memory_space<vmem>>, vector<1x1x256xf32>
    %13 = vector.shape_cast %12 : vector<1x1x256xf32> to vector<1x256xf32>
    %c0_3 = arith.constant 0 : index
    %c0_4 = arith.constant 0 : index
    %c256 = arith.constant 256 : index
    %14 = vector.load %arg1[%c0_3, %c0_4, %c256] : memref<1x1x1024xf32, #tpu.memory_space<vmem>>, vector<1x1x256xf32>
    %15 = vector.shape_cast %14 : vector<1x1x256xf32> to vector<1x256xf32>
    %c0_5 = arith.constant 0 : index
    %c0_6 = arith.constant 0 : index
    %c512 = arith.constant 512 : index
    %16 = vector.load %arg1[%c0_5, %c0_6, %c512] : memref<1x1x1024xf32, #tpu.memory_space<vmem>>, vector<1x1x256xf32>
    %17 = vector.shape_cast %16 : vector<1x1x256xf32> to vector<1x256xf32>
    %c0_7 = arith.constant 0 : index
    %c0_8 = arith.constant 0 : index
    %c768 = arith.constant 768 : index
    %18 = vector.load %arg1[%c0_7, %c0_8, %c768] : memref<1x1x1024xf32, #tpu.memory_space<vmem>>, vector<1x1x256xf32>
    %19 = vector.shape_cast %18 : vector<1x1x256xf32> to vector<1x256xf32>
    %cst = arith.constant 0.000000e+00 : f32
    %20 = vector.broadcast %cst : f32 to vector<1x256xf32>
    %cst_9 = arith.constant 0.000000e+00 : f32
    %21 = vector.broadcast %cst_9 : f32 to vector<1x256xf32>
    %cst_10 = arith.constant 0.000000e+00 : f32
    %22 = vector.broadcast %cst_10 : f32 to vector<1x256xf32>
    %cst_11 = arith.constant 0.000000e+00 : f32
    %23 = vector.broadcast %cst_11 : f32 to vector<1x256xf32>
    %cst_12 = arith.constant 0.000000e+00 : f32
    %24 = vector.broadcast %cst_12 : f32 to vector<1x256xf32>
    %cst_13 = arith.constant 0.000000e+00 : f32
    %25 = vector.broadcast %cst_13 : f32 to vector<1x256xf32>
    %cst_14 = arith.constant 0.000000e+00 : f32
    %26 = vector.broadcast %cst_14 : f32 to vector<1x256xf32>
    %cst_15 = arith.constant 0.000000e+00 : f32
    %27 = vector.broadcast %cst_15 : f32 to vector<1x256xf32>
    %28 = arith.andi %5, %9 : vector<1x256xi1>
    %c17_i32 = arith.constant 17 : i32
    %29 = tpu.dynamic_rotate %13 by %c17_i32 dim 1 : vector<1x256xf32>, i32 -> vector<1x256xf32>
    %cst_16 = arith.constant 0.000000e+00 : f32
    %30 = vector.broadcast %cst_16 : f32 to vector<1x256xf32>
    %31 = arith.select %28, %29, %30 : vector<1x256xi1>, vector<1x256xf32>
    %c0_17 = arith.constant 0 : index
    %32 = memref.load %arg2[%c0_17] : memref<288xf32, #tpu.memory_space<smem>>
    %33 = vector.broadcast %32 : f32 to vector<1x256xf32>
    %34 = arith.mulf %33, %31 : vector<1x256xf32>
    %35 = arith.addf %20, %34 : vector<1x256xf32>
    %c36 = arith.constant 36 : index
    %36 = memref.load %arg2[%c36] : memref<288xf32, #tpu.memory_space<smem>>
    %37 = vector.broadcast %36 : f32 to vector<1x256xf32>
    %38 = arith.mulf %37, %31 : vector<1x256xf32>
    %39 = arith.addf %21, %38 : vector<1x256xf32>
    %c72 = arith.constant 72 : index
    %40 = memref.load %arg2[%c72] : memref<288xf32, #tpu.memory_space<smem>>
    %41 = vector.broadcast %40 : f32 to vector<1x256xf32>
    %42 = arith.mulf %41, %31 : vector<1x256xf32>
    %43 = arith.addf %22, %42 : vector<1x256xf32>
    %c108 = arith.constant 108 : index
    %44 = memref.load %arg2[%c108] : memref<288xf32, #tpu.memory_space<smem>>
    %45 = vector.broadcast %44 : f32 to vector<1x256xf32>
    %46 = arith.mulf %45, %31 : vector<1x256xf32>
    %47 = arith.addf %23, %46 : vector<1x256xf32>
    %c144 = arith.constant 144 : index
    %48 = memref.load %arg2[%c144] : memref<288xf32, #tpu.memory_space<smem>>
    %49 = vector.broadcast %48 : f32 to vector<1x256xf32>
    %50 = arith.mulf %49, %31 : vector<1x256xf32>
    %51 = arith.addf %24, %50 : vector<1x256xf32>
    %c180 = arith.constant 180 : index
    %52 = memref.load %arg2[%c180] : memref<288xf32, #tpu.memory_space<smem>>
    %53 = vector.broadcast %52 : f32 to vector<1x256xf32>
    %54 = arith.mulf %53, %31 : vector<1x256xf32>
    %55 = arith.addf %25, %54 : vector<1x256xf32>
    %c216 = arith.constant 216 : index
    %56 = memref.load %arg2[%c216] : memref<288xf32, #tpu.memory_space<smem>>
    %57 = vector.broadcast %56 : f32 to vector<1x256xf32>
    %58 = arith.mulf %57, %31 : vector<1x256xf32>
    %59 = arith.addf %26, %58 : vector<1x256xf32>
    %c252 = arith.constant 252 : index
    %60 = memref.load %arg2[%c252] : memref<288xf32, #tpu.memory_space<smem>>
    %61 = vector.broadcast %60 : f32 to vector<1x256xf32>
    %62 = arith.mulf %61, %31 : vector<1x256xf32>
    %63 = arith.addf %27, %62 : vector<1x256xf32>
    %c17_i32_18 = arith.constant 17 : i32
    %64 = tpu.dynamic_rotate %15 by %c17_i32_18 dim 1 : vector<1x256xf32>, i32 -> vector<1x256xf32>
    %cst_19 = arith.constant 0.000000e+00 : f32
    %65 = vector.broadcast %cst_19 : f32 to vector<1x256xf32>
    %66 = arith.select %28, %64, %65 : vector<1x256xi1>, vector<1x256xf32>
    %c9 = arith.constant 9 : index
    %67 = memref.load %arg2[%c9] : memref<288xf32, #tpu.memory_space<smem>>
    %68 = vector.broadcast %67 : f32 to vector<1x256xf32>
    %69 = arith.mulf %68, %66 : vector<1x256xf32>
    %70 = arith.addf %35, %69 : vector<1x256xf32>
    %c45 = arith.constant 45 : index
    %71 = memref.load %arg2[%c45] : memref<288xf32, #tpu.memory_space<smem>>
    %72 = vector.broadcast %71 : f32 to vector<1x256xf32>
    %73 = arith.mulf %72, %66 : vector<1x256xf32>
    %74 = arith.addf %39, %73 : vector<1x256xf32>
    %c81 = arith.constant 81 : index
    %75 = memref.load %arg2[%c81] : memref<288xf32, #tpu.memory_space<smem>>
    %76 = vector.broadcast %75 : f32 to vector<1x256xf32>
    %77 = arith.mulf %76, %66 : vector<1x256xf32>
    %78 = arith.addf %43, %77 : vector<1x256xf32>
    %c117 = arith.constant 117 : index
    %79 = memref.load %arg2[%c117] : memref<288xf32, #tpu.memory_space<smem>>
    %80 = vector.broadcast %79 : f32 to vector<1x256xf32>
    %81 = arith.mulf %80, %66 : vector<1x256xf32>
    %82 = arith.addf %47, %81 : vector<1x256xf32>
    %c153 = arith.constant 153 : index
    %83 = memref.load %arg2[%c153] : memref<288xf32, #tpu.memory_space<smem>>
    %84 = vector.broadcast %83 : f32 to vector<1x256xf32>
    %85 = arith.mulf %84, %66 : vector<1x256xf32>
    %86 = arith.addf %51, %85 : vector<1x256xf32>
    %c189 = arith.constant 189 : index
    %87 = memref.load %arg2[%c189] : memref<288xf32, #tpu.memory_space<smem>>
    %88 = vector.broadcast %87 : f32 to vector<1x256xf32>
    %89 = arith.mulf %88, %66 : vector<1x256xf32>
    %90 = arith.addf %55, %89 : vector<1x256xf32>
    %c225 = arith.constant 225 : index
    %91 = memref.load %arg2[%c225] : memref<288xf32, #tpu.memory_space<smem>>
    %92 = vector.broadcast %91 : f32 to vector<1x256xf32>
    %93 = arith.mulf %92, %66 : vector<1x256xf32>
    %94 = arith.addf %59, %93 : vector<1x256xf32>
    %c261 = arith.constant 261 : index
    %95 = memref.load %arg2[%c261] : memref<288xf32, #tpu.memory_space<smem>>
    %96 = vector.broadcast %95 : f32 to vector<1x256xf32>
    %97 = arith.mulf %96, %66 : vector<1x256xf32>
    %98 = arith.addf %63, %97 : vector<1x256xf32>
    %c17_i32_20 = arith.constant 17 : i32
    %99 = tpu.dynamic_rotate %17 by %c17_i32_20 dim 1 : vector<1x256xf32>, i32 -> vector<1x256xf32>
    %cst_21 = arith.constant 0.000000e+00 : f32
    %100 = vector.broadcast %cst_21 : f32 to vector<1x256xf32>
    %101 = arith.select %28, %99, %100 : vector<1x256xi1>, vector<1x256xf32>
    %c18 = arith.constant 18 : index
    %102 = memref.load %arg2[%c18] : memref<288xf32, #tpu.memory_space<smem>>
    %103 = vector.broadcast %102 : f32 to vector<1x256xf32>
    %104 = arith.mulf %103, %101 : vector<1x256xf32>
    %105 = arith.addf %70, %104 : vector<1x256xf32>
    %c54 = arith.constant 54 : index
    %106 = memref.load %arg2[%c54] : memref<288xf32, #tpu.memory_space<smem>>
    %107 = vector.broadcast %106 : f32 to vector<1x256xf32>
    %108 = arith.mulf %107, %101 : vector<1x256xf32>
    %109 = arith.addf %74, %108 : vector<1x256xf32>
    %c90 = arith.constant 90 : index
    %110 = memref.load %arg2[%c90] : memref<288xf32, #tpu.memory_space<smem>>
    %111 = vector.broadcast %110 : f32 to vector<1x256xf32>
    %112 = arith.mulf %111, %101 : vector<1x256xf32>
    %113 = arith.addf %78, %112 : vector<1x256xf32>
    %c126 = arith.constant 126 : index
    %114 = memref.load %arg2[%c126] : memref<288xf32, #tpu.memory_space<smem>>
    %115 = vector.broadcast %114 : f32 to vector<1x256xf32>
    %116 = arith.mulf %115, %101 : vector<1x256xf32>
    %117 = arith.addf %82, %116 : vector<1x256xf32>
    %c162 = arith.constant 162 : index
    %118 = memref.load %arg2[%c162] : memref<288xf32, #tpu.memory_space<smem>>
    %119 = vector.broadcast %118 : f32 to vector<1x256xf32>
    %120 = arith.mulf %119, %101 : vector<1x256xf32>
    %121 = arith.addf %86, %120 : vector<1x256xf32>
    %c198 = arith.constant 198 : index
    %122 = memref.load %arg2[%c198] : memref<288xf32, #tpu.memory_space<smem>>
    %123 = vector.broadcast %122 : f32 to vector<1x256xf32>
    %124 = arith.mulf %123, %101 : vector<1x256xf32>
    %125 = arith.addf %90, %124 : vector<1x256xf32>
    %c234 = arith.constant 234 : index
    %126 = memref.load %arg2[%c234] : memref<288xf32, #tpu.memory_space<smem>>
    %127 = vector.broadcast %126 : f32 to vector<1x256xf32>
    %128 = arith.mulf %127, %101 : vector<1x256xf32>
    %129 = arith.addf %94, %128 : vector<1x256xf32>
    %c270 = arith.constant 270 : index
    %130 = memref.load %arg2[%c270] : memref<288xf32, #tpu.memory_space<smem>>
    %131 = vector.broadcast %130 : f32 to vector<1x256xf32>
    %132 = arith.mulf %131, %101 : vector<1x256xf32>
    %133 = arith.addf %98, %132 : vector<1x256xf32>
    %c17_i32_22 = arith.constant 17 : i32
    %134 = tpu.dynamic_rotate %19 by %c17_i32_22 dim 1 : vector<1x256xf32>, i32 -> vector<1x256xf32>
    %cst_23 = arith.constant 0.000000e+00 : f32
    %135 = vector.broadcast %cst_23 : f32 to vector<1x256xf32>
    %136 = arith.select %28, %134, %135 : vector<1x256xi1>, vector<1x256xf32>
    %c27 = arith.constant 27 : index
    %137 = memref.load %arg2[%c27] : memref<288xf32, #tpu.memory_space<smem>>
    %138 = vector.broadcast %137 : f32 to vector<1x256xf32>
    %139 = arith.mulf %138, %136 : vector<1x256xf32>
    %140 = arith.addf %105, %139 : vector<1x256xf32>
    %c63 = arith.constant 63 : index
    %141 = memref.load %arg2[%c63] : memref<288xf32, #tpu.memory_space<smem>>
    %142 = vector.broadcast %141 : f32 to vector<1x256xf32>
    %143 = arith.mulf %142, %136 : vector<1x256xf32>
    %144 = arith.addf %109, %143 : vector<1x256xf32>
    %c99 = arith.constant 99 : index
    %145 = memref.load %arg2[%c99] : memref<288xf32, #tpu.memory_space<smem>>
    %146 = vector.broadcast %145 : f32 to vector<1x256xf32>
    %147 = arith.mulf %146, %136 : vector<1x256xf32>
    %148 = arith.addf %113, %147 : vector<1x256xf32>
    %c135 = arith.constant 135 : index
    %149 = memref.load %arg2[%c135] : memref<288xf32, #tpu.memory_space<smem>>
    %150 = vector.broadcast %149 : f32 to vector<1x256xf32>
    %151 = arith.mulf %150, %136 : vector<1x256xf32>
    %152 = arith.addf %117, %151 : vector<1x256xf32>
    %c171 = arith.constant 171 : index
    %153 = memref.load %arg2[%c171] : memref<288xf32, #tpu.memory_space<smem>>
    %154 = vector.broadcast %153 : f32 to vector<1x256xf32>
    %155 = arith.mulf %154, %136 : vector<1x256xf32>
    %156 = arith.addf %121, %155 : vector<1x256xf32>
    %c207 = arith.constant 207 : index
    %157 = memref.load %arg2[%c207] : memref<288xf32, #tpu.memory_space<smem>>
    %158 = vector.broadcast %157 : f32 to vector<1x256xf32>
    %159 = arith.mulf %158, %136 : vector<1x256xf32>
    %160 = arith.addf %125, %159 : vector<1x256xf32>
    %c243 = arith.constant 243 : index
    %161 = memref.load %arg2[%c243] : memref<288xf32, #tpu.memory_space<smem>>
    %162 = vector.broadcast %161 : f32 to vector<1x256xf32>
    %163 = arith.mulf %162, %136 : vector<1x256xf32>
    %164 = arith.addf %129, %163 : vector<1x256xf32>
    %c279 = arith.constant 279 : index
    %165 = memref.load %arg2[%c279] : memref<288xf32, #tpu.memory_space<smem>>
    %166 = vector.broadcast %165 : f32 to vector<1x256xf32>
    %167 = arith.mulf %166, %136 : vector<1x256xf32>
    %168 = arith.addf %133, %167 : vector<1x256xf32>
    %c16_i32_24 = arith.constant 16 : i32
    %169 = tpu.dynamic_rotate %13 by %c16_i32_24 dim 1 : vector<1x256xf32>, i32 -> vector<1x256xf32>
    %cst_25 = arith.constant 0.000000e+00 : f32
    %170 = vector.broadcast %cst_25 : f32 to vector<1x256xf32>
    %171 = arith.select %5, %169, %170 : vector<1x256xi1>, vector<1x256xf32>
    %c1 = arith.constant 1 : index
    %172 = memref.load %arg2[%c1] : memref<288xf32, #tpu.memory_space<smem>>
    %173 = vector.broadcast %172 : f32 to vector<1x256xf32>
    %174 = arith.mulf %173, %171 : vector<1x256xf32>
    %175 = arith.addf %140, %174 : vector<1x256xf32>
    %c37 = arith.constant 37 : index
    %176 = memref.load %arg2[%c37] : memref<288xf32, #tpu.memory_space<smem>>
    %177 = vector.broadcast %176 : f32 to vector<1x256xf32>
    %178 = arith.mulf %177, %171 : vector<1x256xf32>
    %179 = arith.addf %144, %178 : vector<1x256xf32>
    %c73 = arith.constant 73 : index
    %180 = memref.load %arg2[%c73] : memref<288xf32, #tpu.memory_space<smem>>
    %181 = vector.broadcast %180 : f32 to vector<1x256xf32>
    %182 = arith.mulf %181, %171 : vector<1x256xf32>
    %183 = arith.addf %148, %182 : vector<1x256xf32>
    %c109 = arith.constant 109 : index
    %184 = memref.load %arg2[%c109] : memref<288xf32, #tpu.memory_space<smem>>
    %185 = vector.broadcast %184 : f32 to vector<1x256xf32>
    %186 = arith.mulf %185, %171 : vector<1x256xf32>
    %187 = arith.addf %152, %186 : vector<1x256xf32>
    %c145 = arith.constant 145 : index
    %188 = memref.load %arg2[%c145] : memref<288xf32, #tpu.memory_space<smem>>
    %189 = vector.broadcast %188 : f32 to vector<1x256xf32>
    %190 = arith.mulf %189, %171 : vector<1x256xf32>
    %191 = arith.addf %156, %190 : vector<1x256xf32>
    %c181 = arith.constant 181 : index
    %192 = memref.load %arg2[%c181] : memref<288xf32, #tpu.memory_space<smem>>
    %193 = vector.broadcast %192 : f32 to vector<1x256xf32>
    %194 = arith.mulf %193, %171 : vector<1x256xf32>
    %195 = arith.addf %160, %194 : vector<1x256xf32>
    %c217 = arith.constant 217 : index
    %196 = memref.load %arg2[%c217] : memref<288xf32, #tpu.memory_space<smem>>
    %197 = vector.broadcast %196 : f32 to vector<1x256xf32>
    %198 = arith.mulf %197, %171 : vector<1x256xf32>
    %199 = arith.addf %164, %198 : vector<1x256xf32>
    %c253 = arith.constant 253 : index
    %200 = memref.load %arg2[%c253] : memref<288xf32, #tpu.memory_space<smem>>
    %201 = vector.broadcast %200 : f32 to vector<1x256xf32>
    %202 = arith.mulf %201, %171 : vector<1x256xf32>
    %203 = arith.addf %168, %202 : vector<1x256xf32>
    %c16_i32_26 = arith.constant 16 : i32
    %204 = tpu.dynamic_rotate %15 by %c16_i32_26 dim 1 : vector<1x256xf32>, i32 -> vector<1x256xf32>
    %cst_27 = arith.constant 0.000000e+00 : f32
    %205 = vector.broadcast %cst_27 : f32 to vector<1x256xf32>
    %206 = arith.select %5, %204, %205 : vector<1x256xi1>, vector<1x256xf32>
    %c10 = arith.constant 10 : index
    %207 = memref.load %arg2[%c10] : memref<288xf32, #tpu.memory_space<smem>>
    %208 = vector.broadcast %207 : f32 to vector<1x256xf32>
    %209 = arith.mulf %208, %206 : vector<1x256xf32>
    %210 = arith.addf %175, %209 : vector<1x256xf32>
    %c46 = arith.constant 46 : index
    %211 = memref.load %arg2[%c46] : memref<288xf32, #tpu.memory_space<smem>>
    %212 = vector.broadcast %211 : f32 to vector<1x256xf32>
    %213 = arith.mulf %212, %206 : vector<1x256xf32>
    %214 = arith.addf %179, %213 : vector<1x256xf32>
    %c82 = arith.constant 82 : index
    %215 = memref.load %arg2[%c82] : memref<288xf32, #tpu.memory_space<smem>>
    %216 = vector.broadcast %215 : f32 to vector<1x256xf32>
    %217 = arith.mulf %216, %206 : vector<1x256xf32>
    %218 = arith.addf %183, %217 : vector<1x256xf32>
    %c118 = arith.constant 118 : index
    %219 = memref.load %arg2[%c118] : memref<288xf32, #tpu.memory_space<smem>>
    %220 = vector.broadcast %219 : f32 to vector<1x256xf32>
    %221 = arith.mulf %220, %206 : vector<1x256xf32>
    %222 = arith.addf %187, %221 : vector<1x256xf32>
    %c154 = arith.constant 154 : index
    %223 = memref.load %arg2[%c154] : memref<288xf32, #tpu.memory_space<smem>>
    %224 = vector.broadcast %223 : f32 to vector<1x256xf32>
    %225 = arith.mulf %224, %206 : vector<1x256xf32>
    %226 = arith.addf %191, %225 : vector<1x256xf32>
    %c190 = arith.constant 190 : index
    %227 = memref.load %arg2[%c190] : memref<288xf32, #tpu.memory_space<smem>>
    %228 = vector.broadcast %227 : f32 to vector<1x256xf32>
    %229 = arith.mulf %228, %206 : vector<1x256xf32>
    %230 = arith.addf %195, %229 : vector<1x256xf32>
    %c226 = arith.constant 226 : index
    %231 = memref.load %arg2[%c226] : memref<288xf32, #tpu.memory_space<smem>>
    %232 = vector.broadcast %231 : f32 to vector<1x256xf32>
    %233 = arith.mulf %232, %206 : vector<1x256xf32>
    %234 = arith.addf %199, %233 : vector<1x256xf32>
    %c262 = arith.constant 262 : index
    %235 = memref.load %arg2[%c262] : memref<288xf32, #tpu.memory_space<smem>>
    %236 = vector.broadcast %235 : f32 to vector<1x256xf32>
    %237 = arith.mulf %236, %206 : vector<1x256xf32>
    %238 = arith.addf %203, %237 : vector<1x256xf32>
    %c16_i32_28 = arith.constant 16 : i32
    %239 = tpu.dynamic_rotate %17 by %c16_i32_28 dim 1 : vector<1x256xf32>, i32 -> vector<1x256xf32>
    %cst_29 = arith.constant 0.000000e+00 : f32
    %240 = vector.broadcast %cst_29 : f32 to vector<1x256xf32>
    %241 = arith.select %5, %239, %240 : vector<1x256xi1>, vector<1x256xf32>
    %c19 = arith.constant 19 : index
    %242 = memref.load %arg2[%c19] : memref<288xf32, #tpu.memory_space<smem>>
    %243 = vector.broadcast %242 : f32 to vector<1x256xf32>
    %244 = arith.mulf %243, %241 : vector<1x256xf32>
    %245 = arith.addf %210, %244 : vector<1x256xf32>
    %c55 = arith.constant 55 : index
    %246 = memref.load %arg2[%c55] : memref<288xf32, #tpu.memory_space<smem>>
    %247 = vector.broadcast %246 : f32 to vector<1x256xf32>
    %248 = arith.mulf %247, %241 : vector<1x256xf32>
    %249 = arith.addf %214, %248 : vector<1x256xf32>
    %c91 = arith.constant 91 : index
    %250 = memref.load %arg2[%c91] : memref<288xf32, #tpu.memory_space<smem>>
    %251 = vector.broadcast %250 : f32 to vector<1x256xf32>
    %252 = arith.mulf %251, %241 : vector<1x256xf32>
    %253 = arith.addf %218, %252 : vector<1x256xf32>
    %c127 = arith.constant 127 : index
    %254 = memref.load %arg2[%c127] : memref<288xf32, #tpu.memory_space<smem>>
    %255 = vector.broadcast %254 : f32 to vector<1x256xf32>
    %256 = arith.mulf %255, %241 : vector<1x256xf32>
    %257 = arith.addf %222, %256 : vector<1x256xf32>
    %c163 = arith.constant 163 : index
    %258 = memref.load %arg2[%c163] : memref<288xf32, #tpu.memory_space<smem>>
    %259 = vector.broadcast %258 : f32 to vector<1x256xf32>
    %260 = arith.mulf %259, %241 : vector<1x256xf32>
    %261 = arith.addf %226, %260 : vector<1x256xf32>
    %c199 = arith.constant 199 : index
    %262 = memref.load %arg2[%c199] : memref<288xf32, #tpu.memory_space<smem>>
    %263 = vector.broadcast %262 : f32 to vector<1x256xf32>
    %264 = arith.mulf %263, %241 : vector<1x256xf32>
    %265 = arith.addf %230, %264 : vector<1x256xf32>
    %c235 = arith.constant 235 : index
    %266 = memref.load %arg2[%c235] : memref<288xf32, #tpu.memory_space<smem>>
    %267 = vector.broadcast %266 : f32 to vector<1x256xf32>
    %268 = arith.mulf %267, %241 : vector<1x256xf32>
    %269 = arith.addf %234, %268 : vector<1x256xf32>
    %c271 = arith.constant 271 : index
    %270 = memref.load %arg2[%c271] : memref<288xf32, #tpu.memory_space<smem>>
    %271 = vector.broadcast %270 : f32 to vector<1x256xf32>
    %272 = arith.mulf %271, %241 : vector<1x256xf32>
    %273 = arith.addf %238, %272 : vector<1x256xf32>
    %c16_i32_30 = arith.constant 16 : i32
    %274 = tpu.dynamic_rotate %19 by %c16_i32_30 dim 1 : vector<1x256xf32>, i32 -> vector<1x256xf32>
    %cst_31 = arith.constant 0.000000e+00 : f32
    %275 = vector.broadcast %cst_31 : f32 to vector<1x256xf32>
    %276 = arith.select %5, %274, %275 : vector<1x256xi1>, vector<1x256xf32>
    %c28 = arith.constant 28 : index
    %277 = memref.load %arg2[%c28] : memref<288xf32, #tpu.memory_space<smem>>
    %278 = vector.broadcast %277 : f32 to vector<1x256xf32>
    %279 = arith.mulf %278, %276 : vector<1x256xf32>
    %280 = arith.addf %245, %279 : vector<1x256xf32>
    %c64 = arith.constant 64 : index
    %281 = memref.load %arg2[%c64] : memref<288xf32, #tpu.memory_space<smem>>
    %282 = vector.broadcast %281 : f32 to vector<1x256xf32>
    %283 = arith.mulf %282, %276 : vector<1x256xf32>
    %284 = arith.addf %249, %283 : vector<1x256xf32>
    %c100 = arith.constant 100 : index
    %285 = memref.load %arg2[%c100] : memref<288xf32, #tpu.memory_space<smem>>
    %286 = vector.broadcast %285 : f32 to vector<1x256xf32>
    %287 = arith.mulf %286, %276 : vector<1x256xf32>
    %288 = arith.addf %253, %287 : vector<1x256xf32>
    %c136 = arith.constant 136 : index
    %289 = memref.load %arg2[%c136] : memref<288xf32, #tpu.memory_space<smem>>
    %290 = vector.broadcast %289 : f32 to vector<1x256xf32>
    %291 = arith.mulf %290, %276 : vector<1x256xf32>
    %292 = arith.addf %257, %291 : vector<1x256xf32>
    %c172 = arith.constant 172 : index
    %293 = memref.load %arg2[%c172] : memref<288xf32, #tpu.memory_space<smem>>
    %294 = vector.broadcast %293 : f32 to vector<1x256xf32>
    %295 = arith.mulf %294, %276 : vector<1x256xf32>
    %296 = arith.addf %261, %295 : vector<1x256xf32>
    %c208 = arith.constant 208 : index
    %297 = memref.load %arg2[%c208] : memref<288xf32, #tpu.memory_space<smem>>
    %298 = vector.broadcast %297 : f32 to vector<1x256xf32>
    %299 = arith.mulf %298, %276 : vector<1x256xf32>
    %300 = arith.addf %265, %299 : vector<1x256xf32>
    %c244 = arith.constant 244 : index
    %301 = memref.load %arg2[%c244] : memref<288xf32, #tpu.memory_space<smem>>
    %302 = vector.broadcast %301 : f32 to vector<1x256xf32>
    %303 = arith.mulf %302, %276 : vector<1x256xf32>
    %304 = arith.addf %269, %303 : vector<1x256xf32>
    %c280 = arith.constant 280 : index
    %305 = memref.load %arg2[%c280] : memref<288xf32, #tpu.memory_space<smem>>
    %306 = vector.broadcast %305 : f32 to vector<1x256xf32>
    %307 = arith.mulf %306, %276 : vector<1x256xf32>
    %308 = arith.addf %273, %307 : vector<1x256xf32>
    %309 = arith.andi %5, %11 : vector<1x256xi1>
    %c15_i32_32 = arith.constant 15 : i32
    %310 = tpu.dynamic_rotate %13 by %c15_i32_32 dim 1 : vector<1x256xf32>, i32 -> vector<1x256xf32>
    %cst_33 = arith.constant 0.000000e+00 : f32
    %311 = vector.broadcast %cst_33 : f32 to vector<1x256xf32>
    %312 = arith.select %309, %310, %311 : vector<1x256xi1>, vector<1x256xf32>
    %c2 = arith.constant 2 : index
    %313 = memref.load %arg2[%c2] : memref<288xf32, #tpu.memory_space<smem>>
    %314 = vector.broadcast %313 : f32 to vector<1x256xf32>
    %315 = arith.mulf %314, %312 : vector<1x256xf32>
    %316 = arith.addf %280, %315 : vector<1x256xf32>
    %c38 = arith.constant 38 : index
    %317 = memref.load %arg2[%c38] : memref<288xf32, #tpu.memory_space<smem>>
    %318 = vector.broadcast %317 : f32 to vector<1x256xf32>
    %319 = arith.mulf %318, %312 : vector<1x256xf32>
    %320 = arith.addf %284, %319 : vector<1x256xf32>
    %c74 = arith.constant 74 : index
    %321 = memref.load %arg2[%c74] : memref<288xf32, #tpu.memory_space<smem>>
    %322 = vector.broadcast %321 : f32 to vector<1x256xf32>
    %323 = arith.mulf %322, %312 : vector<1x256xf32>
    %324 = arith.addf %288, %323 : vector<1x256xf32>
    %c110 = arith.constant 110 : index
    %325 = memref.load %arg2[%c110] : memref<288xf32, #tpu.memory_space<smem>>
    %326 = vector.broadcast %325 : f32 to vector<1x256xf32>
    %327 = arith.mulf %326, %312 : vector<1x256xf32>
    %328 = arith.addf %292, %327 : vector<1x256xf32>
    %c146 = arith.constant 146 : index
    %329 = memref.load %arg2[%c146] : memref<288xf32, #tpu.memory_space<smem>>
    %330 = vector.broadcast %329 : f32 to vector<1x256xf32>
    %331 = arith.mulf %330, %312 : vector<1x256xf32>
    %332 = arith.addf %296, %331 : vector<1x256xf32>
    %c182 = arith.constant 182 : index
    %333 = memref.load %arg2[%c182] : memref<288xf32, #tpu.memory_space<smem>>
    %334 = vector.broadcast %333 : f32 to vector<1x256xf32>
    %335 = arith.mulf %334, %312 : vector<1x256xf32>
    %336 = arith.addf %300, %335 : vector<1x256xf32>
    %c218 = arith.constant 218 : index
    %337 = memref.load %arg2[%c218] : memref<288xf32, #tpu.memory_space<smem>>
    %338 = vector.broadcast %337 : f32 to vector<1x256xf32>
    %339 = arith.mulf %338, %312 : vector<1x256xf32>
    %340 = arith.addf %304, %339 : vector<1x256xf32>
    %c254 = arith.constant 254 : index
    %341 = memref.load %arg2[%c254] : memref<288xf32, #tpu.memory_space<smem>>
    %342 = vector.broadcast %341 : f32 to vector<1x256xf32>
    %343 = arith.mulf %342, %312 : vector<1x256xf32>
    %344 = arith.addf %308, %343 : vector<1x256xf32>
    %c15_i32_34 = arith.constant 15 : i32
    %345 = tpu.dynamic_rotate %15 by %c15_i32_34 dim 1 : vector<1x256xf32>, i32 -> vector<1x256xf32>
    %cst_35 = arith.constant 0.000000e+00 : f32
    %346 = vector.broadcast %cst_35 : f32 to vector<1x256xf32>
    %347 = arith.select %309, %345, %346 : vector<1x256xi1>, vector<1x256xf32>
    %c11 = arith.constant 11 : index
    %348 = memref.load %arg2[%c11] : memref<288xf32, #tpu.memory_space<smem>>
    %349 = vector.broadcast %348 : f32 to vector<1x256xf32>
    %350 = arith.mulf %349, %347 : vector<1x256xf32>
    %351 = arith.addf %316, %350 : vector<1x256xf32>
    %c47 = arith.constant 47 : index
    %352 = memref.load %arg2[%c47] : memref<288xf32, #tpu.memory_space<smem>>
    %353 = vector.broadcast %352 : f32 to vector<1x256xf32>
    %354 = arith.mulf %353, %347 : vector<1x256xf32>
    %355 = arith.addf %320, %354 : vector<1x256xf32>
    %c83 = arith.constant 83 : index
    %356 = memref.load %arg2[%c83] : memref<288xf32, #tpu.memory_space<smem>>
    %357 = vector.broadcast %356 : f32 to vector<1x256xf32>
    %358 = arith.mulf %357, %347 : vector<1x256xf32>
    %359 = arith.addf %324, %358 : vector<1x256xf32>
    %c119 = arith.constant 119 : index
    %360 = memref.load %arg2[%c119] : memref<288xf32, #tpu.memory_space<smem>>
    %361 = vector.broadcast %360 : f32 to vector<1x256xf32>
    %362 = arith.mulf %361, %347 : vector<1x256xf32>
    %363 = arith.addf %328, %362 : vector<1x256xf32>
    %c155 = arith.constant 155 : index
    %364 = memref.load %arg2[%c155] : memref<288xf32, #tpu.memory_space<smem>>
    %365 = vector.broadcast %364 : f32 to vector<1x256xf32>
    %366 = arith.mulf %365, %347 : vector<1x256xf32>
    %367 = arith.addf %332, %366 : vector<1x256xf32>
    %c191 = arith.constant 191 : index
    %368 = memref.load %arg2[%c191] : memref<288xf32, #tpu.memory_space<smem>>
    %369 = vector.broadcast %368 : f32 to vector<1x256xf32>
    %370 = arith.mulf %369, %347 : vector<1x256xf32>
    %371 = arith.addf %336, %370 : vector<1x256xf32>
    %c227 = arith.constant 227 : index
    %372 = memref.load %arg2[%c227] : memref<288xf32, #tpu.memory_space<smem>>
    %373 = vector.broadcast %372 : f32 to vector<1x256xf32>
    %374 = arith.mulf %373, %347 : vector<1x256xf32>
    %375 = arith.addf %340, %374 : vector<1x256xf32>
    %c263 = arith.constant 263 : index
    %376 = memref.load %arg2[%c263] : memref<288xf32, #tpu.memory_space<smem>>
    %377 = vector.broadcast %376 : f32 to vector<1x256xf32>
    %378 = arith.mulf %377, %347 : vector<1x256xf32>
    %379 = arith.addf %344, %378 : vector<1x256xf32>
    %c15_i32_36 = arith.constant 15 : i32
    %380 = tpu.dynamic_rotate %17 by %c15_i32_36 dim 1 : vector<1x256xf32>, i32 -> vector<1x256xf32>
    %cst_37 = arith.constant 0.000000e+00 : f32
    %381 = vector.broadcast %cst_37 : f32 to vector<1x256xf32>
    %382 = arith.select %309, %380, %381 : vector<1x256xi1>, vector<1x256xf32>
    %c20 = arith.constant 20 : index
    %383 = memref.load %arg2[%c20] : memref<288xf32, #tpu.memory_space<smem>>
    %384 = vector.broadcast %383 : f32 to vector<1x256xf32>
    %385 = arith.mulf %384, %382 : vector<1x256xf32>
    %386 = arith.addf %351, %385 : vector<1x256xf32>
    %c56 = arith.constant 56 : index
    %387 = memref.load %arg2[%c56] : memref<288xf32, #tpu.memory_space<smem>>
    %388 = vector.broadcast %387 : f32 to vector<1x256xf32>
    %389 = arith.mulf %388, %382 : vector<1x256xf32>
    %390 = arith.addf %355, %389 : vector<1x256xf32>
    %c92 = arith.constant 92 : index
    %391 = memref.load %arg2[%c92] : memref<288xf32, #tpu.memory_space<smem>>
    %392 = vector.broadcast %391 : f32 to vector<1x256xf32>
    %393 = arith.mulf %392, %382 : vector<1x256xf32>
    %394 = arith.addf %359, %393 : vector<1x256xf32>
    %c128 = arith.constant 128 : index
    %395 = memref.load %arg2[%c128] : memref<288xf32, #tpu.memory_space<smem>>
    %396 = vector.broadcast %395 : f32 to vector<1x256xf32>
    %397 = arith.mulf %396, %382 : vector<1x256xf32>
    %398 = arith.addf %363, %397 : vector<1x256xf32>
    %c164 = arith.constant 164 : index
    %399 = memref.load %arg2[%c164] : memref<288xf32, #tpu.memory_space<smem>>
    %400 = vector.broadcast %399 : f32 to vector<1x256xf32>
    %401 = arith.mulf %400, %382 : vector<1x256xf32>
    %402 = arith.addf %367, %401 : vector<1x256xf32>
    %c200 = arith.constant 200 : index
    %403 = memref.load %arg2[%c200] : memref<288xf32, #tpu.memory_space<smem>>
    %404 = vector.broadcast %403 : f32 to vector<1x256xf32>
    %405 = arith.mulf %404, %382 : vector<1x256xf32>
    %406 = arith.addf %371, %405 : vector<1x256xf32>
    %c236 = arith.constant 236 : index
    %407 = memref.load %arg2[%c236] : memref<288xf32, #tpu.memory_space<smem>>
    %408 = vector.broadcast %407 : f32 to vector<1x256xf32>
    %409 = arith.mulf %408, %382 : vector<1x256xf32>
    %410 = arith.addf %375, %409 : vector<1x256xf32>
    %c272 = arith.constant 272 : index
    %411 = memref.load %arg2[%c272] : memref<288xf32, #tpu.memory_space<smem>>
    %412 = vector.broadcast %411 : f32 to vector<1x256xf32>
    %413 = arith.mulf %412, %382 : vector<1x256xf32>
    %414 = arith.addf %379, %413 : vector<1x256xf32>
    %c15_i32_38 = arith.constant 15 : i32
    %415 = tpu.dynamic_rotate %19 by %c15_i32_38 dim 1 : vector<1x256xf32>, i32 -> vector<1x256xf32>
    %cst_39 = arith.constant 0.000000e+00 : f32
    %416 = vector.broadcast %cst_39 : f32 to vector<1x256xf32>
    %417 = arith.select %309, %415, %416 : vector<1x256xi1>, vector<1x256xf32>
    %c29 = arith.constant 29 : index
    %418 = memref.load %arg2[%c29] : memref<288xf32, #tpu.memory_space<smem>>
    %419 = vector.broadcast %418 : f32 to vector<1x256xf32>
    %420 = arith.mulf %419, %417 : vector<1x256xf32>
    %421 = arith.addf %386, %420 : vector<1x256xf32>
    %c65 = arith.constant 65 : index
    %422 = memref.load %arg2[%c65] : memref<288xf32, #tpu.memory_space<smem>>
    %423 = vector.broadcast %422 : f32 to vector<1x256xf32>
    %424 = arith.mulf %423, %417 : vector<1x256xf32>
    %425 = arith.addf %390, %424 : vector<1x256xf32>
    %c101 = arith.constant 101 : index
    %426 = memref.load %arg2[%c101] : memref<288xf32, #tpu.memory_space<smem>>
    %427 = vector.broadcast %426 : f32 to vector<1x256xf32>
    %428 = arith.mulf %427, %417 : vector<1x256xf32>
    %429 = arith.addf %394, %428 : vector<1x256xf32>
    %c137 = arith.constant 137 : index
    %430 = memref.load %arg2[%c137] : memref<288xf32, #tpu.memory_space<smem>>
    %431 = vector.broadcast %430 : f32 to vector<1x256xf32>
    %432 = arith.mulf %431, %417 : vector<1x256xf32>
    %433 = arith.addf %398, %432 : vector<1x256xf32>
    %c173 = arith.constant 173 : index
    %434 = memref.load %arg2[%c173] : memref<288xf32, #tpu.memory_space<smem>>
    %435 = vector.broadcast %434 : f32 to vector<1x256xf32>
    %436 = arith.mulf %435, %417 : vector<1x256xf32>
    %437 = arith.addf %402, %436 : vector<1x256xf32>
    %c209 = arith.constant 209 : index
    %438 = memref.load %arg2[%c209] : memref<288xf32, #tpu.memory_space<smem>>
    %439 = vector.broadcast %438 : f32 to vector<1x256xf32>
    %440 = arith.mulf %439, %417 : vector<1x256xf32>
    %441 = arith.addf %406, %440 : vector<1x256xf32>
    %c245 = arith.constant 245 : index
    %442 = memref.load %arg2[%c245] : memref<288xf32, #tpu.memory_space<smem>>
    %443 = vector.broadcast %442 : f32 to vector<1x256xf32>
    %444 = arith.mulf %443, %417 : vector<1x256xf32>
    %445 = arith.addf %410, %444 : vector<1x256xf32>
    %c281 = arith.constant 281 : index
    %446 = memref.load %arg2[%c281] : memref<288xf32, #tpu.memory_space<smem>>
    %447 = vector.broadcast %446 : f32 to vector<1x256xf32>
    %448 = arith.mulf %447, %417 : vector<1x256xf32>
    %449 = arith.addf %414, %448 : vector<1x256xf32>
    %c1_i32_40 = arith.constant 1 : i32
    %450 = tpu.dynamic_rotate %13 by %c1_i32_40 dim 1 : vector<1x256xf32>, i32 -> vector<1x256xf32>
    %cst_41 = arith.constant 0.000000e+00 : f32
    %451 = vector.broadcast %cst_41 : f32 to vector<1x256xf32>
    %452 = arith.select %9, %450, %451 : vector<1x256xi1>, vector<1x256xf32>
    %c3 = arith.constant 3 : index
    %453 = memref.load %arg2[%c3] : memref<288xf32, #tpu.memory_space<smem>>
    %454 = vector.broadcast %453 : f32 to vector<1x256xf32>
    %455 = arith.mulf %454, %452 : vector<1x256xf32>
    %456 = arith.addf %421, %455 : vector<1x256xf32>
    %c39 = arith.constant 39 : index
    %457 = memref.load %arg2[%c39] : memref<288xf32, #tpu.memory_space<smem>>
    %458 = vector.broadcast %457 : f32 to vector<1x256xf32>
    %459 = arith.mulf %458, %452 : vector<1x256xf32>
    %460 = arith.addf %425, %459 : vector<1x256xf32>
    %c75 = arith.constant 75 : index
    %461 = memref.load %arg2[%c75] : memref<288xf32, #tpu.memory_space<smem>>
    %462 = vector.broadcast %461 : f32 to vector<1x256xf32>
    %463 = arith.mulf %462, %452 : vector<1x256xf32>
    %464 = arith.addf %429, %463 : vector<1x256xf32>
    %c111 = arith.constant 111 : index
    %465 = memref.load %arg2[%c111] : memref<288xf32, #tpu.memory_space<smem>>
    %466 = vector.broadcast %465 : f32 to vector<1x256xf32>
    %467 = arith.mulf %466, %452 : vector<1x256xf32>
    %468 = arith.addf %433, %467 : vector<1x256xf32>
    %c147 = arith.constant 147 : index
    %469 = memref.load %arg2[%c147] : memref<288xf32, #tpu.memory_space<smem>>
    %470 = vector.broadcast %469 : f32 to vector<1x256xf32>
    %471 = arith.mulf %470, %452 : vector<1x256xf32>
    %472 = arith.addf %437, %471 : vector<1x256xf32>
    %c183 = arith.constant 183 : index
    %473 = memref.load %arg2[%c183] : memref<288xf32, #tpu.memory_space<smem>>
    %474 = vector.broadcast %473 : f32 to vector<1x256xf32>
    %475 = arith.mulf %474, %452 : vector<1x256xf32>
    %476 = arith.addf %441, %475 : vector<1x256xf32>
    %c219 = arith.constant 219 : index
    %477 = memref.load %arg2[%c219] : memref<288xf32, #tpu.memory_space<smem>>
    %478 = vector.broadcast %477 : f32 to vector<1x256xf32>
    %479 = arith.mulf %478, %452 : vector<1x256xf32>
    %480 = arith.addf %445, %479 : vector<1x256xf32>
    %c255 = arith.constant 255 : index
    %481 = memref.load %arg2[%c255] : memref<288xf32, #tpu.memory_space<smem>>
    %482 = vector.broadcast %481 : f32 to vector<1x256xf32>
    %483 = arith.mulf %482, %452 : vector<1x256xf32>
    %484 = arith.addf %449, %483 : vector<1x256xf32>
    %c1_i32_42 = arith.constant 1 : i32
    %485 = tpu.dynamic_rotate %15 by %c1_i32_42 dim 1 : vector<1x256xf32>, i32 -> vector<1x256xf32>
    %cst_43 = arith.constant 0.000000e+00 : f32
    %486 = vector.broadcast %cst_43 : f32 to vector<1x256xf32>
    %487 = arith.select %9, %485, %486 : vector<1x256xi1>, vector<1x256xf32>
    %c12 = arith.constant 12 : index
    %488 = memref.load %arg2[%c12] : memref<288xf32, #tpu.memory_space<smem>>
    %489 = vector.broadcast %488 : f32 to vector<1x256xf32>
    %490 = arith.mulf %489, %487 : vector<1x256xf32>
    %491 = arith.addf %456, %490 : vector<1x256xf32>
    %c48 = arith.constant 48 : index
    %492 = memref.load %arg2[%c48] : memref<288xf32, #tpu.memory_space<smem>>
    %493 = vector.broadcast %492 : f32 to vector<1x256xf32>
    %494 = arith.mulf %493, %487 : vector<1x256xf32>
    %495 = arith.addf %460, %494 : vector<1x256xf32>
    %c84 = arith.constant 84 : index
    %496 = memref.load %arg2[%c84] : memref<288xf32, #tpu.memory_space<smem>>
    %497 = vector.broadcast %496 : f32 to vector<1x256xf32>
    %498 = arith.mulf %497, %487 : vector<1x256xf32>
    %499 = arith.addf %464, %498 : vector<1x256xf32>
    %c120 = arith.constant 120 : index
    %500 = memref.load %arg2[%c120] : memref<288xf32, #tpu.memory_space<smem>>
    %501 = vector.broadcast %500 : f32 to vector<1x256xf32>
    %502 = arith.mulf %501, %487 : vector<1x256xf32>
    %503 = arith.addf %468, %502 : vector<1x256xf32>
    %c156 = arith.constant 156 : index
    %504 = memref.load %arg2[%c156] : memref<288xf32, #tpu.memory_space<smem>>
    %505 = vector.broadcast %504 : f32 to vector<1x256xf32>
    %506 = arith.mulf %505, %487 : vector<1x256xf32>
    %507 = arith.addf %472, %506 : vector<1x256xf32>
    %c192 = arith.constant 192 : index
    %508 = memref.load %arg2[%c192] : memref<288xf32, #tpu.memory_space<smem>>
    %509 = vector.broadcast %508 : f32 to vector<1x256xf32>
    %510 = arith.mulf %509, %487 : vector<1x256xf32>
    %511 = arith.addf %476, %510 : vector<1x256xf32>
    %c228 = arith.constant 228 : index
    %512 = memref.load %arg2[%c228] : memref<288xf32, #tpu.memory_space<smem>>
    %513 = vector.broadcast %512 : f32 to vector<1x256xf32>
    %514 = arith.mulf %513, %487 : vector<1x256xf32>
    %515 = arith.addf %480, %514 : vector<1x256xf32>
    %c264 = arith.constant 264 : index
    %516 = memref.load %arg2[%c264] : memref<288xf32, #tpu.memory_space<smem>>
    %517 = vector.broadcast %516 : f32 to vector<1x256xf32>
    %518 = arith.mulf %517, %487 : vector<1x256xf32>
    %519 = arith.addf %484, %518 : vector<1x256xf32>
    %c1_i32_44 = arith.constant 1 : i32
    %520 = tpu.dynamic_rotate %17 by %c1_i32_44 dim 1 : vector<1x256xf32>, i32 -> vector<1x256xf32>
    %cst_45 = arith.constant 0.000000e+00 : f32
    %521 = vector.broadcast %cst_45 : f32 to vector<1x256xf32>
    %522 = arith.select %9, %520, %521 : vector<1x256xi1>, vector<1x256xf32>
    %c21 = arith.constant 21 : index
    %523 = memref.load %arg2[%c21] : memref<288xf32, #tpu.memory_space<smem>>
    %524 = vector.broadcast %523 : f32 to vector<1x256xf32>
    %525 = arith.mulf %524, %522 : vector<1x256xf32>
    %526 = arith.addf %491, %525 : vector<1x256xf32>
    %c57 = arith.constant 57 : index
    %527 = memref.load %arg2[%c57] : memref<288xf32, #tpu.memory_space<smem>>
    %528 = vector.broadcast %527 : f32 to vector<1x256xf32>
    %529 = arith.mulf %528, %522 : vector<1x256xf32>
    %530 = arith.addf %495, %529 : vector<1x256xf32>
    %c93 = arith.constant 93 : index
    %531 = memref.load %arg2[%c93] : memref<288xf32, #tpu.memory_space<smem>>
    %532 = vector.broadcast %531 : f32 to vector<1x256xf32>
    %533 = arith.mulf %532, %522 : vector<1x256xf32>
    %534 = arith.addf %499, %533 : vector<1x256xf32>
    %c129 = arith.constant 129 : index
    %535 = memref.load %arg2[%c129] : memref<288xf32, #tpu.memory_space<smem>>
    %536 = vector.broadcast %535 : f32 to vector<1x256xf32>
    %537 = arith.mulf %536, %522 : vector<1x256xf32>
    %538 = arith.addf %503, %537 : vector<1x256xf32>
    %c165 = arith.constant 165 : index
    %539 = memref.load %arg2[%c165] : memref<288xf32, #tpu.memory_space<smem>>
    %540 = vector.broadcast %539 : f32 to vector<1x256xf32>
    %541 = arith.mulf %540, %522 : vector<1x256xf32>
    %542 = arith.addf %507, %541 : vector<1x256xf32>
    %c201 = arith.constant 201 : index
    %543 = memref.load %arg2[%c201] : memref<288xf32, #tpu.memory_space<smem>>
    %544 = vector.broadcast %543 : f32 to vector<1x256xf32>
    %545 = arith.mulf %544, %522 : vector<1x256xf32>
    %546 = arith.addf %511, %545 : vector<1x256xf32>
    %c237 = arith.constant 237 : index
    %547 = memref.load %arg2[%c237] : memref<288xf32, #tpu.memory_space<smem>>
    %548 = vector.broadcast %547 : f32 to vector<1x256xf32>
    %549 = arith.mulf %548, %522 : vector<1x256xf32>
    %550 = arith.addf %515, %549 : vector<1x256xf32>
    %c273 = arith.constant 273 : index
    %551 = memref.load %arg2[%c273] : memref<288xf32, #tpu.memory_space<smem>>
    %552 = vector.broadcast %551 : f32 to vector<1x256xf32>
    %553 = arith.mulf %552, %522 : vector<1x256xf32>
    %554 = arith.addf %519, %553 : vector<1x256xf32>
    %c1_i32_46 = arith.constant 1 : i32
    %555 = tpu.dynamic_rotate %19 by %c1_i32_46 dim 1 : vector<1x256xf32>, i32 -> vector<1x256xf32>
    %cst_47 = arith.constant 0.000000e+00 : f32
    %556 = vector.broadcast %cst_47 : f32 to vector<1x256xf32>
    %557 = arith.select %9, %555, %556 : vector<1x256xi1>, vector<1x256xf32>
    %c30 = arith.constant 30 : index
    %558 = memref.load %arg2[%c30] : memref<288xf32, #tpu.memory_space<smem>>
    %559 = vector.broadcast %558 : f32 to vector<1x256xf32>
    %560 = arith.mulf %559, %557 : vector<1x256xf32>
    %561 = arith.addf %526, %560 : vector<1x256xf32>
    %c66 = arith.constant 66 : index
    %562 = memref.load %arg2[%c66] : memref<288xf32, #tpu.memory_space<smem>>
    %563 = vector.broadcast %562 : f32 to vector<1x256xf32>
    %564 = arith.mulf %563, %557 : vector<1x256xf32>
    %565 = arith.addf %530, %564 : vector<1x256xf32>
    %c102 = arith.constant 102 : index
    %566 = memref.load %arg2[%c102] : memref<288xf32, #tpu.memory_space<smem>>
    %567 = vector.broadcast %566 : f32 to vector<1x256xf32>
    %568 = arith.mulf %567, %557 : vector<1x256xf32>
    %569 = arith.addf %534, %568 : vector<1x256xf32>
    %c138 = arith.constant 138 : index
    %570 = memref.load %arg2[%c138] : memref<288xf32, #tpu.memory_space<smem>>
    %571 = vector.broadcast %570 : f32 to vector<1x256xf32>
    %572 = arith.mulf %571, %557 : vector<1x256xf32>
    %573 = arith.addf %538, %572 : vector<1x256xf32>
    %c174 = arith.constant 174 : index
    %574 = memref.load %arg2[%c174] : memref<288xf32, #tpu.memory_space<smem>>
    %575 = vector.broadcast %574 : f32 to vector<1x256xf32>
    %576 = arith.mulf %575, %557 : vector<1x256xf32>
    %577 = arith.addf %542, %576 : vector<1x256xf32>
    %c210 = arith.constant 210 : index
    %578 = memref.load %arg2[%c210] : memref<288xf32, #tpu.memory_space<smem>>
    %579 = vector.broadcast %578 : f32 to vector<1x256xf32>
    %580 = arith.mulf %579, %557 : vector<1x256xf32>
    %581 = arith.addf %546, %580 : vector<1x256xf32>
    %c246 = arith.constant 246 : index
    %582 = memref.load %arg2[%c246] : memref<288xf32, #tpu.memory_space<smem>>
    %583 = vector.broadcast %582 : f32 to vector<1x256xf32>
    %584 = arith.mulf %583, %557 : vector<1x256xf32>
    %585 = arith.addf %550, %584 : vector<1x256xf32>
    %c282 = arith.constant 282 : index
    %586 = memref.load %arg2[%c282] : memref<288xf32, #tpu.memory_space<smem>>
    %587 = vector.broadcast %586 : f32 to vector<1x256xf32>
    %588 = arith.mulf %587, %557 : vector<1x256xf32>
    %589 = arith.addf %554, %588 : vector<1x256xf32>
    %c4 = arith.constant 4 : index
    %590 = memref.load %arg2[%c4] : memref<288xf32, #tpu.memory_space<smem>>
    %591 = vector.broadcast %590 : f32 to vector<1x256xf32>
    %592 = arith.mulf %591, %13 : vector<1x256xf32>
    %593 = arith.addf %561, %592 : vector<1x256xf32>
    %c40 = arith.constant 40 : index
    %594 = memref.load %arg2[%c40] : memref<288xf32, #tpu.memory_space<smem>>
    %595 = vector.broadcast %594 : f32 to vector<1x256xf32>
    %596 = arith.mulf %595, %13 : vector<1x256xf32>
    %597 = arith.addf %565, %596 : vector<1x256xf32>
    %c76 = arith.constant 76 : index
    %598 = memref.load %arg2[%c76] : memref<288xf32, #tpu.memory_space<smem>>
    %599 = vector.broadcast %598 : f32 to vector<1x256xf32>
    %600 = arith.mulf %599, %13 : vector<1x256xf32>
    %601 = arith.addf %569, %600 : vector<1x256xf32>
    %c112 = arith.constant 112 : index
    %602 = memref.load %arg2[%c112] : memref<288xf32, #tpu.memory_space<smem>>
    %603 = vector.broadcast %602 : f32 to vector<1x256xf32>
    %604 = arith.mulf %603, %13 : vector<1x256xf32>
    %605 = arith.addf %573, %604 : vector<1x256xf32>
    %c148 = arith.constant 148 : index
    %606 = memref.load %arg2[%c148] : memref<288xf32, #tpu.memory_space<smem>>
    %607 = vector.broadcast %606 : f32 to vector<1x256xf32>
    %608 = arith.mulf %607, %13 : vector<1x256xf32>
    %609 = arith.addf %577, %608 : vector<1x256xf32>
    %c184 = arith.constant 184 : index
    %610 = memref.load %arg2[%c184] : memref<288xf32, #tpu.memory_space<smem>>
    %611 = vector.broadcast %610 : f32 to vector<1x256xf32>
    %612 = arith.mulf %611, %13 : vector<1x256xf32>
    %613 = arith.addf %581, %612 : vector<1x256xf32>
    %c220 = arith.constant 220 : index
    %614 = memref.load %arg2[%c220] : memref<288xf32, #tpu.memory_space<smem>>
    %615 = vector.broadcast %614 : f32 to vector<1x256xf32>
    %616 = arith.mulf %615, %13 : vector<1x256xf32>
    %617 = arith.addf %585, %616 : vector<1x256xf32>
    %c256_48 = arith.constant 256 : index
    %618 = memref.load %arg2[%c256_48] : memref<288xf32, #tpu.memory_space<smem>>
    %619 = vector.broadcast %618 : f32 to vector<1x256xf32>
    %620 = arith.mulf %619, %13 : vector<1x256xf32>
    %621 = arith.addf %589, %620 : vector<1x256xf32>
    %c13 = arith.constant 13 : index
    %622 = memref.load %arg2[%c13] : memref<288xf32, #tpu.memory_space<smem>>
    %623 = vector.broadcast %622 : f32 to vector<1x256xf32>
    %624 = arith.mulf %623, %15 : vector<1x256xf32>
    %625 = arith.addf %593, %624 : vector<1x256xf32>
    %c49 = arith.constant 49 : index
    %626 = memref.load %arg2[%c49] : memref<288xf32, #tpu.memory_space<smem>>
    %627 = vector.broadcast %626 : f32 to vector<1x256xf32>
    %628 = arith.mulf %627, %15 : vector<1x256xf32>
    %629 = arith.addf %597, %628 : vector<1x256xf32>
    %c85 = arith.constant 85 : index
    %630 = memref.load %arg2[%c85] : memref<288xf32, #tpu.memory_space<smem>>
    %631 = vector.broadcast %630 : f32 to vector<1x256xf32>
    %632 = arith.mulf %631, %15 : vector<1x256xf32>
    %633 = arith.addf %601, %632 : vector<1x256xf32>
    %c121 = arith.constant 121 : index
    %634 = memref.load %arg2[%c121] : memref<288xf32, #tpu.memory_space<smem>>
    %635 = vector.broadcast %634 : f32 to vector<1x256xf32>
    %636 = arith.mulf %635, %15 : vector<1x256xf32>
    %637 = arith.addf %605, %636 : vector<1x256xf32>
    %c157 = arith.constant 157 : index
    %638 = memref.load %arg2[%c157] : memref<288xf32, #tpu.memory_space<smem>>
    %639 = vector.broadcast %638 : f32 to vector<1x256xf32>
    %640 = arith.mulf %639, %15 : vector<1x256xf32>
    %641 = arith.addf %609, %640 : vector<1x256xf32>
    %c193 = arith.constant 193 : index
    %642 = memref.load %arg2[%c193] : memref<288xf32, #tpu.memory_space<smem>>
    %643 = vector.broadcast %642 : f32 to vector<1x256xf32>
    %644 = arith.mulf %643, %15 : vector<1x256xf32>
    %645 = arith.addf %613, %644 : vector<1x256xf32>
    %c229 = arith.constant 229 : index
    %646 = memref.load %arg2[%c229] : memref<288xf32, #tpu.memory_space<smem>>
    %647 = vector.broadcast %646 : f32 to vector<1x256xf32>
    %648 = arith.mulf %647, %15 : vector<1x256xf32>
    %649 = arith.addf %617, %648 : vector<1x256xf32>
    %c265 = arith.constant 265 : index
    %650 = memref.load %arg2[%c265] : memref<288xf32, #tpu.memory_space<smem>>
    %651 = vector.broadcast %650 : f32 to vector<1x256xf32>
    %652 = arith.mulf %651, %15 : vector<1x256xf32>
    %653 = arith.addf %621, %652 : vector<1x256xf32>
    %c22 = arith.constant 22 : index
    %654 = memref.load %arg2[%c22] : memref<288xf32, #tpu.memory_space<smem>>
    %655 = vector.broadcast %654 : f32 to vector<1x256xf32>
    %656 = arith.mulf %655, %17 : vector<1x256xf32>
    %657 = arith.addf %625, %656 : vector<1x256xf32>
    %c58 = arith.constant 58 : index
    %658 = memref.load %arg2[%c58] : memref<288xf32, #tpu.memory_space<smem>>
    %659 = vector.broadcast %658 : f32 to vector<1x256xf32>
    %660 = arith.mulf %659, %17 : vector<1x256xf32>
    %661 = arith.addf %629, %660 : vector<1x256xf32>
    %c94 = arith.constant 94 : index
    %662 = memref.load %arg2[%c94] : memref<288xf32, #tpu.memory_space<smem>>
    %663 = vector.broadcast %662 : f32 to vector<1x256xf32>
    %664 = arith.mulf %663, %17 : vector<1x256xf32>
    %665 = arith.addf %633, %664 : vector<1x256xf32>
    %c130 = arith.constant 130 : index
    %666 = memref.load %arg2[%c130] : memref<288xf32, #tpu.memory_space<smem>>
    %667 = vector.broadcast %666 : f32 to vector<1x256xf32>
    %668 = arith.mulf %667, %17 : vector<1x256xf32>
    %669 = arith.addf %637, %668 : vector<1x256xf32>
    %c166 = arith.constant 166 : index
    %670 = memref.load %arg2[%c166] : memref<288xf32, #tpu.memory_space<smem>>
    %671 = vector.broadcast %670 : f32 to vector<1x256xf32>
    %672 = arith.mulf %671, %17 : vector<1x256xf32>
    %673 = arith.addf %641, %672 : vector<1x256xf32>
    %c202 = arith.constant 202 : index
    %674 = memref.load %arg2[%c202] : memref<288xf32, #tpu.memory_space<smem>>
    %675 = vector.broadcast %674 : f32 to vector<1x256xf32>
    %676 = arith.mulf %675, %17 : vector<1x256xf32>
    %677 = arith.addf %645, %676 : vector<1x256xf32>
    %c238 = arith.constant 238 : index
    %678 = memref.load %arg2[%c238] : memref<288xf32, #tpu.memory_space<smem>>
    %679 = vector.broadcast %678 : f32 to vector<1x256xf32>
    %680 = arith.mulf %679, %17 : vector<1x256xf32>
    %681 = arith.addf %649, %680 : vector<1x256xf32>
    %c274 = arith.constant 274 : index
    %682 = memref.load %arg2[%c274] : memref<288xf32, #tpu.memory_space<smem>>
    %683 = vector.broadcast %682 : f32 to vector<1x256xf32>
    %684 = arith.mulf %683, %17 : vector<1x256xf32>
    %685 = arith.addf %653, %684 : vector<1x256xf32>
    %c31 = arith.constant 31 : index
    %686 = memref.load %arg2[%c31] : memref<288xf32, #tpu.memory_space<smem>>
    %687 = vector.broadcast %686 : f32 to vector<1x256xf32>
    %688 = arith.mulf %687, %19 : vector<1x256xf32>
    %689 = arith.addf %657, %688 : vector<1x256xf32>
    %c67 = arith.constant 67 : index
    %690 = memref.load %arg2[%c67] : memref<288xf32, #tpu.memory_space<smem>>
    %691 = vector.broadcast %690 : f32 to vector<1x256xf32>
    %692 = arith.mulf %691, %19 : vector<1x256xf32>
    %693 = arith.addf %661, %692 : vector<1x256xf32>
    %c103 = arith.constant 103 : index
    %694 = memref.load %arg2[%c103] : memref<288xf32, #tpu.memory_space<smem>>
    %695 = vector.broadcast %694 : f32 to vector<1x256xf32>
    %696 = arith.mulf %695, %19 : vector<1x256xf32>
    %697 = arith.addf %665, %696 : vector<1x256xf32>
    %c139 = arith.constant 139 : index
    %698 = memref.load %arg2[%c139] : memref<288xf32, #tpu.memory_space<smem>>
    %699 = vector.broadcast %698 : f32 to vector<1x256xf32>
    %700 = arith.mulf %699, %19 : vector<1x256xf32>
    %701 = arith.addf %669, %700 : vector<1x256xf32>
    %c175 = arith.constant 175 : index
    %702 = memref.load %arg2[%c175] : memref<288xf32, #tpu.memory_space<smem>>
    %703 = vector.broadcast %702 : f32 to vector<1x256xf32>
    %704 = arith.mulf %703, %19 : vector<1x256xf32>
    %705 = arith.addf %673, %704 : vector<1x256xf32>
    %c211 = arith.constant 211 : index
    %706 = memref.load %arg2[%c211] : memref<288xf32, #tpu.memory_space<smem>>
    %707 = vector.broadcast %706 : f32 to vector<1x256xf32>
    %708 = arith.mulf %707, %19 : vector<1x256xf32>
    %709 = arith.addf %677, %708 : vector<1x256xf32>
    %c247 = arith.constant 247 : index
    %710 = memref.load %arg2[%c247] : memref<288xf32, #tpu.memory_space<smem>>
    %711 = vector.broadcast %710 : f32 to vector<1x256xf32>
    %712 = arith.mulf %711, %19 : vector<1x256xf32>
    %713 = arith.addf %681, %712 : vector<1x256xf32>
    %c283 = arith.constant 283 : index
    %714 = memref.load %arg2[%c283] : memref<288xf32, #tpu.memory_space<smem>>
    %715 = vector.broadcast %714 : f32 to vector<1x256xf32>
    %716 = arith.mulf %715, %19 : vector<1x256xf32>
    %717 = arith.addf %685, %716 : vector<1x256xf32>
    %c255_i32 = arith.constant 255 : i32
    %718 = tpu.dynamic_rotate %13 by %c255_i32 dim 1 : vector<1x256xf32>, i32 -> vector<1x256xf32>
    %cst_49 = arith.constant 0.000000e+00 : f32
    %719 = vector.broadcast %cst_49 : f32 to vector<1x256xf32>
    %720 = arith.select %11, %718, %719 : vector<1x256xi1>, vector<1x256xf32>
    %c5 = arith.constant 5 : index
    %721 = memref.load %arg2[%c5] : memref<288xf32, #tpu.memory_space<smem>>
    %722 = vector.broadcast %721 : f32 to vector<1x256xf32>
    %723 = arith.mulf %722, %720 : vector<1x256xf32>
    %724 = arith.addf %689, %723 : vector<1x256xf32>
    %c41 = arith.constant 41 : index
    %725 = memref.load %arg2[%c41] : memref<288xf32, #tpu.memory_space<smem>>
    %726 = vector.broadcast %725 : f32 to vector<1x256xf32>
    %727 = arith.mulf %726, %720 : vector<1x256xf32>
    %728 = arith.addf %693, %727 : vector<1x256xf32>
    %c77 = arith.constant 77 : index
    %729 = memref.load %arg2[%c77] : memref<288xf32, #tpu.memory_space<smem>>
    %730 = vector.broadcast %729 : f32 to vector<1x256xf32>
    %731 = arith.mulf %730, %720 : vector<1x256xf32>
    %732 = arith.addf %697, %731 : vector<1x256xf32>
    %c113 = arith.constant 113 : index
    %733 = memref.load %arg2[%c113] : memref<288xf32, #tpu.memory_space<smem>>
    %734 = vector.broadcast %733 : f32 to vector<1x256xf32>
    %735 = arith.mulf %734, %720 : vector<1x256xf32>
    %736 = arith.addf %701, %735 : vector<1x256xf32>
    %c149 = arith.constant 149 : index
    %737 = memref.load %arg2[%c149] : memref<288xf32, #tpu.memory_space<smem>>
    %738 = vector.broadcast %737 : f32 to vector<1x256xf32>
    %739 = arith.mulf %738, %720 : vector<1x256xf32>
    %740 = arith.addf %705, %739 : vector<1x256xf32>
    %c185 = arith.constant 185 : index
    %741 = memref.load %arg2[%c185] : memref<288xf32, #tpu.memory_space<smem>>
    %742 = vector.broadcast %741 : f32 to vector<1x256xf32>
    %743 = arith.mulf %742, %720 : vector<1x256xf32>
    %744 = arith.addf %709, %743 : vector<1x256xf32>
    %c221 = arith.constant 221 : index
    %745 = memref.load %arg2[%c221] : memref<288xf32, #tpu.memory_space<smem>>
    %746 = vector.broadcast %745 : f32 to vector<1x256xf32>
    %747 = arith.mulf %746, %720 : vector<1x256xf32>
    %748 = arith.addf %713, %747 : vector<1x256xf32>
    %c257 = arith.constant 257 : index
    %749 = memref.load %arg2[%c257] : memref<288xf32, #tpu.memory_space<smem>>
    %750 = vector.broadcast %749 : f32 to vector<1x256xf32>
    %751 = arith.mulf %750, %720 : vector<1x256xf32>
    %752 = arith.addf %717, %751 : vector<1x256xf32>
    %c255_i32_50 = arith.constant 255 : i32
    %753 = tpu.dynamic_rotate %15 by %c255_i32_50 dim 1 : vector<1x256xf32>, i32 -> vector<1x256xf32>
    %cst_51 = arith.constant 0.000000e+00 : f32
    %754 = vector.broadcast %cst_51 : f32 to vector<1x256xf32>
    %755 = arith.select %11, %753, %754 : vector<1x256xi1>, vector<1x256xf32>
    %c14 = arith.constant 14 : index
    %756 = memref.load %arg2[%c14] : memref<288xf32, #tpu.memory_space<smem>>
    %757 = vector.broadcast %756 : f32 to vector<1x256xf32>
    %758 = arith.mulf %757, %755 : vector<1x256xf32>
    %759 = arith.addf %724, %758 : vector<1x256xf32>
    %c50 = arith.constant 50 : index
    %760 = memref.load %arg2[%c50] : memref<288xf32, #tpu.memory_space<smem>>
    %761 = vector.broadcast %760 : f32 to vector<1x256xf32>
    %762 = arith.mulf %761, %755 : vector<1x256xf32>
    %763 = arith.addf %728, %762 : vector<1x256xf32>
    %c86 = arith.constant 86 : index
    %764 = memref.load %arg2[%c86] : memref<288xf32, #tpu.memory_space<smem>>
    %765 = vector.broadcast %764 : f32 to vector<1x256xf32>
    %766 = arith.mulf %765, %755 : vector<1x256xf32>
    %767 = arith.addf %732, %766 : vector<1x256xf32>
    %c122 = arith.constant 122 : index
    %768 = memref.load %arg2[%c122] : memref<288xf32, #tpu.memory_space<smem>>
    %769 = vector.broadcast %768 : f32 to vector<1x256xf32>
    %770 = arith.mulf %769, %755 : vector<1x256xf32>
    %771 = arith.addf %736, %770 : vector<1x256xf32>
    %c158 = arith.constant 158 : index
    %772 = memref.load %arg2[%c158] : memref<288xf32, #tpu.memory_space<smem>>
    %773 = vector.broadcast %772 : f32 to vector<1x256xf32>
    %774 = arith.mulf %773, %755 : vector<1x256xf32>
    %775 = arith.addf %740, %774 : vector<1x256xf32>
    %c194 = arith.constant 194 : index
    %776 = memref.load %arg2[%c194] : memref<288xf32, #tpu.memory_space<smem>>
    %777 = vector.broadcast %776 : f32 to vector<1x256xf32>
    %778 = arith.mulf %777, %755 : vector<1x256xf32>
    %779 = arith.addf %744, %778 : vector<1x256xf32>
    %c230 = arith.constant 230 : index
    %780 = memref.load %arg2[%c230] : memref<288xf32, #tpu.memory_space<smem>>
    %781 = vector.broadcast %780 : f32 to vector<1x256xf32>
    %782 = arith.mulf %781, %755 : vector<1x256xf32>
    %783 = arith.addf %748, %782 : vector<1x256xf32>
    %c266 = arith.constant 266 : index
    %784 = memref.load %arg2[%c266] : memref<288xf32, #tpu.memory_space<smem>>
    %785 = vector.broadcast %784 : f32 to vector<1x256xf32>
    %786 = arith.mulf %785, %755 : vector<1x256xf32>
    %787 = arith.addf %752, %786 : vector<1x256xf32>
    %c255_i32_52 = arith.constant 255 : i32
    %788 = tpu.dynamic_rotate %17 by %c255_i32_52 dim 1 : vector<1x256xf32>, i32 -> vector<1x256xf32>
    %cst_53 = arith.constant 0.000000e+00 : f32
    %789 = vector.broadcast %cst_53 : f32 to vector<1x256xf32>
    %790 = arith.select %11, %788, %789 : vector<1x256xi1>, vector<1x256xf32>
    %c23 = arith.constant 23 : index
    %791 = memref.load %arg2[%c23] : memref<288xf32, #tpu.memory_space<smem>>
    %792 = vector.broadcast %791 : f32 to vector<1x256xf32>
    %793 = arith.mulf %792, %790 : vector<1x256xf32>
    %794 = arith.addf %759, %793 : vector<1x256xf32>
    %c59 = arith.constant 59 : index
    %795 = memref.load %arg2[%c59] : memref<288xf32, #tpu.memory_space<smem>>
    %796 = vector.broadcast %795 : f32 to vector<1x256xf32>
    %797 = arith.mulf %796, %790 : vector<1x256xf32>
    %798 = arith.addf %763, %797 : vector<1x256xf32>
    %c95 = arith.constant 95 : index
    %799 = memref.load %arg2[%c95] : memref<288xf32, #tpu.memory_space<smem>>
    %800 = vector.broadcast %799 : f32 to vector<1x256xf32>
    %801 = arith.mulf %800, %790 : vector<1x256xf32>
    %802 = arith.addf %767, %801 : vector<1x256xf32>
    %c131 = arith.constant 131 : index
    %803 = memref.load %arg2[%c131] : memref<288xf32, #tpu.memory_space<smem>>
    %804 = vector.broadcast %803 : f32 to vector<1x256xf32>
    %805 = arith.mulf %804, %790 : vector<1x256xf32>
    %806 = arith.addf %771, %805 : vector<1x256xf32>
    %c167 = arith.constant 167 : index
    %807 = memref.load %arg2[%c167] : memref<288xf32, #tpu.memory_space<smem>>
    %808 = vector.broadcast %807 : f32 to vector<1x256xf32>
    %809 = arith.mulf %808, %790 : vector<1x256xf32>
    %810 = arith.addf %775, %809 : vector<1x256xf32>
    %c203 = arith.constant 203 : index
    %811 = memref.load %arg2[%c203] : memref<288xf32, #tpu.memory_space<smem>>
    %812 = vector.broadcast %811 : f32 to vector<1x256xf32>
    %813 = arith.mulf %812, %790 : vector<1x256xf32>
    %814 = arith.addf %779, %813 : vector<1x256xf32>
    %c239 = arith.constant 239 : index
    %815 = memref.load %arg2[%c239] : memref<288xf32, #tpu.memory_space<smem>>
    %816 = vector.broadcast %815 : f32 to vector<1x256xf32>
    %817 = arith.mulf %816, %790 : vector<1x256xf32>
    %818 = arith.addf %783, %817 : vector<1x256xf32>
    %c275 = arith.constant 275 : index
    %819 = memref.load %arg2[%c275] : memref<288xf32, #tpu.memory_space<smem>>
    %820 = vector.broadcast %819 : f32 to vector<1x256xf32>
    %821 = arith.mulf %820, %790 : vector<1x256xf32>
    %822 = arith.addf %787, %821 : vector<1x256xf32>
    %c255_i32_54 = arith.constant 255 : i32
    %823 = tpu.dynamic_rotate %19 by %c255_i32_54 dim 1 : vector<1x256xf32>, i32 -> vector<1x256xf32>
    %cst_55 = arith.constant 0.000000e+00 : f32
    %824 = vector.broadcast %cst_55 : f32 to vector<1x256xf32>
    %825 = arith.select %11, %823, %824 : vector<1x256xi1>, vector<1x256xf32>
    %c32 = arith.constant 32 : index
    %826 = memref.load %arg2[%c32] : memref<288xf32, #tpu.memory_space<smem>>
    %827 = vector.broadcast %826 : f32 to vector<1x256xf32>
    %828 = arith.mulf %827, %825 : vector<1x256xf32>
    %829 = arith.addf %794, %828 : vector<1x256xf32>
    %c68 = arith.constant 68 : index
    %830 = memref.load %arg2[%c68] : memref<288xf32, #tpu.memory_space<smem>>
    %831 = vector.broadcast %830 : f32 to vector<1x256xf32>
    %832 = arith.mulf %831, %825 : vector<1x256xf32>
    %833 = arith.addf %798, %832 : vector<1x256xf32>
    %c104 = arith.constant 104 : index
    %834 = memref.load %arg2[%c104] : memref<288xf32, #tpu.memory_space<smem>>
    %835 = vector.broadcast %834 : f32 to vector<1x256xf32>
    %836 = arith.mulf %835, %825 : vector<1x256xf32>
    %837 = arith.addf %802, %836 : vector<1x256xf32>
    %c140 = arith.constant 140 : index
    %838 = memref.load %arg2[%c140] : memref<288xf32, #tpu.memory_space<smem>>
    %839 = vector.broadcast %838 : f32 to vector<1x256xf32>
    %840 = arith.mulf %839, %825 : vector<1x256xf32>
    %841 = arith.addf %806, %840 : vector<1x256xf32>
    %c176 = arith.constant 176 : index
    %842 = memref.load %arg2[%c176] : memref<288xf32, #tpu.memory_space<smem>>
    %843 = vector.broadcast %842 : f32 to vector<1x256xf32>
    %844 = arith.mulf %843, %825 : vector<1x256xf32>
    %845 = arith.addf %810, %844 : vector<1x256xf32>
    %c212 = arith.constant 212 : index
    %846 = memref.load %arg2[%c212] : memref<288xf32, #tpu.memory_space<smem>>
    %847 = vector.broadcast %846 : f32 to vector<1x256xf32>
    %848 = arith.mulf %847, %825 : vector<1x256xf32>
    %849 = arith.addf %814, %848 : vector<1x256xf32>
    %c248 = arith.constant 248 : index
    %850 = memref.load %arg2[%c248] : memref<288xf32, #tpu.memory_space<smem>>
    %851 = vector.broadcast %850 : f32 to vector<1x256xf32>
    %852 = arith.mulf %851, %825 : vector<1x256xf32>
    %853 = arith.addf %818, %852 : vector<1x256xf32>
    %c284 = arith.constant 284 : index
    %854 = memref.load %arg2[%c284] : memref<288xf32, #tpu.memory_space<smem>>
    %855 = vector.broadcast %854 : f32 to vector<1x256xf32>
    %856 = arith.mulf %855, %825 : vector<1x256xf32>
    %857 = arith.addf %822, %856 : vector<1x256xf32>
    %858 = arith.andi %7, %9 : vector<1x256xi1>
    %c241_i32 = arith.constant 241 : i32
    %859 = tpu.dynamic_rotate %13 by %c241_i32 dim 1 : vector<1x256xf32>, i32 -> vector<1x256xf32>
    %cst_56 = arith.constant 0.000000e+00 : f32
    %860 = vector.broadcast %cst_56 : f32 to vector<1x256xf32>
    %861 = arith.select %858, %859, %860 : vector<1x256xi1>, vector<1x256xf32>
    %c6 = arith.constant 6 : index
    %862 = memref.load %arg2[%c6] : memref<288xf32, #tpu.memory_space<smem>>
    %863 = vector.broadcast %862 : f32 to vector<1x256xf32>
    %864 = arith.mulf %863, %861 : vector<1x256xf32>
    %865 = arith.addf %829, %864 : vector<1x256xf32>
    %c42 = arith.constant 42 : index
    %866 = memref.load %arg2[%c42] : memref<288xf32, #tpu.memory_space<smem>>
    %867 = vector.broadcast %866 : f32 to vector<1x256xf32>
    %868 = arith.mulf %867, %861 : vector<1x256xf32>
    %869 = arith.addf %833, %868 : vector<1x256xf32>
    %c78 = arith.constant 78 : index
    %870 = memref.load %arg2[%c78] : memref<288xf32, #tpu.memory_space<smem>>
    %871 = vector.broadcast %870 : f32 to vector<1x256xf32>
    %872 = arith.mulf %871, %861 : vector<1x256xf32>
    %873 = arith.addf %837, %872 : vector<1x256xf32>
    %c114 = arith.constant 114 : index
    %874 = memref.load %arg2[%c114] : memref<288xf32, #tpu.memory_space<smem>>
    %875 = vector.broadcast %874 : f32 to vector<1x256xf32>
    %876 = arith.mulf %875, %861 : vector<1x256xf32>
    %877 = arith.addf %841, %876 : vector<1x256xf32>
    %c150 = arith.constant 150 : index
    %878 = memref.load %arg2[%c150] : memref<288xf32, #tpu.memory_space<smem>>
    %879 = vector.broadcast %878 : f32 to vector<1x256xf32>
    %880 = arith.mulf %879, %861 : vector<1x256xf32>
    %881 = arith.addf %845, %880 : vector<1x256xf32>
    %c186 = arith.constant 186 : index
    %882 = memref.load %arg2[%c186] : memref<288xf32, #tpu.memory_space<smem>>
    %883 = vector.broadcast %882 : f32 to vector<1x256xf32>
    %884 = arith.mulf %883, %861 : vector<1x256xf32>
    %885 = arith.addf %849, %884 : vector<1x256xf32>
    %c222 = arith.constant 222 : index
    %886 = memref.load %arg2[%c222] : memref<288xf32, #tpu.memory_space<smem>>
    %887 = vector.broadcast %886 : f32 to vector<1x256xf32>
    %888 = arith.mulf %887, %861 : vector<1x256xf32>
    %889 = arith.addf %853, %888 : vector<1x256xf32>
    %c258 = arith.constant 258 : index
    %890 = memref.load %arg2[%c258] : memref<288xf32, #tpu.memory_space<smem>>
    %891 = vector.broadcast %890 : f32 to vector<1x256xf32>
    %892 = arith.mulf %891, %861 : vector<1x256xf32>
    %893 = arith.addf %857, %892 : vector<1x256xf32>
    %c241_i32_57 = arith.constant 241 : i32
    %894 = tpu.dynamic_rotate %15 by %c241_i32_57 dim 1 : vector<1x256xf32>, i32 -> vector<1x256xf32>
    %cst_58 = arith.constant 0.000000e+00 : f32
    %895 = vector.broadcast %cst_58 : f32 to vector<1x256xf32>
    %896 = arith.select %858, %894, %895 : vector<1x256xi1>, vector<1x256xf32>
    %c15 = arith.constant 15 : index
    %897 = memref.load %arg2[%c15] : memref<288xf32, #tpu.memory_space<smem>>
    %898 = vector.broadcast %897 : f32 to vector<1x256xf32>
    %899 = arith.mulf %898, %896 : vector<1x256xf32>
    %900 = arith.addf %865, %899 : vector<1x256xf32>
    %c51 = arith.constant 51 : index
    %901 = memref.load %arg2[%c51] : memref<288xf32, #tpu.memory_space<smem>>
    %902 = vector.broadcast %901 : f32 to vector<1x256xf32>
    %903 = arith.mulf %902, %896 : vector<1x256xf32>
    %904 = arith.addf %869, %903 : vector<1x256xf32>
    %c87 = arith.constant 87 : index
    %905 = memref.load %arg2[%c87] : memref<288xf32, #tpu.memory_space<smem>>
    %906 = vector.broadcast %905 : f32 to vector<1x256xf32>
    %907 = arith.mulf %906, %896 : vector<1x256xf32>
    %908 = arith.addf %873, %907 : vector<1x256xf32>
    %c123 = arith.constant 123 : index
    %909 = memref.load %arg2[%c123] : memref<288xf32, #tpu.memory_space<smem>>
    %910 = vector.broadcast %909 : f32 to vector<1x256xf32>
    %911 = arith.mulf %910, %896 : vector<1x256xf32>
    %912 = arith.addf %877, %911 : vector<1x256xf32>
    %c159 = arith.constant 159 : index
    %913 = memref.load %arg2[%c159] : memref<288xf32, #tpu.memory_space<smem>>
    %914 = vector.broadcast %913 : f32 to vector<1x256xf32>
    %915 = arith.mulf %914, %896 : vector<1x256xf32>
    %916 = arith.addf %881, %915 : vector<1x256xf32>
    %c195 = arith.constant 195 : index
    %917 = memref.load %arg2[%c195] : memref<288xf32, #tpu.memory_space<smem>>
    %918 = vector.broadcast %917 : f32 to vector<1x256xf32>
    %919 = arith.mulf %918, %896 : vector<1x256xf32>
    %920 = arith.addf %885, %919 : vector<1x256xf32>
    %c231 = arith.constant 231 : index
    %921 = memref.load %arg2[%c231] : memref<288xf32, #tpu.memory_space<smem>>
    %922 = vector.broadcast %921 : f32 to vector<1x256xf32>
    %923 = arith.mulf %922, %896 : vector<1x256xf32>
    %924 = arith.addf %889, %923 : vector<1x256xf32>
    %c267 = arith.constant 267 : index
    %925 = memref.load %arg2[%c267] : memref<288xf32, #tpu.memory_space<smem>>
    %926 = vector.broadcast %925 : f32 to vector<1x256xf32>
    %927 = arith.mulf %926, %896 : vector<1x256xf32>
    %928 = arith.addf %893, %927 : vector<1x256xf32>
    %c241_i32_59 = arith.constant 241 : i32
    %929 = tpu.dynamic_rotate %17 by %c241_i32_59 dim 1 : vector<1x256xf32>, i32 -> vector<1x256xf32>
    %cst_60 = arith.constant 0.000000e+00 : f32
    %930 = vector.broadcast %cst_60 : f32 to vector<1x256xf32>
    %931 = arith.select %858, %929, %930 : vector<1x256xi1>, vector<1x256xf32>
    %c24 = arith.constant 24 : index
    %932 = memref.load %arg2[%c24] : memref<288xf32, #tpu.memory_space<smem>>
    %933 = vector.broadcast %932 : f32 to vector<1x256xf32>
    %934 = arith.mulf %933, %931 : vector<1x256xf32>
    %935 = arith.addf %900, %934 : vector<1x256xf32>
    %c60 = arith.constant 60 : index
    %936 = memref.load %arg2[%c60] : memref<288xf32, #tpu.memory_space<smem>>
    %937 = vector.broadcast %936 : f32 to vector<1x256xf32>
    %938 = arith.mulf %937, %931 : vector<1x256xf32>
    %939 = arith.addf %904, %938 : vector<1x256xf32>
    %c96 = arith.constant 96 : index
    %940 = memref.load %arg2[%c96] : memref<288xf32, #tpu.memory_space<smem>>
    %941 = vector.broadcast %940 : f32 to vector<1x256xf32>
    %942 = arith.mulf %941, %931 : vector<1x256xf32>
    %943 = arith.addf %908, %942 : vector<1x256xf32>
    %c132 = arith.constant 132 : index
    %944 = memref.load %arg2[%c132] : memref<288xf32, #tpu.memory_space<smem>>
    %945 = vector.broadcast %944 : f32 to vector<1x256xf32>
    %946 = arith.mulf %945, %931 : vector<1x256xf32>
    %947 = arith.addf %912, %946 : vector<1x256xf32>
    %c168 = arith.constant 168 : index
    %948 = memref.load %arg2[%c168] : memref<288xf32, #tpu.memory_space<smem>>
    %949 = vector.broadcast %948 : f32 to vector<1x256xf32>
    %950 = arith.mulf %949, %931 : vector<1x256xf32>
    %951 = arith.addf %916, %950 : vector<1x256xf32>
    %c204 = arith.constant 204 : index
    %952 = memref.load %arg2[%c204] : memref<288xf32, #tpu.memory_space<smem>>
    %953 = vector.broadcast %952 : f32 to vector<1x256xf32>
    %954 = arith.mulf %953, %931 : vector<1x256xf32>
    %955 = arith.addf %920, %954 : vector<1x256xf32>
    %c240 = arith.constant 240 : index
    %956 = memref.load %arg2[%c240] : memref<288xf32, #tpu.memory_space<smem>>
    %957 = vector.broadcast %956 : f32 to vector<1x256xf32>
    %958 = arith.mulf %957, %931 : vector<1x256xf32>
    %959 = arith.addf %924, %958 : vector<1x256xf32>
    %c276 = arith.constant 276 : index
    %960 = memref.load %arg2[%c276] : memref<288xf32, #tpu.memory_space<smem>>
    %961 = vector.broadcast %960 : f32 to vector<1x256xf32>
    %962 = arith.mulf %961, %931 : vector<1x256xf32>
    %963 = arith.addf %928, %962 : vector<1x256xf32>
    %c241_i32_61 = arith.constant 241 : i32
    %964 = tpu.dynamic_rotate %19 by %c241_i32_61 dim 1 : vector<1x256xf32>, i32 -> vector<1x256xf32>
    %cst_62 = arith.constant 0.000000e+00 : f32
    %965 = vector.broadcast %cst_62 : f32 to vector<1x256xf32>
    %966 = arith.select %858, %964, %965 : vector<1x256xi1>, vector<1x256xf32>
    %c33 = arith.constant 33 : index
    %967 = memref.load %arg2[%c33] : memref<288xf32, #tpu.memory_space<smem>>
    %968 = vector.broadcast %967 : f32 to vector<1x256xf32>
    %969 = arith.mulf %968, %966 : vector<1x256xf32>
    %970 = arith.addf %935, %969 : vector<1x256xf32>
    %c69 = arith.constant 69 : index
    %971 = memref.load %arg2[%c69] : memref<288xf32, #tpu.memory_space<smem>>
    %972 = vector.broadcast %971 : f32 to vector<1x256xf32>
    %973 = arith.mulf %972, %966 : vector<1x256xf32>
    %974 = arith.addf %939, %973 : vector<1x256xf32>
    %c105 = arith.constant 105 : index
    %975 = memref.load %arg2[%c105] : memref<288xf32, #tpu.memory_space<smem>>
    %976 = vector.broadcast %975 : f32 to vector<1x256xf32>
    %977 = arith.mulf %976, %966 : vector<1x256xf32>
    %978 = arith.addf %943, %977 : vector<1x256xf32>
    %c141 = arith.constant 141 : index
    %979 = memref.load %arg2[%c141] : memref<288xf32, #tpu.memory_space<smem>>
    %980 = vector.broadcast %979 : f32 to vector<1x256xf32>
    %981 = arith.mulf %980, %966 : vector<1x256xf32>
    %982 = arith.addf %947, %981 : vector<1x256xf32>
    %c177 = arith.constant 177 : index
    %983 = memref.load %arg2[%c177] : memref<288xf32, #tpu.memory_space<smem>>
    %984 = vector.broadcast %983 : f32 to vector<1x256xf32>
    %985 = arith.mulf %984, %966 : vector<1x256xf32>
    %986 = arith.addf %951, %985 : vector<1x256xf32>
    %c213 = arith.constant 213 : index
    %987 = memref.load %arg2[%c213] : memref<288xf32, #tpu.memory_space<smem>>
    %988 = vector.broadcast %987 : f32 to vector<1x256xf32>
    %989 = arith.mulf %988, %966 : vector<1x256xf32>
    %990 = arith.addf %955, %989 : vector<1x256xf32>
    %c249 = arith.constant 249 : index
    %991 = memref.load %arg2[%c249] : memref<288xf32, #tpu.memory_space<smem>>
    %992 = vector.broadcast %991 : f32 to vector<1x256xf32>
    %993 = arith.mulf %992, %966 : vector<1x256xf32>
    %994 = arith.addf %959, %993 : vector<1x256xf32>
    %c285 = arith.constant 285 : index
    %995 = memref.load %arg2[%c285] : memref<288xf32, #tpu.memory_space<smem>>
    %996 = vector.broadcast %995 : f32 to vector<1x256xf32>
    %997 = arith.mulf %996, %966 : vector<1x256xf32>
    %998 = arith.addf %963, %997 : vector<1x256xf32>
    %c240_i32_63 = arith.constant 240 : i32
    %999 = tpu.dynamic_rotate %13 by %c240_i32_63 dim 1 : vector<1x256xf32>, i32 -> vector<1x256xf32>
    %cst_64 = arith.constant 0.000000e+00 : f32
    %1000 = vector.broadcast %cst_64 : f32 to vector<1x256xf32>
    %1001 = arith.select %7, %999, %1000 : vector<1x256xi1>, vector<1x256xf32>
    %c7 = arith.constant 7 : index
    %1002 = memref.load %arg2[%c7] : memref<288xf32, #tpu.memory_space<smem>>
    %1003 = vector.broadcast %1002 : f32 to vector<1x256xf32>
    %1004 = arith.mulf %1003, %1001 : vector<1x256xf32>
    %1005 = arith.addf %970, %1004 : vector<1x256xf32>
    %c43 = arith.constant 43 : index
    %1006 = memref.load %arg2[%c43] : memref<288xf32, #tpu.memory_space<smem>>
    %1007 = vector.broadcast %1006 : f32 to vector<1x256xf32>
    %1008 = arith.mulf %1007, %1001 : vector<1x256xf32>
    %1009 = arith.addf %974, %1008 : vector<1x256xf32>
    %c79 = arith.constant 79 : index
    %1010 = memref.load %arg2[%c79] : memref<288xf32, #tpu.memory_space<smem>>
    %1011 = vector.broadcast %1010 : f32 to vector<1x256xf32>
    %1012 = arith.mulf %1011, %1001 : vector<1x256xf32>
    %1013 = arith.addf %978, %1012 : vector<1x256xf32>
    %c115 = arith.constant 115 : index
    %1014 = memref.load %arg2[%c115] : memref<288xf32, #tpu.memory_space<smem>>
    %1015 = vector.broadcast %1014 : f32 to vector<1x256xf32>
    %1016 = arith.mulf %1015, %1001 : vector<1x256xf32>
    %1017 = arith.addf %982, %1016 : vector<1x256xf32>
    %c151 = arith.constant 151 : index
    %1018 = memref.load %arg2[%c151] : memref<288xf32, #tpu.memory_space<smem>>
    %1019 = vector.broadcast %1018 : f32 to vector<1x256xf32>
    %1020 = arith.mulf %1019, %1001 : vector<1x256xf32>
    %1021 = arith.addf %986, %1020 : vector<1x256xf32>
    %c187 = arith.constant 187 : index
    %1022 = memref.load %arg2[%c187] : memref<288xf32, #tpu.memory_space<smem>>
    %1023 = vector.broadcast %1022 : f32 to vector<1x256xf32>
    %1024 = arith.mulf %1023, %1001 : vector<1x256xf32>
    %1025 = arith.addf %990, %1024 : vector<1x256xf32>
    %c223 = arith.constant 223 : index
    %1026 = memref.load %arg2[%c223] : memref<288xf32, #tpu.memory_space<smem>>
    %1027 = vector.broadcast %1026 : f32 to vector<1x256xf32>
    %1028 = arith.mulf %1027, %1001 : vector<1x256xf32>
    %1029 = arith.addf %994, %1028 : vector<1x256xf32>
    %c259 = arith.constant 259 : index
    %1030 = memref.load %arg2[%c259] : memref<288xf32, #tpu.memory_space<smem>>
    %1031 = vector.broadcast %1030 : f32 to vector<1x256xf32>
    %1032 = arith.mulf %1031, %1001 : vector<1x256xf32>
    %1033 = arith.addf %998, %1032 : vector<1x256xf32>
    %c240_i32_65 = arith.constant 240 : i32
    %1034 = tpu.dynamic_rotate %15 by %c240_i32_65 dim 1 : vector<1x256xf32>, i32 -> vector<1x256xf32>
    %cst_66 = arith.constant 0.000000e+00 : f32
    %1035 = vector.broadcast %cst_66 : f32 to vector<1x256xf32>
    %1036 = arith.select %7, %1034, %1035 : vector<1x256xi1>, vector<1x256xf32>
    %c16 = arith.constant 16 : index
    %1037 = memref.load %arg2[%c16] : memref<288xf32, #tpu.memory_space<smem>>
    %1038 = vector.broadcast %1037 : f32 to vector<1x256xf32>
    %1039 = arith.mulf %1038, %1036 : vector<1x256xf32>
    %1040 = arith.addf %1005, %1039 : vector<1x256xf32>
    %c52 = arith.constant 52 : index
    %1041 = memref.load %arg2[%c52] : memref<288xf32, #tpu.memory_space<smem>>
    %1042 = vector.broadcast %1041 : f32 to vector<1x256xf32>
    %1043 = arith.mulf %1042, %1036 : vector<1x256xf32>
    %1044 = arith.addf %1009, %1043 : vector<1x256xf32>
    %c88 = arith.constant 88 : index
    %1045 = memref.load %arg2[%c88] : memref<288xf32, #tpu.memory_space<smem>>
    %1046 = vector.broadcast %1045 : f32 to vector<1x256xf32>
    %1047 = arith.mulf %1046, %1036 : vector<1x256xf32>
    %1048 = arith.addf %1013, %1047 : vector<1x256xf32>
    %c124 = arith.constant 124 : index
    %1049 = memref.load %arg2[%c124] : memref<288xf32, #tpu.memory_space<smem>>
    %1050 = vector.broadcast %1049 : f32 to vector<1x256xf32>
    %1051 = arith.mulf %1050, %1036 : vector<1x256xf32>
    %1052 = arith.addf %1017, %1051 : vector<1x256xf32>
    %c160 = arith.constant 160 : index
    %1053 = memref.load %arg2[%c160] : memref<288xf32, #tpu.memory_space<smem>>
    %1054 = vector.broadcast %1053 : f32 to vector<1x256xf32>
    %1055 = arith.mulf %1054, %1036 : vector<1x256xf32>
    %1056 = arith.addf %1021, %1055 : vector<1x256xf32>
    %c196 = arith.constant 196 : index
    %1057 = memref.load %arg2[%c196] : memref<288xf32, #tpu.memory_space<smem>>
    %1058 = vector.broadcast %1057 : f32 to vector<1x256xf32>
    %1059 = arith.mulf %1058, %1036 : vector<1x256xf32>
    %1060 = arith.addf %1025, %1059 : vector<1x256xf32>
    %c232 = arith.constant 232 : index
    %1061 = memref.load %arg2[%c232] : memref<288xf32, #tpu.memory_space<smem>>
    %1062 = vector.broadcast %1061 : f32 to vector<1x256xf32>
    %1063 = arith.mulf %1062, %1036 : vector<1x256xf32>
    %1064 = arith.addf %1029, %1063 : vector<1x256xf32>
    %c268 = arith.constant 268 : index
    %1065 = memref.load %arg2[%c268] : memref<288xf32, #tpu.memory_space<smem>>
    %1066 = vector.broadcast %1065 : f32 to vector<1x256xf32>
    %1067 = arith.mulf %1066, %1036 : vector<1x256xf32>
    %1068 = arith.addf %1033, %1067 : vector<1x256xf32>
    %c240_i32_67 = arith.constant 240 : i32
    %1069 = tpu.dynamic_rotate %17 by %c240_i32_67 dim 1 : vector<1x256xf32>, i32 -> vector<1x256xf32>
    %cst_68 = arith.constant 0.000000e+00 : f32
    %1070 = vector.broadcast %cst_68 : f32 to vector<1x256xf32>
    %1071 = arith.select %7, %1069, %1070 : vector<1x256xi1>, vector<1x256xf32>
    %c25 = arith.constant 25 : index
    %1072 = memref.load %arg2[%c25] : memref<288xf32, #tpu.memory_space<smem>>
    %1073 = vector.broadcast %1072 : f32 to vector<1x256xf32>
    %1074 = arith.mulf %1073, %1071 : vector<1x256xf32>
    %1075 = arith.addf %1040, %1074 : vector<1x256xf32>
    %c61 = arith.constant 61 : index
    %1076 = memref.load %arg2[%c61] : memref<288xf32, #tpu.memory_space<smem>>
    %1077 = vector.broadcast %1076 : f32 to vector<1x256xf32>
    %1078 = arith.mulf %1077, %1071 : vector<1x256xf32>
    %1079 = arith.addf %1044, %1078 : vector<1x256xf32>
    %c97 = arith.constant 97 : index
    %1080 = memref.load %arg2[%c97] : memref<288xf32, #tpu.memory_space<smem>>
    %1081 = vector.broadcast %1080 : f32 to vector<1x256xf32>
    %1082 = arith.mulf %1081, %1071 : vector<1x256xf32>
    %1083 = arith.addf %1048, %1082 : vector<1x256xf32>
    %c133 = arith.constant 133 : index
    %1084 = memref.load %arg2[%c133] : memref<288xf32, #tpu.memory_space<smem>>
    %1085 = vector.broadcast %1084 : f32 to vector<1x256xf32>
    %1086 = arith.mulf %1085, %1071 : vector<1x256xf32>
    %1087 = arith.addf %1052, %1086 : vector<1x256xf32>
    %c169 = arith.constant 169 : index
    %1088 = memref.load %arg2[%c169] : memref<288xf32, #tpu.memory_space<smem>>
    %1089 = vector.broadcast %1088 : f32 to vector<1x256xf32>
    %1090 = arith.mulf %1089, %1071 : vector<1x256xf32>
    %1091 = arith.addf %1056, %1090 : vector<1x256xf32>
    %c205 = arith.constant 205 : index
    %1092 = memref.load %arg2[%c205] : memref<288xf32, #tpu.memory_space<smem>>
    %1093 = vector.broadcast %1092 : f32 to vector<1x256xf32>
    %1094 = arith.mulf %1093, %1071 : vector<1x256xf32>
    %1095 = arith.addf %1060, %1094 : vector<1x256xf32>
    %c241 = arith.constant 241 : index
    %1096 = memref.load %arg2[%c241] : memref<288xf32, #tpu.memory_space<smem>>
    %1097 = vector.broadcast %1096 : f32 to vector<1x256xf32>
    %1098 = arith.mulf %1097, %1071 : vector<1x256xf32>
    %1099 = arith.addf %1064, %1098 : vector<1x256xf32>
    %c277 = arith.constant 277 : index
    %1100 = memref.load %arg2[%c277] : memref<288xf32, #tpu.memory_space<smem>>
    %1101 = vector.broadcast %1100 : f32 to vector<1x256xf32>
    %1102 = arith.mulf %1101, %1071 : vector<1x256xf32>
    %1103 = arith.addf %1068, %1102 : vector<1x256xf32>
    %c240_i32_69 = arith.constant 240 : i32
    %1104 = tpu.dynamic_rotate %19 by %c240_i32_69 dim 1 : vector<1x256xf32>, i32 -> vector<1x256xf32>
    %cst_70 = arith.constant 0.000000e+00 : f32
    %1105 = vector.broadcast %cst_70 : f32 to vector<1x256xf32>
    %1106 = arith.select %7, %1104, %1105 : vector<1x256xi1>, vector<1x256xf32>
    %c34 = arith.constant 34 : index
    %1107 = memref.load %arg2[%c34] : memref<288xf32, #tpu.memory_space<smem>>
    %1108 = vector.broadcast %1107 : f32 to vector<1x256xf32>
    %1109 = arith.mulf %1108, %1106 : vector<1x256xf32>
    %1110 = arith.addf %1075, %1109 : vector<1x256xf32>
    %c70 = arith.constant 70 : index
    %1111 = memref.load %arg2[%c70] : memref<288xf32, #tpu.memory_space<smem>>
    %1112 = vector.broadcast %1111 : f32 to vector<1x256xf32>
    %1113 = arith.mulf %1112, %1106 : vector<1x256xf32>
    %1114 = arith.addf %1079, %1113 : vector<1x256xf32>
    %c106 = arith.constant 106 : index
    %1115 = memref.load %arg2[%c106] : memref<288xf32, #tpu.memory_space<smem>>
    %1116 = vector.broadcast %1115 : f32 to vector<1x256xf32>
    %1117 = arith.mulf %1116, %1106 : vector<1x256xf32>
    %1118 = arith.addf %1083, %1117 : vector<1x256xf32>
    %c142 = arith.constant 142 : index
    %1119 = memref.load %arg2[%c142] : memref<288xf32, #tpu.memory_space<smem>>
    %1120 = vector.broadcast %1119 : f32 to vector<1x256xf32>
    %1121 = arith.mulf %1120, %1106 : vector<1x256xf32>
    %1122 = arith.addf %1087, %1121 : vector<1x256xf32>
    %c178 = arith.constant 178 : index
    %1123 = memref.load %arg2[%c178] : memref<288xf32, #tpu.memory_space<smem>>
    %1124 = vector.broadcast %1123 : f32 to vector<1x256xf32>
    %1125 = arith.mulf %1124, %1106 : vector<1x256xf32>
    %1126 = arith.addf %1091, %1125 : vector<1x256xf32>
    %c214 = arith.constant 214 : index
    %1127 = memref.load %arg2[%c214] : memref<288xf32, #tpu.memory_space<smem>>
    %1128 = vector.broadcast %1127 : f32 to vector<1x256xf32>
    %1129 = arith.mulf %1128, %1106 : vector<1x256xf32>
    %1130 = arith.addf %1095, %1129 : vector<1x256xf32>
    %c250 = arith.constant 250 : index
    %1131 = memref.load %arg2[%c250] : memref<288xf32, #tpu.memory_space<smem>>
    %1132 = vector.broadcast %1131 : f32 to vector<1x256xf32>
    %1133 = arith.mulf %1132, %1106 : vector<1x256xf32>
    %1134 = arith.addf %1099, %1133 : vector<1x256xf32>
    %c286 = arith.constant 286 : index
    %1135 = memref.load %arg2[%c286] : memref<288xf32, #tpu.memory_space<smem>>
    %1136 = vector.broadcast %1135 : f32 to vector<1x256xf32>
    %1137 = arith.mulf %1136, %1106 : vector<1x256xf32>
    %1138 = arith.addf %1103, %1137 : vector<1x256xf32>
    %1139 = arith.andi %7, %11 : vector<1x256xi1>
    %c239_i32 = arith.constant 239 : i32
    %1140 = tpu.dynamic_rotate %13 by %c239_i32 dim 1 : vector<1x256xf32>, i32 -> vector<1x256xf32>
    %cst_71 = arith.constant 0.000000e+00 : f32
    %1141 = vector.broadcast %cst_71 : f32 to vector<1x256xf32>
    %1142 = arith.select %1139, %1140, %1141 : vector<1x256xi1>, vector<1x256xf32>
    %c8 = arith.constant 8 : index
    %1143 = memref.load %arg2[%c8] : memref<288xf32, #tpu.memory_space<smem>>
    %1144 = vector.broadcast %1143 : f32 to vector<1x256xf32>
    %1145 = arith.mulf %1144, %1142 : vector<1x256xf32>
    %1146 = arith.addf %1110, %1145 : vector<1x256xf32>
    %c44 = arith.constant 44 : index
    %1147 = memref.load %arg2[%c44] : memref<288xf32, #tpu.memory_space<smem>>
    %1148 = vector.broadcast %1147 : f32 to vector<1x256xf32>
    %1149 = arith.mulf %1148, %1142 : vector<1x256xf32>
    %1150 = arith.addf %1114, %1149 : vector<1x256xf32>
    %c80 = arith.constant 80 : index
    %1151 = memref.load %arg2[%c80] : memref<288xf32, #tpu.memory_space<smem>>
    %1152 = vector.broadcast %1151 : f32 to vector<1x256xf32>
    %1153 = arith.mulf %1152, %1142 : vector<1x256xf32>
    %1154 = arith.addf %1118, %1153 : vector<1x256xf32>
    %c116 = arith.constant 116 : index
    %1155 = memref.load %arg2[%c116] : memref<288xf32, #tpu.memory_space<smem>>
    %1156 = vector.broadcast %1155 : f32 to vector<1x256xf32>
    %1157 = arith.mulf %1156, %1142 : vector<1x256xf32>
    %1158 = arith.addf %1122, %1157 : vector<1x256xf32>
    %c152 = arith.constant 152 : index
    %1159 = memref.load %arg2[%c152] : memref<288xf32, #tpu.memory_space<smem>>
    %1160 = vector.broadcast %1159 : f32 to vector<1x256xf32>
    %1161 = arith.mulf %1160, %1142 : vector<1x256xf32>
    %1162 = arith.addf %1126, %1161 : vector<1x256xf32>
    %c188 = arith.constant 188 : index
    %1163 = memref.load %arg2[%c188] : memref<288xf32, #tpu.memory_space<smem>>
    %1164 = vector.broadcast %1163 : f32 to vector<1x256xf32>
    %1165 = arith.mulf %1164, %1142 : vector<1x256xf32>
    %1166 = arith.addf %1130, %1165 : vector<1x256xf32>
    %c224 = arith.constant 224 : index
    %1167 = memref.load %arg2[%c224] : memref<288xf32, #tpu.memory_space<smem>>
    %1168 = vector.broadcast %1167 : f32 to vector<1x256xf32>
    %1169 = arith.mulf %1168, %1142 : vector<1x256xf32>
    %1170 = arith.addf %1134, %1169 : vector<1x256xf32>
    %c260 = arith.constant 260 : index
    %1171 = memref.load %arg2[%c260] : memref<288xf32, #tpu.memory_space<smem>>
    %1172 = vector.broadcast %1171 : f32 to vector<1x256xf32>
    %1173 = arith.mulf %1172, %1142 : vector<1x256xf32>
    %1174 = arith.addf %1138, %1173 : vector<1x256xf32>
    %c239_i32_72 = arith.constant 239 : i32
    %1175 = tpu.dynamic_rotate %15 by %c239_i32_72 dim 1 : vector<1x256xf32>, i32 -> vector<1x256xf32>
    %cst_73 = arith.constant 0.000000e+00 : f32
    %1176 = vector.broadcast %cst_73 : f32 to vector<1x256xf32>
    %1177 = arith.select %1139, %1175, %1176 : vector<1x256xi1>, vector<1x256xf32>
    %c17 = arith.constant 17 : index
    %1178 = memref.load %arg2[%c17] : memref<288xf32, #tpu.memory_space<smem>>
    %1179 = vector.broadcast %1178 : f32 to vector<1x256xf32>
    %1180 = arith.mulf %1179, %1177 : vector<1x256xf32>
    %1181 = arith.addf %1146, %1180 : vector<1x256xf32>
    %c53 = arith.constant 53 : index
    %1182 = memref.load %arg2[%c53] : memref<288xf32, #tpu.memory_space<smem>>
    %1183 = vector.broadcast %1182 : f32 to vector<1x256xf32>
    %1184 = arith.mulf %1183, %1177 : vector<1x256xf32>
    %1185 = arith.addf %1150, %1184 : vector<1x256xf32>
    %c89 = arith.constant 89 : index
    %1186 = memref.load %arg2[%c89] : memref<288xf32, #tpu.memory_space<smem>>
    %1187 = vector.broadcast %1186 : f32 to vector<1x256xf32>
    %1188 = arith.mulf %1187, %1177 : vector<1x256xf32>
    %1189 = arith.addf %1154, %1188 : vector<1x256xf32>
    %c125 = arith.constant 125 : index
    %1190 = memref.load %arg2[%c125] : memref<288xf32, #tpu.memory_space<smem>>
    %1191 = vector.broadcast %1190 : f32 to vector<1x256xf32>
    %1192 = arith.mulf %1191, %1177 : vector<1x256xf32>
    %1193 = arith.addf %1158, %1192 : vector<1x256xf32>
    %c161 = arith.constant 161 : index
    %1194 = memref.load %arg2[%c161] : memref<288xf32, #tpu.memory_space<smem>>
    %1195 = vector.broadcast %1194 : f32 to vector<1x256xf32>
    %1196 = arith.mulf %1195, %1177 : vector<1x256xf32>
    %1197 = arith.addf %1162, %1196 : vector<1x256xf32>
    %c197 = arith.constant 197 : index
    %1198 = memref.load %arg2[%c197] : memref<288xf32, #tpu.memory_space<smem>>
    %1199 = vector.broadcast %1198 : f32 to vector<1x256xf32>
    %1200 = arith.mulf %1199, %1177 : vector<1x256xf32>
    %1201 = arith.addf %1166, %1200 : vector<1x256xf32>
    %c233 = arith.constant 233 : index
    %1202 = memref.load %arg2[%c233] : memref<288xf32, #tpu.memory_space<smem>>
    %1203 = vector.broadcast %1202 : f32 to vector<1x256xf32>
    %1204 = arith.mulf %1203, %1177 : vector<1x256xf32>
    %1205 = arith.addf %1170, %1204 : vector<1x256xf32>
    %c269 = arith.constant 269 : index
    %1206 = memref.load %arg2[%c269] : memref<288xf32, #tpu.memory_space<smem>>
    %1207 = vector.broadcast %1206 : f32 to vector<1x256xf32>
    %1208 = arith.mulf %1207, %1177 : vector<1x256xf32>
    %1209 = arith.addf %1174, %1208 : vector<1x256xf32>
    %c239_i32_74 = arith.constant 239 : i32
    %1210 = tpu.dynamic_rotate %17 by %c239_i32_74 dim 1 : vector<1x256xf32>, i32 -> vector<1x256xf32>
    %cst_75 = arith.constant 0.000000e+00 : f32
    %1211 = vector.broadcast %cst_75 : f32 to vector<1x256xf32>
    %1212 = arith.select %1139, %1210, %1211 : vector<1x256xi1>, vector<1x256xf32>
    %c26 = arith.constant 26 : index
    %1213 = memref.load %arg2[%c26] : memref<288xf32, #tpu.memory_space<smem>>
    %1214 = vector.broadcast %1213 : f32 to vector<1x256xf32>
    %1215 = arith.mulf %1214, %1212 : vector<1x256xf32>
    %1216 = arith.addf %1181, %1215 : vector<1x256xf32>
    %c62 = arith.constant 62 : index
    %1217 = memref.load %arg2[%c62] : memref<288xf32, #tpu.memory_space<smem>>
    %1218 = vector.broadcast %1217 : f32 to vector<1x256xf32>
    %1219 = arith.mulf %1218, %1212 : vector<1x256xf32>
    %1220 = arith.addf %1185, %1219 : vector<1x256xf32>
    %c98 = arith.constant 98 : index
    %1221 = memref.load %arg2[%c98] : memref<288xf32, #tpu.memory_space<smem>>
    %1222 = vector.broadcast %1221 : f32 to vector<1x256xf32>
    %1223 = arith.mulf %1222, %1212 : vector<1x256xf32>
    %1224 = arith.addf %1189, %1223 : vector<1x256xf32>
    %c134 = arith.constant 134 : index
    %1225 = memref.load %arg2[%c134] : memref<288xf32, #tpu.memory_space<smem>>
    %1226 = vector.broadcast %1225 : f32 to vector<1x256xf32>
    %1227 = arith.mulf %1226, %1212 : vector<1x256xf32>
    %1228 = arith.addf %1193, %1227 : vector<1x256xf32>
    %c170 = arith.constant 170 : index
    %1229 = memref.load %arg2[%c170] : memref<288xf32, #tpu.memory_space<smem>>
    %1230 = vector.broadcast %1229 : f32 to vector<1x256xf32>
    %1231 = arith.mulf %1230, %1212 : vector<1x256xf32>
    %1232 = arith.addf %1197, %1231 : vector<1x256xf32>
    %c206 = arith.constant 206 : index
    %1233 = memref.load %arg2[%c206] : memref<288xf32, #tpu.memory_space<smem>>
    %1234 = vector.broadcast %1233 : f32 to vector<1x256xf32>
    %1235 = arith.mulf %1234, %1212 : vector<1x256xf32>
    %1236 = arith.addf %1201, %1235 : vector<1x256xf32>
    %c242 = arith.constant 242 : index
    %1237 = memref.load %arg2[%c242] : memref<288xf32, #tpu.memory_space<smem>>
    %1238 = vector.broadcast %1237 : f32 to vector<1x256xf32>
    %1239 = arith.mulf %1238, %1212 : vector<1x256xf32>
    %1240 = arith.addf %1205, %1239 : vector<1x256xf32>
    %c278 = arith.constant 278 : index
    %1241 = memref.load %arg2[%c278] : memref<288xf32, #tpu.memory_space<smem>>
    %1242 = vector.broadcast %1241 : f32 to vector<1x256xf32>
    %1243 = arith.mulf %1242, %1212 : vector<1x256xf32>
    %1244 = arith.addf %1209, %1243 : vector<1x256xf32>
    %c239_i32_76 = arith.constant 239 : i32
    %1245 = tpu.dynamic_rotate %19 by %c239_i32_76 dim 1 : vector<1x256xf32>, i32 -> vector<1x256xf32>
    %cst_77 = arith.constant 0.000000e+00 : f32
    %1246 = vector.broadcast %cst_77 : f32 to vector<1x256xf32>
    %1247 = arith.select %1139, %1245, %1246 : vector<1x256xi1>, vector<1x256xf32>
    %c35 = arith.constant 35 : index
    %1248 = memref.load %arg2[%c35] : memref<288xf32, #tpu.memory_space<smem>>
    %1249 = vector.broadcast %1248 : f32 to vector<1x256xf32>
    %1250 = arith.mulf %1249, %1247 : vector<1x256xf32>
    %1251 = arith.addf %1216, %1250 : vector<1x256xf32>
    %c71 = arith.constant 71 : index
    %1252 = memref.load %arg2[%c71] : memref<288xf32, #tpu.memory_space<smem>>
    %1253 = vector.broadcast %1252 : f32 to vector<1x256xf32>
    %1254 = arith.mulf %1253, %1247 : vector<1x256xf32>
    %1255 = arith.addf %1220, %1254 : vector<1x256xf32>
    %c107 = arith.constant 107 : index
    %1256 = memref.load %arg2[%c107] : memref<288xf32, #tpu.memory_space<smem>>
    %1257 = vector.broadcast %1256 : f32 to vector<1x256xf32>
    %1258 = arith.mulf %1257, %1247 : vector<1x256xf32>
    %1259 = arith.addf %1224, %1258 : vector<1x256xf32>
    %c143 = arith.constant 143 : index
    %1260 = memref.load %arg2[%c143] : memref<288xf32, #tpu.memory_space<smem>>
    %1261 = vector.broadcast %1260 : f32 to vector<1x256xf32>
    %1262 = arith.mulf %1261, %1247 : vector<1x256xf32>
    %1263 = arith.addf %1228, %1262 : vector<1x256xf32>
    %c179 = arith.constant 179 : index
    %1264 = memref.load %arg2[%c179] : memref<288xf32, #tpu.memory_space<smem>>
    %1265 = vector.broadcast %1264 : f32 to vector<1x256xf32>
    %1266 = arith.mulf %1265, %1247 : vector<1x256xf32>
    %1267 = arith.addf %1232, %1266 : vector<1x256xf32>
    %c215 = arith.constant 215 : index
    %1268 = memref.load %arg2[%c215] : memref<288xf32, #tpu.memory_space<smem>>
    %1269 = vector.broadcast %1268 : f32 to vector<1x256xf32>
    %1270 = arith.mulf %1269, %1247 : vector<1x256xf32>
    %1271 = arith.addf %1236, %1270 : vector<1x256xf32>
    %c251 = arith.constant 251 : index
    %1272 = memref.load %arg2[%c251] : memref<288xf32, #tpu.memory_space<smem>>
    %1273 = vector.broadcast %1272 : f32 to vector<1x256xf32>
    %1274 = arith.mulf %1273, %1247 : vector<1x256xf32>
    %1275 = arith.addf %1240, %1274 : vector<1x256xf32>
    %c287 = arith.constant 287 : index
    %1276 = memref.load %arg2[%c287] : memref<288xf32, #tpu.memory_space<smem>>
    %1277 = vector.broadcast %1276 : f32 to vector<1x256xf32>
    %1278 = arith.mulf %1277, %1247 : vector<1x256xf32>
    %1279 = arith.addf %1244, %1278 : vector<1x256xf32>
    %cst_78 = arith.constant 0.000000e+00 : f32
    %1280 = vector.broadcast %cst_78 : f32 to vector<1x256xf32>
    %cst_79 = arith.constant 0.000000e+00 : f32
    %1281 = vector.broadcast %cst_79 : f32 to vector<1x256xf32>
    %cst_80 = arith.constant 0.000000e+00 : f32
    %1282 = vector.broadcast %cst_80 : f32 to vector<1x256xf32>
    %cst_81 = arith.constant 0.000000e+00 : f32
    %1283 = vector.broadcast %cst_81 : f32 to vector<1x256xf32>
    %cst_82 = arith.constant 0.000000e+00 : f32
    %1284 = vector.broadcast %cst_82 : f32 to vector<1x256xf32>
    %1285 = arith.cmpf ogt, %1251, %1284 : vector<1x256xf32>
    %1286 = vector.broadcast %0 : f32 to vector<1x256xf32>
    %1287 = arith.mulf %1286, %1251 : vector<1x256xf32>
    %1288 = arith.select %1285, %1251, %1287 : vector<1x256xi1>, vector<1x256xf32>
    %c0_83 = arith.constant 0 : index
    %1289 = memref.load %arg3[%c0_83] : memref<32xf32, #tpu.memory_space<smem>>
    %1290 = vector.broadcast %1289 : f32 to vector<1x256xf32>
    %1291 = arith.mulf %1290, %1288 : vector<1x256xf32>
    %1292 = arith.addf %1280, %1291 : vector<1x256xf32>
    %c8_84 = arith.constant 8 : index
    %1293 = memref.load %arg3[%c8_84] : memref<32xf32, #tpu.memory_space<smem>>
    %1294 = vector.broadcast %1293 : f32 to vector<1x256xf32>
    %1295 = arith.mulf %1294, %1288 : vector<1x256xf32>
    %1296 = arith.addf %1281, %1295 : vector<1x256xf32>
    %c16_85 = arith.constant 16 : index
    %1297 = memref.load %arg3[%c16_85] : memref<32xf32, #tpu.memory_space<smem>>
    %1298 = vector.broadcast %1297 : f32 to vector<1x256xf32>
    %1299 = arith.mulf %1298, %1288 : vector<1x256xf32>
    %1300 = arith.addf %1282, %1299 : vector<1x256xf32>
    %c24_86 = arith.constant 24 : index
    %1301 = memref.load %arg3[%c24_86] : memref<32xf32, #tpu.memory_space<smem>>
    %1302 = vector.broadcast %1301 : f32 to vector<1x256xf32>
    %1303 = arith.mulf %1302, %1288 : vector<1x256xf32>
    %1304 = arith.addf %1283, %1303 : vector<1x256xf32>
    %cst_87 = arith.constant 0.000000e+00 : f32
    %1305 = vector.broadcast %cst_87 : f32 to vector<1x256xf32>
    %1306 = arith.cmpf ogt, %1255, %1305 : vector<1x256xf32>
    %1307 = vector.broadcast %0 : f32 to vector<1x256xf32>
    %1308 = arith.mulf %1307, %1255 : vector<1x256xf32>
    %1309 = arith.select %1306, %1255, %1308 : vector<1x256xi1>, vector<1x256xf32>
    %c1_88 = arith.constant 1 : index
    %1310 = memref.load %arg3[%c1_88] : memref<32xf32, #tpu.memory_space<smem>>
    %1311 = vector.broadcast %1310 : f32 to vector<1x256xf32>
    %1312 = arith.mulf %1311, %1309 : vector<1x256xf32>
    %1313 = arith.addf %1292, %1312 : vector<1x256xf32>
    %c9_89 = arith.constant 9 : index
    %1314 = memref.load %arg3[%c9_89] : memref<32xf32, #tpu.memory_space<smem>>
    %1315 = vector.broadcast %1314 : f32 to vector<1x256xf32>
    %1316 = arith.mulf %1315, %1309 : vector<1x256xf32>
    %1317 = arith.addf %1296, %1316 : vector<1x256xf32>
    %c17_90 = arith.constant 17 : index
    %1318 = memref.load %arg3[%c17_90] : memref<32xf32, #tpu.memory_space<smem>>
    %1319 = vector.broadcast %1318 : f32 to vector<1x256xf32>
    %1320 = arith.mulf %1319, %1309 : vector<1x256xf32>
    %1321 = arith.addf %1300, %1320 : vector<1x256xf32>
    %c25_91 = arith.constant 25 : index
    %1322 = memref.load %arg3[%c25_91] : memref<32xf32, #tpu.memory_space<smem>>
    %1323 = vector.broadcast %1322 : f32 to vector<1x256xf32>
    %1324 = arith.mulf %1323, %1309 : vector<1x256xf32>
    %1325 = arith.addf %1304, %1324 : vector<1x256xf32>
    %cst_92 = arith.constant 0.000000e+00 : f32
    %1326 = vector.broadcast %cst_92 : f32 to vector<1x256xf32>
    %1327 = arith.cmpf ogt, %1259, %1326 : vector<1x256xf32>
    %1328 = vector.broadcast %0 : f32 to vector<1x256xf32>
    %1329 = arith.mulf %1328, %1259 : vector<1x256xf32>
    %1330 = arith.select %1327, %1259, %1329 : vector<1x256xi1>, vector<1x256xf32>
    %c2_93 = arith.constant 2 : index
    %1331 = memref.load %arg3[%c2_93] : memref<32xf32, #tpu.memory_space<smem>>
    %1332 = vector.broadcast %1331 : f32 to vector<1x256xf32>
    %1333 = arith.mulf %1332, %1330 : vector<1x256xf32>
    %1334 = arith.addf %1313, %1333 : vector<1x256xf32>
    %c10_94 = arith.constant 10 : index
    %1335 = memref.load %arg3[%c10_94] : memref<32xf32, #tpu.memory_space<smem>>
    %1336 = vector.broadcast %1335 : f32 to vector<1x256xf32>
    %1337 = arith.mulf %1336, %1330 : vector<1x256xf32>
    %1338 = arith.addf %1317, %1337 : vector<1x256xf32>
    %c18_95 = arith.constant 18 : index
    %1339 = memref.load %arg3[%c18_95] : memref<32xf32, #tpu.memory_space<smem>>
    %1340 = vector.broadcast %1339 : f32 to vector<1x256xf32>
    %1341 = arith.mulf %1340, %1330 : vector<1x256xf32>
    %1342 = arith.addf %1321, %1341 : vector<1x256xf32>
    %c26_96 = arith.constant 26 : index
    %1343 = memref.load %arg3[%c26_96] : memref<32xf32, #tpu.memory_space<smem>>
    %1344 = vector.broadcast %1343 : f32 to vector<1x256xf32>
    %1345 = arith.mulf %1344, %1330 : vector<1x256xf32>
    %1346 = arith.addf %1325, %1345 : vector<1x256xf32>
    %cst_97 = arith.constant 0.000000e+00 : f32
    %1347 = vector.broadcast %cst_97 : f32 to vector<1x256xf32>
    %1348 = arith.cmpf ogt, %1263, %1347 : vector<1x256xf32>
    %1349 = vector.broadcast %0 : f32 to vector<1x256xf32>
    %1350 = arith.mulf %1349, %1263 : vector<1x256xf32>
    %1351 = arith.select %1348, %1263, %1350 : vector<1x256xi1>, vector<1x256xf32>
    %c3_98 = arith.constant 3 : index
    %1352 = memref.load %arg3[%c3_98] : memref<32xf32, #tpu.memory_space<smem>>
    %1353 = vector.broadcast %1352 : f32 to vector<1x256xf32>
    %1354 = arith.mulf %1353, %1351 : vector<1x256xf32>
    %1355 = arith.addf %1334, %1354 : vector<1x256xf32>
    %c11_99 = arith.constant 11 : index
    %1356 = memref.load %arg3[%c11_99] : memref<32xf32, #tpu.memory_space<smem>>
    %1357 = vector.broadcast %1356 : f32 to vector<1x256xf32>
    %1358 = arith.mulf %1357, %1351 : vector<1x256xf32>
    %1359 = arith.addf %1338, %1358 : vector<1x256xf32>
    %c19_100 = arith.constant 19 : index
    %1360 = memref.load %arg3[%c19_100] : memref<32xf32, #tpu.memory_space<smem>>
    %1361 = vector.broadcast %1360 : f32 to vector<1x256xf32>
    %1362 = arith.mulf %1361, %1351 : vector<1x256xf32>
    %1363 = arith.addf %1342, %1362 : vector<1x256xf32>
    %c27_101 = arith.constant 27 : index
    %1364 = memref.load %arg3[%c27_101] : memref<32xf32, #tpu.memory_space<smem>>
    %1365 = vector.broadcast %1364 : f32 to vector<1x256xf32>
    %1366 = arith.mulf %1365, %1351 : vector<1x256xf32>
    %1367 = arith.addf %1346, %1366 : vector<1x256xf32>
    %cst_102 = arith.constant 0.000000e+00 : f32
    %1368 = vector.broadcast %cst_102 : f32 to vector<1x256xf32>
    %1369 = arith.cmpf ogt, %1267, %1368 : vector<1x256xf32>
    %1370 = vector.broadcast %0 : f32 to vector<1x256xf32>
    %1371 = arith.mulf %1370, %1267 : vector<1x256xf32>
    %1372 = arith.select %1369, %1267, %1371 : vector<1x256xi1>, vector<1x256xf32>
    %c4_103 = arith.constant 4 : index
    %1373 = memref.load %arg3[%c4_103] : memref<32xf32, #tpu.memory_space<smem>>
    %1374 = vector.broadcast %1373 : f32 to vector<1x256xf32>
    %1375 = arith.mulf %1374, %1372 : vector<1x256xf32>
    %1376 = arith.addf %1355, %1375 : vector<1x256xf32>
    %c12_104 = arith.constant 12 : index
    %1377 = memref.load %arg3[%c12_104] : memref<32xf32, #tpu.memory_space<smem>>
    %1378 = vector.broadcast %1377 : f32 to vector<1x256xf32>
    %1379 = arith.mulf %1378, %1372 : vector<1x256xf32>
    %1380 = arith.addf %1359, %1379 : vector<1x256xf32>
    %c20_105 = arith.constant 20 : index
    %1381 = memref.load %arg3[%c20_105] : memref<32xf32, #tpu.memory_space<smem>>
    %1382 = vector.broadcast %1381 : f32 to vector<1x256xf32>
    %1383 = arith.mulf %1382, %1372 : vector<1x256xf32>
    %1384 = arith.addf %1363, %1383 : vector<1x256xf32>
    %c28_106 = arith.constant 28 : index
    %1385 = memref.load %arg3[%c28_106] : memref<32xf32, #tpu.memory_space<smem>>
    %1386 = vector.broadcast %1385 : f32 to vector<1x256xf32>
    %1387 = arith.mulf %1386, %1372 : vector<1x256xf32>
    %1388 = arith.addf %1367, %1387 : vector<1x256xf32>
    %cst_107 = arith.constant 0.000000e+00 : f32
    %1389 = vector.broadcast %cst_107 : f32 to vector<1x256xf32>
    %1390 = arith.cmpf ogt, %1271, %1389 : vector<1x256xf32>
    %1391 = vector.broadcast %0 : f32 to vector<1x256xf32>
    %1392 = arith.mulf %1391, %1271 : vector<1x256xf32>
    %1393 = arith.select %1390, %1271, %1392 : vector<1x256xi1>, vector<1x256xf32>
    %c5_108 = arith.constant 5 : index
    %1394 = memref.load %arg3[%c5_108] : memref<32xf32, #tpu.memory_space<smem>>
    %1395 = vector.broadcast %1394 : f32 to vector<1x256xf32>
    %1396 = arith.mulf %1395, %1393 : vector<1x256xf32>
    %1397 = arith.addf %1376, %1396 : vector<1x256xf32>
    %c13_109 = arith.constant 13 : index
    %1398 = memref.load %arg3[%c13_109] : memref<32xf32, #tpu.memory_space<smem>>
    %1399 = vector.broadcast %1398 : f32 to vector<1x256xf32>
    %1400 = arith.mulf %1399, %1393 : vector<1x256xf32>
    %1401 = arith.addf %1380, %1400 : vector<1x256xf32>
    %c21_110 = arith.constant 21 : index
    %1402 = memref.load %arg3[%c21_110] : memref<32xf32, #tpu.memory_space<smem>>
    %1403 = vector.broadcast %1402 : f32 to vector<1x256xf32>
    %1404 = arith.mulf %1403, %1393 : vector<1x256xf32>
    %1405 = arith.addf %1384, %1404 : vector<1x256xf32>
    %c29_111 = arith.constant 29 : index
    %1406 = memref.load %arg3[%c29_111] : memref<32xf32, #tpu.memory_space<smem>>
    %1407 = vector.broadcast %1406 : f32 to vector<1x256xf32>
    %1408 = arith.mulf %1407, %1393 : vector<1x256xf32>
    %1409 = arith.addf %1388, %1408 : vector<1x256xf32>
    %cst_112 = arith.constant 0.000000e+00 : f32
    %1410 = vector.broadcast %cst_112 : f32 to vector<1x256xf32>
    %1411 = arith.cmpf ogt, %1275, %1410 : vector<1x256xf32>
    %1412 = vector.broadcast %0 : f32 to vector<1x256xf32>
    %1413 = arith.mulf %1412, %1275 : vector<1x256xf32>
    %1414 = arith.select %1411, %1275, %1413 : vector<1x256xi1>, vector<1x256xf32>
    %c6_113 = arith.constant 6 : index
    %1415 = memref.load %arg3[%c6_113] : memref<32xf32, #tpu.memory_space<smem>>
    %1416 = vector.broadcast %1415 : f32 to vector<1x256xf32>
    %1417 = arith.mulf %1416, %1414 : vector<1x256xf32>
    %1418 = arith.addf %1397, %1417 : vector<1x256xf32>
    %c14_114 = arith.constant 14 : index
    %1419 = memref.load %arg3[%c14_114] : memref<32xf32, #tpu.memory_space<smem>>
    %1420 = vector.broadcast %1419 : f32 to vector<1x256xf32>
    %1421 = arith.mulf %1420, %1414 : vector<1x256xf32>
    %1422 = arith.addf %1401, %1421 : vector<1x256xf32>
    %c22_115 = arith.constant 22 : index
    %1423 = memref.load %arg3[%c22_115] : memref<32xf32, #tpu.memory_space<smem>>
    %1424 = vector.broadcast %1423 : f32 to vector<1x256xf32>
    %1425 = arith.mulf %1424, %1414 : vector<1x256xf32>
    %1426 = arith.addf %1405, %1425 : vector<1x256xf32>
    %c30_116 = arith.constant 30 : index
    %1427 = memref.load %arg3[%c30_116] : memref<32xf32, #tpu.memory_space<smem>>
    %1428 = vector.broadcast %1427 : f32 to vector<1x256xf32>
    %1429 = arith.mulf %1428, %1414 : vector<1x256xf32>
    %1430 = arith.addf %1409, %1429 : vector<1x256xf32>
    %cst_117 = arith.constant 0.000000e+00 : f32
    %1431 = vector.broadcast %cst_117 : f32 to vector<1x256xf32>
    %1432 = arith.cmpf ogt, %1279, %1431 : vector<1x256xf32>
    %1433 = vector.broadcast %0 : f32 to vector<1x256xf32>
    %1434 = arith.mulf %1433, %1279 : vector<1x256xf32>
    %1435 = arith.select %1432, %1279, %1434 : vector<1x256xi1>, vector<1x256xf32>
    %c7_118 = arith.constant 7 : index
    %1436 = memref.load %arg3[%c7_118] : memref<32xf32, #tpu.memory_space<smem>>
    %1437 = vector.broadcast %1436 : f32 to vector<1x256xf32>
    %1438 = arith.mulf %1437, %1435 : vector<1x256xf32>
    %1439 = arith.addf %1418, %1438 : vector<1x256xf32>
    %c15_119 = arith.constant 15 : index
    %1440 = memref.load %arg3[%c15_119] : memref<32xf32, #tpu.memory_space<smem>>
    %1441 = vector.broadcast %1440 : f32 to vector<1x256xf32>
    %1442 = arith.mulf %1441, %1435 : vector<1x256xf32>
    %1443 = arith.addf %1422, %1442 : vector<1x256xf32>
    %c23_120 = arith.constant 23 : index
    %1444 = memref.load %arg3[%c23_120] : memref<32xf32, #tpu.memory_space<smem>>
    %1445 = vector.broadcast %1444 : f32 to vector<1x256xf32>
    %1446 = arith.mulf %1445, %1435 : vector<1x256xf32>
    %1447 = arith.addf %1426, %1446 : vector<1x256xf32>
    %c31_121 = arith.constant 31 : index
    %1448 = memref.load %arg3[%c31_121] : memref<32xf32, #tpu.memory_space<smem>>
    %1449 = vector.broadcast %1448 : f32 to vector<1x256xf32>
    %1450 = arith.mulf %1449, %1435 : vector<1x256xf32>
    %1451 = arith.addf %1430, %1450 : vector<1x256xf32>
    %c0_122 = arith.constant 0 : index
    %c0_123 = arith.constant 0 : index
    %c0_124 = arith.constant 0 : index
    %1452 = vector.load %arg5[%c0_122, %c0_123, %c0_124] : memref<1x1x1024xf32, #tpu.memory_space<vmem>>, vector<1x1x256xf32>
    %1453 = vector.shape_cast %1452 : vector<1x1x256xf32> to vector<1x256xf32>
    %1454 = vector.shape_cast %1439 : vector<1x256xf32> to vector<1x1x256xf32>
    tpu.vector_store %arg5[%c0_122, %c0_123, %c0_124], %1454 {strides = array<i32>} : memref<1x1x1024xf32, #tpu.memory_space<vmem>>, vector<1x1x256xf32>,
    %c0_125 = arith.constant 0 : index
    %c0_126 = arith.constant 0 : index
    %c256_127 = arith.constant 256 : index
    %1455 = vector.load %arg5[%c0_125, %c0_126, %c256_127] : memref<1x1x1024xf32, #tpu.memory_space<vmem>>, vector<1x1x256xf32>
    %1456 = vector.shape_cast %1455 : vector<1x1x256xf32> to vector<1x256xf32>
    %1457 = vector.shape_cast %1443 : vector<1x256xf32> to vector<1x1x256xf32>
    tpu.vector_store %arg5[%c0_125, %c0_126, %c256_127], %1457 {strides = array<i32>} : memref<1x1x1024xf32, #tpu.memory_space<vmem>>, vector<1x1x256xf32>,
    %c0_128 = arith.constant 0 : index
    %c0_129 = arith.constant 0 : index
    %c512_130 = arith.constant 512 : index
    %1458 = vector.load %arg5[%c0_128, %c0_129, %c512_130] : memref<1x1x1024xf32, #tpu.memory_space<vmem>>, vector<1x1x256xf32>
    %1459 = vector.shape_cast %1458 : vector<1x1x256xf32> to vector<1x256xf32>
    %1460 = vector.shape_cast %1447 : vector<1x256xf32> to vector<1x1x256xf32>
    tpu.vector_store %arg5[%c0_128, %c0_129, %c512_130], %1460 {strides = array<i32>} : memref<1x1x1024xf32, #tpu.memory_space<vmem>>, vector<1x1x256xf32>,
    %c0_131 = arith.constant 0 : index
    %c0_132 = arith.constant 0 : index
    %c768_133 = arith.constant 768 : index
    %1461 = vector.load %arg5[%c0_131, %c0_132, %c768_133] : memref<1x1x1024xf32, #tpu.memory_space<vmem>>, vector<1x1x256xf32>
    %1462 = vector.shape_cast %1461 : vector<1x1x256xf32> to vector<1x256xf32>
    %1463 = vector.shape_cast %1451 : vector<1x256xf32> to vector<1x1x256xf32>
    tpu.vector_store %arg5[%c0_131, %c0_132, %c768_133], %1463 {strides = array<i32>} : memref<1x1x1024xf32, #tpu.memory_space<vmem>>, vector<1x1x256xf32>,
    return
  }
  func.func @transform_0(%arg0: i32) -> (i32, i32, i32) {
    %c0_i32 = arith.constant 0 : i32
    %c0_i32_0 = arith.constant 0 : i32
    %c0_i32_1 = arith.constant 0 : i32
    return %arg0, %c0_i32, %c0_i32_0 : i32, i32, i32
  }
  func.func @transform_1(%arg0: i32) -> i32 {
    %c0_i32 = arith.constant 0 : i32
    %c0_i32_0 = arith.constant 0 : i32
    return %c0_i32 : i32
  }
  func.func @transform_2(%arg0: i32) -> i32 {
    %c0_i32 = arith.constant 0 : i32
    %c0_i32_0 = arith.constant 0 : i32
    return %c0_i32 : i32
  }
  func.func @transform_3(%arg0: i32) -> i32 {
    %c0_i32 = arith.constant 0 : i32
    %c0_i32_0 = arith.constant 0 : i32
    return %c0_i32 : i32
  }
  func.func @transform_4(%arg0: i32) -> (i32, i32, i32) {
    %c0_i32 = arith.constant 0 : i32
    %c0_i32_0 = arith.constant 0 : i32
    %c0_i32_1 = arith.constant 0 : i32
    return %arg0, %c0_i32, %c0_i32_0 : i32, i32, i32
  }
}

</mosaic_0001>

<bundles_post_ra>
// kernel: tpu_custom_call.1
= control target key start
LH: loop header
LB: loop body
LE: loop exit
PB: predicated region body
PF: predicated region fallthrough
CT: control target
= control target key end

     0   :  { %s6603_s0 = inlined_call_operand.hbm [shape: f32[2,1,1024], index: 0, kind: input, shape index: {}]   ;;  %s6604_s1 = inlined_call_operand.hbm [shape: f32[288], index: 1, kind: input, shape index: {}]   ;;  %s6605_s2 = inlined_call_operand.vmem [shape: f32[32], index: 2, kind: input, shape index: {}]   ;;  %s6606_s3 = inlined_call_operand.<no memory space> [shape: f32[1], index: 3, kind: input, shape index: {}]   ;;  %s6607_s4 = inlined_call_operand.hbm [shape: f32[2,1,1024], index: 4, kind: output, shape index: {}]  }
   0x1   :  { %6789 = sst [smem:[#allocation131_spill]] %s6603_s0 }
   0x2   :  { %6790 = sst [smem:[#allocation132_spill]] %s6604_s1 }
   0x3   :  { %6791 = sst [smem:[#allocation133_spill]] %s6605_s2 }
   0x4   :  { %6792 = sst [smem:[#allocation134_spill]] %s6607_s4 }
   0x5   :  { %9 = sst [smem:[#allocation2]] %s6606_s3 }
   0x6   :  { %10 = vsyncpa [#allocation4], 0 }
   0x7   :  { %12 = vsyncpa [#allocation4 + $0x1], 0 }
   0x8   :  { %13 = vsyncpa [#allocation6], 0 }
   0x9   :  { %14 = vsyncpa [#allocation7], 0 }
   0xa   :  { %15 = vsyncpa [#allocation5], 0 }
   0xb   :  { %17 = vsyncpa [#allocation5 + $0x1], 0  ;;  %s3639_s17 = smov 0   ;;  %s3641_s18 = smov 0  }
   0xc   :  { %s3643_s19 = smov 0   ;;  %s3645_s20 = smov 0  }
   0xd LB: > { %6793 = sst [smem:[#allocation15_spill]] %s3584_s17  ;;  %s3660_s3 = sadd.s32 4294967295, %s3596_s20   ;;  %s3596_s20 = sphi %s3645_s20, %s7388_s20   ;;  %s3592_s19 = sphi %s3643_s19, %s7391_s19   ;;  %s3588_s18 = sphi %s3641_s18, %s7390_s18   ;;  %s3584_s17 = sphi %s3639_s17, %s7389_s17  }
   0xe   : > { %6794 = sst [smem:[#allocation16_spill]] %s3588_s18  ;;  %s3052_s21 = sadd.s32 4294967294, %s3596_s20  }
   0xf   : > { %6795 = sst [smem:[#allocation17_spill]] %s3592_s19  ;;  %p43_p0 = scmp.ne.s32.totalorder %s3588_s18, %s3584_s17 }
  0x10   : > { %6796 = sst [smem:[#allocation18_spill]] %s3596_s20  ;;  %p6608_p1 = scmp.eq.s32.totalorder %s3660_s3, 0 }
  0x11   : > { %6797 = sst [smem:[#allocation19_spill]] %s3660_s3  ;;  %p130_p2 = scmp.eq.s32.totalorder %s3660_s3, 1 }
  0x12   : > { %p136_p3 = scmp.eq.s32.totalorder %s3052_s21, 1  ;;  %p3669_p4 = por %p6608_p1, %p43_p0 }
  0x13   : > { %p3053_p5 = scmp.ge.s32.totalorder %s3596_s20, 1  ;;  %p143_p7 = scmp.lt.s32.totalorder %s3596_s20, 3 }
  0x14   : > { %s6798_s22 = scalar_select %p3669_p4, 1, 0 }
  0x15   : > { %p3674_p6 = por %p136_p3, %p43_p0  ;;  %p3679_p8 = pnand %p3053_p5, %p143_p7 }
  0x16   : > { %s6802_s2 = sld [smem:[#allocation133_spill]]  ;;  %s3690_s28 = sadd.s32 1, %s3596_s20  }
  0x17   : > { %s6799_s23 = scalar_select %p3674_p6, 1, 0 }
  0x18   : > { %s6801_s24 = scalar_select %p3679_p8, 1, 0 }
  0x19   : > { %6800 = sst [smem:[#allocation20_spill]] %s6799_s23  ;;  %p3402_p10 = pneg %p3679_p8 }
  0x1a   : > { %6803 = sst [smem:[#allocation21_spill]] %s3690_s28  ;;  %s27_s30 = ssub.s32 %s3596_s20, %s3690_s28 }
  0x1b   : > { %p3694_p11 = pnand %p3402_p10, %p6608_p1  ;;  %s30_s5 = sadd.s32 1, %s3592_s19 }
  0x1c   : > { %s165_s27 = sshll.u32 %s6802_s2, 4  ;;  %p3701_p12 = scmp.eq.s32.totalorder %s27_s30, 0  ;;  %s166_s27 = int_to_ptr.vmem [resolvable:$true] %s165_s27 }
  0x1d   : > { %s3598_s7 = smov [#allocation8]   ;;  %s6806_s1 = sld [smem:[#allocation132_spill]] }
  0x1e   : > { %s3481_s10 = scalar_lea.vmem %s166_s27, 16  ;;  %p3483_p0 = pneg %p3694_p11 }
  0x1f   : > { %p3482_p13 = scmp.ne.s32.totalorder %s166_s27, %s3481_s10  ;;  %p3489_p7 = scmp.lt.s32.totalorder %s166_s27, %s166_s27 }
  0x20   : > { %p3490_p10 = scmp.lt.s32.totalorder %s3481_s10, %s3481_s10 }
  0x21   : > { %p3484_p3 = pnand %p3483_p0, %p3482_p13 }
  0x22   : > { %p3491_p9 = por %p3490_p10, %p3489_p7 }
  0x23   : > { %3405 = dma.hbm_to_smem (!%p3694_p11), %s6806_s1, 48, %s3598_s7, [#allocation6]  }
  0x24   : > { %p3485_p5 = pneg %p3484_p3 }
  0x26   : > { %p3492_p1 = pnand %p3491_p9, %p3485_p5 }
  0x28   : > { %3495 = shalt.err (!%p3492_p1)
}
  0x29   : > { %s3599_s11 = smov [#allocation9]   ;;  %p37_p13 = scmp.ne.s32.totalorder %s3592_s19, %s3588_s18 }
  0x2a   : > { %3408 = dma.vmem_to_smem (!%p3694_p11), %s166_s27, 16, %s3599_s11, [#allocation7]  }
  0x2b   : > { %s3717_s12 = scalar_select %p3701_p12, %s3592_s19, %s30_s5  }
  0x2c   : > { %p38_p0 = scmp.eq.s32.totalorder %s3596_s20, 0  ;;  %p3419_p9 = scmp.lt.s32.totalorder %s3596_s20, 2 }
  0x2d   : > { %6807 = sst [smem:[#allocation22_spill]] %s3717_s12  ;;  %s179_s13 = sand.u32 1, %s3592_s19  }
  0x2e   : > { %p39_p1 = por %p38_p0, %p37_p13  ;;  %p3726_p3 = por %p130_p2, %p37_p13 }
  0x2f   : > { %s3057_s15 = sshll.u32 %s179_s13, 3  ;;  %s3388_s16 = sshll.u32 %s3596_s20, 7 }
  0x30   : > { %s6808_s14 = scalar_select %p3726_p3, 1, 0 }
  0x31   : > { %s6810_s0 = sld [smem:[#allocation131_spill]]  ;;  %s183_s27 = scalar_lea.vmem [#allocation3], %s3057_s15 }
  0x32   : > { %6809 = sst [smem:[#allocation23_spill]] %s6808_s14  ;;  %s191_s29 = sshll.u32 %s183_s27, 4  ;;  %s192_s29 = int_to_ptr.vmem [resolvable:$true] %s191_s29 }
  0x33   : > { %p3736_p11 = pnand %p3419_p9, %p39_p1  ;;  %s180_s5 = scalar_lea.sflag [#allocation4], %s179_s13 }
  0x35   : > { %p3498_p12 = pneg %p3736_p11 }
  0x37   : > { %s3734_s26 = scalar_lea.hbm %s6810_s0, %s3388_s16  ;;  %s3501_s9 = scalar_lea.hbm %s6810_s0, 256 }
  0x38   : > { %s3496_s6 = scalar_lea.hbm %s3734_s26, 128  ;;  %p3502_p10 = scmp.lt.s32.totalorder %s3734_s26, %s6810_s0 }
  0x39   : > { %p3497_p2 = scmp.ne.s32.totalorder %s3734_s26, %s3496_s6  ;;  %p3503_p13 = scmp.lt.s32.totalorder %s3501_s9, %s3496_s6 }
  0x3b   : > { %p3499_p5 = pnand %p3498_p12, %p3497_p2  ;;  %p3504_p0 = por %p3503_p13, %p3502_p10 }
  0x3d   : > { %p3500_p7 = pneg %p3499_p5 }
  0x3f   : > { %p3505_p9 = pnand %p3504_p0, %p3500_p7 }
  0x41   : > { %3508 = shalt.err (!%p3505_p9)
}
  0x42   : > { %s3509_s15 = scalar_lea.vmem %s192_s29, 128  ;;  %s3600_s13 = smov [#allocation3]  }
  0x43   : > { %p3510_p1 = scmp.ne.s32.totalorder %s192_s29, %s3509_s15  ;;  %s3514_s16 = sshll.u32 %s3600_s13, 4  ;;  %s3515_s16 = int_to_ptr.vmem [resolvable:$false] %s3514_s16 }
  0x44   : > { %s3516_s21 = scalar_lea.vmem %s3515_s16, 256  ;;  %p3517_p2 = scmp.lt.s32.totalorder %s192_s29, %s3515_s16 }
  0x45   : > { %p3512_p6 = pnand %p3510_p1, %p3498_p12  ;;  %p3518_p5 = scmp.lt.s32.totalorder %s3516_s21, %s3509_s15 }
  0x47   : > { %p3513_p3 = pneg %p3512_p6  ;;  %p3519_p4 = por %p3518_p5, %p3517_p2 }
  0x49   : > { %p3520_p8 = pnand %p3519_p4, %p3513_p3 }
  0x4b   : > { %3523 = shalt.err (!%p3520_p8)
}
  0x4c   : > { %3412 = dma.hbm_to_vmem [thread:$0]  (!%p3736_p11), %s3734_s26, 128, %s192_s29, %s180_s5  }
  0x4d   : > { %p6812_p7 = scmp.ne.s32.totalorder %s6801_s24, 0 }
  0x4f   : > { %200 = sbr.rel (%p6812_p7) target bundleno = 818 (0x332), region = 36 }
  0x54   : > { %s3757_s25 = sand.u32 1, %s3588_s18   ;;  %p6815_p4 = scmp.ne.s32.totalorder %s6798_s22, 0 }
  0x55   : > { %6813 = sst [smem:[#allocation24_spill]] %s3757_s25  ;;  %s6612_s27 = sshll.u32 %s3757_s25, 3 }
  0x56   : > { %s203_s6 = scalar_lea.sflag [#allocation4], %s3757_s25  ;;  %s3763_s7 = scalar_lea.vmem [#allocation3], %s6612_s27 }
  0x57   : > { %6814 = sst [smem:[#allocation25_spill]] %s3763_s7 }
  0x58   : > { %3567 = dma.done.wait (%p6815_p4), %s203_s6, 128  }
  0x59   : > { %3569 = vsyncadd (%p6815_p4), %s203_s6, 4294967168  ;;  %p6816_p6 = scmp.eq.s32.totalorder %s3660_s3, 0 }
  0x5b   : > { %3571 = dma.done.wait (%p6816_p6), [#allocation6], 48   ;;  %p6817_p8 = pmov %p6816_p6 }
  0x5c   : > { %p6818_p3 = pmov %p6816_p6 }
  0x5d   : > { %3573 = vsyncadd (%p6817_p8), [#allocation6], 4294967248 }
  0x5e   : > { %3575 = dma.done.wait (%p6818_p3), [#allocation7], 16   ;;  %p6819_p11 = pmov %p6818_p3 }
  0x60   : > { %3577 = vsyncadd (%p6819_p11), [#allocation7], 4294967280 }
  0x61   : > { %219 = sfence }
  0x62   : > { %v6746_v0 = vlaneseq  ;;  %v255_v2 = vld [vmem:[%s3763_s7 + $0x2] sm:$0x3]  ;;  %v254_v3 = vld [vmem:[%s3763_s7] sm:$0x3]  ;;  %s3788_s22 = sld [smem:[#allocation8 + $0x9]]  ;;  %s3601_s30 = smov 17  }
  0x63   : > { %s3790_s24 = sld [smem:[#allocation8 + $0x2d]]  ;;  %v256_v10 = vld [vmem:[%s3763_s7 + $0x4] sm:$0x3]  ;;  %v257_v13 = vld [vmem:[%s3763_s7 + $0x6] sm:$0x3]  ;;  %s3602_s18 = smov 16  }
  0x64   : > { %v3778_v1 = vshrl.u32 %v6746_v0, 7  ;;  %s3798_s26 = sld [smem:[#allocation8 + $0x51]] }
  0x65   : > { %s3800_s29 = sld [smem:[#allocation8 + $0x75]] }
  0x66   : > { %v3783_v4 = vsub.s32 0, %v3778_v1  ;;  %v3786_v5 = vsub.s32 1, %v3778_v1  ;;  %s3810_s5 = sld [smem:[#allocation8 + $0x99]] }
  0x67   : > { %s3813_s8 = sld [smem:[#allocation8 + $0xbd]] }
  0x68   : > { %6820 = sst [smem:[#allocation26_spill]] %s3788_s22  ;;  %v3793_v6 = vrot.slane %v255_v2, %v3783_v4  ;;  %v3796_v7 = vrot.slane %v254_v3, %v3783_v4  ;;  %v3805_v8 = vrot.slane %v255_v2, %v3786_v5  ;;  %v3808_v9 = vrot.slane %v254_v3, %v3786_v5 }
  0x69   : > { %6821 = sst [smem:[#allocation27_spill]] %s3790_s24  ;;  %v3822_v11 = vrot.slane %v256_v10, %v3786_v5  ;;  %v3825_v12 = vrot.slane %v256_v10, %v3783_v4  ;;  %v3839_v14 = vrot.slane %v257_v13, %v3786_v5  ;;  %v3842_v15 = vrot.slane %v257_v13, %v3783_v4 }
  0x6a   : > { %6822 = sst [smem:[#allocation28_spill]] %s3798_s26  ;;  %339 = vrot.lane.b32.xlu1 %v3793_v6, %s3601_s30  ;;  %271 = vrot.lane.b32.xlu0 %v3796_v7, %s3601_s30  ;;  %v348_v16 = vstv %s3788_s22  ;;  %v354_v17 = vstv %s3790_s24  ;;  %s6910_s22 = smov 113   ;;  %v4138_v13 = vand.u32 127, %v6746_v0 }
  0x6b   : > { %6823 = sst [smem:[#allocation29_spill]] %s3800_s29  ;;  %v360_v18 = vstv %s3798_s26  ;;  %v366_v19 = vstv %s3800_s29 }
  0x6c   : > { %6824 = sst [smem:[#allocation30_spill]] %s3810_s5  ;;  %v372_v20 = vstv %s3810_s5  ;;  %v4167_v58 = vadd.s32 128, %v4138_v13  ;;  %v6763_v57 = vand.u32 15, %v4138_v13  ;;  %vm246_vm0 = vcmp.ge.s32.totalorder %v4138_v13, 16 }
  0x6d   : > { %6825 = sst [smem:[#allocation31_spill]] %s3813_s8  ;;  %v378_v21 = vstv %s3813_s8  ;;  %vm275_vm3 = vcmp.lt.s32.totalorder %v4138_v13, 17  ;;  %vm533_vm5 = vcmp.lt.s32.totalorder %v4138_v13, 16  ;;  %vm760_vm6 = vcmp.lt.s32.totalorder %v4138_v13, 15 }
  0x6e   : > { %s3815_s9 = sld [smem:[#allocation8 + $0xe1]]  ;;  %341 = vrot.lane.b32.xlu1 %v3805_v8, %s3601_s30  ;;  %273 = vrot.lane.b32.xlu0 %v3808_v9, %s3601_s30  ;;  %v6786_v59 = vand.u32 15, %v4167_v58  ;;  %vm4226_vm1 = vcmp.ge.s32.totalorder %v6763_v57, 1  ;;  %vm985_vm10 = vcmp.lt.s32.totalorder %v4138_v13, 1  ;;  %vm1722_vm11 = vcmp.lt.s32.totalorder %v4138_v13, 127 }
  0x6f   : > { %s3817_s10 = sld [smem:[#allocation8 + $0x105]]  ;;  %vm4263_vm4 = vmand %vm246_vm0, %vm4226_vm1  ;;  %vm249_vm12 = vcmp.lt.s32.totalorder %v4167_v58, 240  ;;  %vm1949_vm13 = vcmp.lt.s32.totalorder %v4138_v13, 113  ;;  %vm2174_vm15 = vcmp.lt.s32.totalorder %v4138_v13, 112 }
  0x70   : > { %s3827_s11 = sld [smem:[#allocation8]]  ;;  %vm4252_vm2 = vcmp.ge.s32.totalorder %v6786_v59, 1 }
  0x71   : > { %s3830_s15 = sld [smem:[#allocation8 + $0x24]]  ;;  %vm5734_vm14 = vmand %vm249_vm12, %vm4252_vm2 }
  0x72   : > { %s3832_s13 = sld [smem:[#allocation8 + $0x48]]  ;;  %408 = vrot.lane.b32.xlu1 %v3822_v11, %s3601_s30  ;;  %406 = vrot.lane.b32.xlu0 %v3825_v12, %s3601_s30 }
  0x73   : > { %s3834_s16 = sld [smem:[#allocation8 + $0x6c]] }
  0x74   : > { %6826 = sst [smem:[#allocation32_spill]] %s3815_s9  ;;  %v384_v22 = vstv %s3815_s9 }
  0x75   : > { %6827 = sst [smem:[#allocation33_spill]] %s3817_s10  ;;  %v390_v23 = vstv %s3817_s10 }
  0x76   : > { %6828 = sst [smem:[#allocation34_spill]] %s3827_s11  ;;  %475 = vrot.lane.b32.xlu1 %v3839_v14, %s3601_s30  ;;  %473 = vrot.lane.b32.xlu0 %v3842_v15, %s3601_s30  ;;  %v281_v24 = vstv %s3827_s11  ;;  %s6962_s11 = smov 112  }
  0x77   : > { %6829 = sst [smem:[#allocation35_spill]] %s3830_s15  ;;  %v287_v25 = vstv %s3830_s15 }
  0x78   : > { %6830 = sst [smem:[#allocation36_spill]] %s3832_s13  ;;  %v293_v26 = vstv %s3832_s13  ;;  %s6741_s13 = smov 112  }
  0x79   : > { %6831 = sst [smem:[#allocation37_spill]] %s3834_s16  ;;  %v299_v27 = vstv %s3834_s16 }
  0x7a   : > { %s3844_s21 = sld [smem:[#allocation8 + $0x90]]  ;;  %531 = vrot.lane.b32.xlu1 %v3808_v9, %s3602_s18  ;;  %529 = vrot.lane.b32.xlu0 %v3796_v7, %s3602_s18 }
  0x7b   : > { %s3846_s6 = sld [smem:[#allocation8 + $0xb4]] }
  0x7c   : > { %s3848_s27 = sld [smem:[#allocation8 + $0xd8]] }
  0x7d   : > { %s3850_s0 = sld [smem:[#allocation8 + $0xfc]] }
  0x7e   : > { %s3854_s1 = sld [smem:[#allocation8 + $0x12]]  ;;  %588 = vrot.lane.b32.xlu1 %v3805_v8, %s3602_s18  ;;  %586 = vrot.lane.b32.xlu0 %v3793_v6, %s3602_s18 }
  0x7f   : > { %s3856_s2 = sld [smem:[#allocation8 + $0x36]] }
  0x80   : > { %6832 = sst [smem:[#allocation38_spill]] %s3844_s21  ;;  %v305_v28 = vstv %s3844_s21 }
  0x81   : > { %6833 = sst [smem:[#allocation39_spill]] %s3846_s6  ;;  %v311_v29 = vstv %s3846_s6 }
  0x82   : > { %6834 = sst [smem:[#allocation40_spill]] %s3848_s27  ;;  %644 = vrot.lane.b32.xlu1 %v3822_v11, %s3602_s18  ;;  %642 = vrot.lane.b32.xlu0 %v3825_v12, %s3602_s18  ;;  %v317_v30 = vstv %s3848_s27 }
  0x83   : > { %6835 = sst [smem:[#allocation41_spill]] %s3850_s0  ;;  %v323_v31 = vstv %s3850_s0 }
  0x84   : > { %6836 = sst [smem:[#allocation42_spill]] %s3854_s1  ;;  %v415_v32 = vstv %s3854_s1 }
  0x85   : > { %6837 = sst [smem:[#allocation43_spill]] %s3856_s2  ;;  %v421_v33 = vstv %s3856_s2 }
  0x86   : > { %s3858_s12 = sld [smem:[#allocation8 + $0x5a]]  ;;  %700 = vrot.lane.b32.xlu1 %v3839_v14, %s3602_s18  ;;  %698 = vrot.lane.b32.xlu0 %v3842_v15, %s3602_s18 }
  0x87   : > { %s3860_s19 = sld [smem:[#allocation8 + $0x7e]] }
  0x88   : > { %s3864_s28 = sld [smem:[#allocation8 + $0xa2]] }
  0x89   : > { %s3866_s20 = sld [smem:[#allocation8 + $0xc6]] }
  0x8a   : > { %s3868_s23 = sld [smem:[#allocation8 + $0xea]] }
  0x8b   : > { %s3870_s30 = sld [smem:[#allocation8 + $0x10e]] }
  0x8c   : > { %6838 = sst [smem:[#allocation44_spill]] %s3858_s12  ;;  %v427_v34 = vstv %s3858_s12 }
  0x8d   : > { %6839 = sst [smem:[#allocation45_spill]] %s3860_s19  ;;  %v433_v35 = vstv %s3860_s19 }
  0x8e   : > { %6840 = sst [smem:[#allocation46_spill]] %s3864_s28  ;;  %v439_v36 = vstv %s3864_s28 }
  0x8f   : > { %6841 = sst [smem:[#allocation47_spill]] %s3866_s20  ;;  %s3603_s20 = smov 15  }
  0x90   : > { %6842 = sst [smem:[#allocation48_spill]] %s3868_s23  ;;  %758 = vrot.lane.b32.xlu1 %v3808_v9, %s3603_s20  ;;  %756 = vrot.lane.b32.xlu0 %v3796_v7, %s3603_s20 }
  0x91   : > { %6843 = sst [smem:[#allocation49_spill]] %s3870_s30 }
  0x92   : > { %s3874_s17 = sld [smem:[#allocation8 + $0x1b]] }
  0x93   : > { %s3876_s4 = sld [smem:[#allocation8 + $0x3f]] }
  0x94   : > { %s3878_s14 = sld [smem:[#allocation8 + $0x63]]  ;;  %815 = vrot.lane.b32.xlu1 %v3805_v8, %s3603_s20  ;;  %813 = vrot.lane.b32.xlu0 %v3793_v6, %s3603_s20 }
  0x95   : > { %s3880_s25 = sld [smem:[#allocation8 + $0x87]] }
  0x96   : > { %s3884_s3 = sld [smem:[#allocation8 + $0xab]] }
  0x97   : > { %s3886_s7 = sld [smem:[#allocation8 + $0xcf]] }
  0x98   : > { %6844 = sst [smem:[#allocation50_spill]] %s3874_s17  ;;  %871 = vrot.lane.b32.xlu1 %v3822_v11, %s3603_s20  ;;  %869 = vrot.lane.b32.xlu0 %v3825_v12, %s3603_s20 }
  0x99   : > { %6845 = sst [smem:[#allocation51_spill]] %s3876_s4 }
  0x9a   : > { %6846 = sst [smem:[#allocation52_spill]] %s3878_s14 }
  0x9b   : > { %6847 = sst [smem:[#allocation53_spill]] %s3880_s25 }
  0x9c   : > { %6848 = sst [smem:[#allocation54_spill]] %s3884_s3  ;;  %927 = vrot.lane.b32.xlu1 %v3839_v14, %s3603_s20  ;;  %925 = vrot.lane.b32.xlu0 %v3842_v15, %s3603_s20  ;;  %s3604_s3 = smov 1  }
  0x9d   : > { %6849 = sst [smem:[#allocation55_spill]] %s3886_s7 }
  0x9e   : > { %s3888_s30 = sld [smem:[#allocation8 + $0xf3]] }
  0x9f   : > { %s3890_s23 = sld [smem:[#allocation8 + $0x117]] }
  0xa0   : > { %s3894_s4 = sld [smem:[#allocation8 + $0x1]]  ;;  %983 = vrot.lane.b32.xlu1 %v3808_v9, %s3604_s3  ;;  %981 = vrot.lane.b32.xlu0 %v3796_v7, %s3604_s3 }
  0xa1   : > { %s3896_s14 = sld [smem:[#allocation8 + $0x25]] }
  0xa2   : > { %s3898_s25 = sld [smem:[#allocation8 + $0x49]] }
  0xa3   : > { %s3900_s17 = sld [smem:[#allocation8 + $0x6d]] }
  0xa4   : > { %6850 = sst [smem:[#allocation56_spill]] %s3888_s30  ;;  %1040 = vrot.lane.b32.xlu1 %v3805_v8, %s3604_s3  ;;  %1038 = vrot.lane.b32.xlu0 %v3793_v6, %s3604_s3 }
  0xa5   : > { %6851 = sst [smem:[#allocation57_spill]] %s3890_s23 }
  0xa6   : > { %6852 = sst [smem:[#allocation58_spill]] %s3894_s4 }
  0xa7   : > { %6853 = sst [smem:[#allocation59_spill]] %s3896_s14 }
  0xa8   : > { %6854 = sst [smem:[#allocation60_spill]] %s3898_s25  ;;  %1096 = vrot.lane.b32.xlu1 %v3822_v11, %s3604_s3  ;;  %1094 = vrot.lane.b32.xlu0 %v3825_v12, %s3604_s3 }
  0xa9   : > { %6855 = sst [smem:[#allocation61_spill]] %s3900_s17 }
  0xaa   : > { %s3904_s30 = sld [smem:[#allocation8 + $0x91]] }
  0xab   : > { %s3906_s23 = sld [smem:[#allocation8 + $0xb5]] }
  0xac   : > { %s3908_s7 = sld [smem:[#allocation8 + $0xd9]]  ;;  %1152 = vrot.lane.b32.xlu1 %v3839_v14, %s3604_s3  ;;  %1150 = vrot.lane.b32.xlu0 %v3842_v15, %s3604_s3 }
  0xad   : > { %s3910_s18 = sld [smem:[#allocation8 + $0xfd]] }
  0xae   : > { %s3914_s25 = sld [smem:[#allocation8 + $0xa]] }
  0xaf   : > { %s3916_s17 = sld [smem:[#allocation8 + $0x2e]] }
  0xb0   : > { %6856 = sst [smem:[#allocation62_spill]] %s3904_s30 }
  0xb1   : > { %6857 = sst [smem:[#allocation63_spill]] %s3906_s23 }
  0xb2   : > { %6858 = sst [smem:[#allocation64_spill]] %s3908_s7 }
  0xb3   : > { %6859 = sst [smem:[#allocation65_spill]] %s3910_s18 }
  0xb4   : > { %6860 = sst [smem:[#allocation66_spill]] %s3914_s25 }
  0xb5   : > { %6861 = sst [smem:[#allocation67_spill]] %s3916_s17 }
  0xb6   : > { %s3918_s14 = sld [smem:[#allocation8 + $0x52]] }
  0xb7   : > { %s3920_s4 = sld [smem:[#allocation8 + $0x76]] }
  0xb8   : > { %s3924_s23 = sld [smem:[#allocation8 + $0x9a]] }
  0xb9   : > { %s3926_s7 = sld [smem:[#allocation8 + $0xbe]] }
  0xba   : > { %s3928_s18 = sld [smem:[#allocation8 + $0xe2]] }
  0xbb   : > { %s3930_s30 = sld [smem:[#allocation8 + $0x106]] }
  0xbc   : > { %6862 = sst [smem:[#allocation68_spill]] %s3918_s14 }
  0xbd   : > { %6863 = sst [smem:[#allocation69_spill]] %s3920_s4 }
  0xbe   : > { %6864 = sst [smem:[#allocation70_spill]] %s3924_s23  ;;  %s3605_s23 = smov 127  }
  0xbf   : > { %6865 = sst [smem:[#allocation71_spill]] %s3926_s7  ;;  %1720 = vrot.lane.b32.xlu1 %v3808_v9, %s3605_s23  ;;  %1718 = vrot.lane.b32.xlu0 %v3796_v7, %s3605_s23 }
  0xc0   : > { %6866 = sst [smem:[#allocation72_spill]] %s3928_s18 }
  0xc1   : > { %6867 = sst [smem:[#allocation73_spill]] %s3930_s30 }
  0xc2   : > { %s3934_s17 = sld [smem:[#allocation8 + $0x13]] }
  0xc3   : > { %s3936_s14 = sld [smem:[#allocation8 + $0x37]]  ;;  %1777 = vrot.lane.b32.xlu1 %v3805_v8, %s3605_s23  ;;  %1775 = vrot.lane.b32.xlu0 %v3793_v6, %s3605_s23 }
  0xc4   : > { %s3938_s4 = sld [smem:[#allocation8 + $0x5b]] }
  0xc5   : > { %s3940_s25 = sld [smem:[#allocation8 + $0x7f]] }
  0xc6   : > { %s3944_s18 = sld [smem:[#allocation8 + $0xa3]] }
  0xc7   : > { %s3946_s30 = sld [smem:[#allocation8 + $0xc7]]  ;;  %1833 = vrot.lane.b32.xlu1 %v3822_v11, %s3605_s23  ;;  %1831 = vrot.lane.b32.xlu0 %v3825_v12, %s3605_s23 }
  0xc8   : > { %6868 = sst [smem:[#allocation74_spill]] %s3934_s17 }
  0xc9   : > { %6869 = sst [smem:[#allocation75_spill]] %s3936_s14 }
  0xca   : > { %6870 = sst [smem:[#allocation76_spill]] %s3938_s4 }
  0xcb   : > { %6871 = sst [smem:[#allocation77_spill]] %s3940_s25  ;;  %1889 = vrot.lane.b32.xlu1 %v3839_v14, %s3605_s23  ;;  %1887 = vrot.lane.b32.xlu0 %v3842_v15, %s3605_s23 }
  0xcc   : > { %6872 = sst [smem:[#allocation78_spill]] %s3944_s18 }
  0xcd   : > { %6873 = sst [smem:[#allocation79_spill]] %s3946_s30 }
  0xce   : > { %s3948_s7 = sld [smem:[#allocation8 + $0xeb]] }
  0xcf   : > { %s3950_s20 = sld [smem:[#allocation8 + $0x10f]] }
  0xd0   : > { %s3954_s4 = sld [smem:[#allocation8 + $0x1c]] }
  0xd1   : > { %s3956_s25 = sld [smem:[#allocation8 + $0x40]] }
  0xd2   : > { %s3958_s14 = sld [smem:[#allocation8 + $0x64]] }
  0xd3   : > { %s3960_s17 = sld [smem:[#allocation8 + $0x88]] }
  0xd4   : > { %6874 = sst [smem:[#allocation80_spill]] %s3948_s7 }
  0xd5   : > { %6875 = sst [smem:[#allocation81_spill]] %s3950_s20 }
  0xd6   : > { %6876 = sst [smem:[#allocation82_spill]] %s3954_s4 }
  0xd7   : > { %6877 = sst [smem:[#allocation83_spill]] %s3956_s25 }
  0xd8   : > { %6878 = sst [smem:[#allocation84_spill]] %s3958_s14 }
  0xd9   : > { %6879 = sst [smem:[#allocation85_spill]] %s3960_s17 }
  0xda   : > { %s3964_s30 = sld [smem:[#allocation8 + $0xac]] }
  0xdb   : > { %s3966_s7 = sld [smem:[#allocation8 + $0xd0]] }
  0xdc   : > { %s3968_s20 = sld [smem:[#allocation8 + $0xf4]]  ;;  %v340_v0 = vpop.permute.xlu1 %339  ;;  %v272_v60 = vpop.permute.xlu0 %271 }
  0xdd   : > { %s3970_s18 = sld [smem:[#allocation8 + $0x118]] }
  0xde   : > { %s3974_s25 = sld [smem:[#allocation8 + $0x2]] }
  0xdf   : > { %s3976_s14 = sld [smem:[#allocation8 + $0x26]] }
  0xe0   : > { %6880 = sst [smem:[#allocation86_spill]] %s3964_s30  ;;  %v342_v2 = vpop.permute.xlu1 %341  ;;  %v274_v63 = vpop.permute.xlu0 %273 }
  0xe1   : > { %6881 = sst [smem:[#allocation87_spill]] %s3966_s7  ;;  %v344_v55 = vsel %vm275_vm3, %v342_v2, %v340_v0  ;;  %v276_v10 = vsel %vm275_vm3, %v272_v60, %v274_v63  ;;  %v277_v3 = vsel %vm275_vm3, %v274_v63, %v272_v60 }
  0xe2   : > { %6882 = sst [smem:[#allocation88_spill]] %s3968_s20  ;;  %v345_v61 = vsel %vm4263_vm4, %v344_v55, 0.0 }
  0xe3   : > { %6883 = sst [smem:[#allocation89_spill]] %s3970_s18  ;;  %v349_v55 = vmul.f32 %v348_v16, %v345_v61  ;;  %v355_v63 = vmul.f32 %v354_v17, %v345_v61 }
  0xe4   : > { %6884 = sst [smem:[#allocation90_spill]] %s3974_s25  ;;  %v407_v53 = vpop.permute.xlu0 %406 }
  0xe5   : > { %6885 = sst [smem:[#allocation91_spill]] %s3976_s14 }
  0xe6   : > { %s3978_s17 = sld [smem:[#allocation8 + $0x4a]] }
  0xe7   : > { %s3980_s4 = sld [smem:[#allocation8 + $0x6e]] }
  0xe8   : > { %s3984_s20 = sld [smem:[#allocation8 + $0x92]]  ;;  %v474_v39 = vpop.permute.xlu0 %473 }
  0xe9   : > { %s3986_s18 = sld [smem:[#allocation8 + $0xb6]] }
  0xea   : > { %s3988_s7 = sld [smem:[#allocation8 + $0xda]] }
  0xeb   : > { %s3990_s3 = sld [smem:[#allocation8 + $0xfe]] }
  0xec   : > { %6886 = sst [smem:[#allocation92_spill]] %s3978_s17 }
  0xed   : > { %6887 = sst [smem:[#allocation93_spill]] %s3980_s4 }
  0xee   : > { %6888 = sst [smem:[#allocation94_spill]] %s3984_s20 }
  0xef   : > { %6889 = sst [smem:[#allocation95_spill]] %s3986_s18 }
  0xf0   : > { %6890 = sst [smem:[#allocation96_spill]] %s3988_s7 }
  0xf1   : > { %6891 = sst [smem:[#allocation97_spill]] %s3990_s3 }
  0xf2   : > { %s3994_s17 = sld [smem:[#allocation8 + $0xb]] }
  0xf3   : > { %s3996_s4 = sld [smem:[#allocation8 + $0x2f]] }
  0xf4   : > { %s3998_s14 = sld [smem:[#allocation8 + $0x53]] }
  0xf5   : > { %s4000_s25 = sld [smem:[#allocation8 + $0x77]] }
  0xf6   : > { %s4004_s18 = sld [smem:[#allocation8 + $0x9b]] }
  0xf7   : > { %s4006_s7 = sld [smem:[#allocation8 + $0xbf]] }
  0xf8   : > { %6892 = sst [smem:[#allocation98_spill]] %s3994_s17 }
  0xf9   : > { %6893 = sst [smem:[#allocation99_spill]] %s3996_s4 }
  0xfa   : > { %6894 = sst [smem:[#allocation100_spill]] %s3998_s14 }
  0xfb   : > { %6895 = sst [smem:[#allocation101_spill]] %s4000_s25 }
  0xfc   : > { %6896 = sst [smem:[#allocation102_spill]] %s4004_s18 }
  0xfd   : > { %6897 = sst [smem:[#allocation103_spill]] %s4006_s7 }
  0xfe   : > { %s4008_s3 = sld [smem:[#allocation8 + $0xe3]] }
  0xff   : > { %s4010_s20 = sld [smem:[#allocation8 + $0x107]] }
 0x100   : > { %s4014_s14 = sld [smem:[#allocation8 + $0x14]] }
 0x101   : > { %s4016_s25 = sld [smem:[#allocation8 + $0x38]] }
 0x102   : > { %s4018_s4 = sld [smem:[#allocation8 + $0x5c]] }
 0x103   : > { %s4020_s18 = sld [smem:[#allocation8 + $0x80]] }
 0x104   : > { %6898 = sst [smem:[#allocation104_spill]] %s4008_s3  ;;  %s6689_s3 = smov 113  }
 0x105   : > { %6899 = sst [smem:[#allocation105_spill]] %s4010_s20  ;;  %1947 = vrot.lane.b32.xlu1 %v3808_v9, %s6689_s3  ;;  %1945 = vrot.lane.b32.xlu0 %v3796_v7, %s6689_s3 }
 0x106   : > { %6900 = sst [smem:[#allocation106_spill]] %s4014_s14 }
 0x107   : > { %6901 = sst [smem:[#allocation107_spill]] %s4016_s25 }
 0x108   : > { %6902 = sst [smem:[#allocation108_spill]] %s4018_s4 }
 0x109   : > { %6903 = sst [smem:[#allocation109_spill]] %s4020_s18  ;;  %2004 = vrot.lane.b32.xlu1 %v3805_v8, %s6689_s3  ;;  %2002 = vrot.lane.b32.xlu0 %v3793_v6, %s6689_s3 }
 0x10a   : > { %s4026_s23 = sld [smem:[#allocation8 + $0xa4]] }
 0x10b   : > { %s4028_s25 = sld [smem:[#allocation8 + $0xc8]] }
 0x10c   : > { %s4030_s4 = sld [smem:[#allocation8 + $0xec]] }
 0x10d   : > { %s4032_s14 = sld [smem:[#allocation8 + $0x110]]  ;;  %2060 = vrot.lane.b32.xlu1 %v3822_v11, %s6910_s22  ;;  %2058 = vrot.lane.b32.xlu0 %v3825_v12, %s6910_s22 }
 0x10e   : > { %s4038_s18 = sld [smem:[#allocation8 + $0x1d]] }
 0x10f   : > { %s4053_s3 = sld [smem:[#allocation8 + $0x89]] }
 0x110   : > { %6904 = sst [smem:[#allocation110_spill]] %s4026_s23 }
 0x111   : > { %s4041_s23 = sld [smem:[#allocation8 + $0x41]]  ;;  %2116 = vrot.lane.b32.xlu1 %v3839_v14, %s6910_s22  ;;  %2114 = vrot.lane.b32.xlu0 %v3842_v15, %s6910_s22 }
 0x112   : > { %6905 = sst [smem:[#allocation111_spill]] %s4030_s4 }
 0x113   : > { %6906 = sst [smem:[#allocation112_spill]] %s4032_s14 }
 0x114   : > { %6907 = sst [smem:[#allocation113_spill]] %s4038_s18 }
 0x115   : > { %s4047_s14 = sld [smem:[#allocation8 + $0x65]]  ;;  %2172 = vrot.lane.b32.xlu1 %v3808_v9, %s6741_s13  ;;  %2170 = vrot.lane.b32.xlu0 %v3796_v7, %s6741_s13 }
 0x116   : > { %6909 = sst [smem:[#allocation115_spill]] %s4053_s3 }
 0x117   : > { %s4061_s8 = sld [smem:[#allocation8 + $0xad]] }
 0x118   : > { %s4067_s9 = sld [smem:[#allocation8 + $0xd1]] }
 0x119   : > { %s4073_s15 = sld [smem:[#allocation8 + $0xf5]]  ;;  %2229 = vrot.lane.b32.xlu1 %v3805_v8, %s6962_s11  ;;  %2227 = vrot.lane.b32.xlu0 %v3793_v6, %s6962_s11 }
 0x11a   : > { %s4079_s27 = sld [smem:[#allocation8 + $0x119]] }
 0x11b   : > { %6908 = sst [smem:[#allocation114_spill]] %s4047_s14 }
 0x11c   : > { %s4087_s19 = sld [smem:[#allocation8 + $0x3]] }
 0x11d   : > { %6913 = sst [smem:[#allocation116_spill]] %s4061_s8  ;;  %2285 = vrot.lane.b32.xlu1 %v3822_v11, %s6962_s11  ;;  %2283 = vrot.lane.b32.xlu0 %v3825_v12, %s6962_s11 }
 0x11e   : > { %6916 = sst [smem:[#allocation117_spill]] %s4067_s9 }
 0x11f   : > { %6921 = sst [smem:[#allocation118_spill]] %s4073_s15  ;;  %s6764_s15 = smov 111  }
 0x120   : > { %6926 = sst [smem:[#allocation119_spill]] %s4079_s27 }
 0x121   : > { %s4093_s28 = sld [smem:[#allocation8 + $0x27]]  ;;  %2341 = vrot.lane.b32.xlu1 %v3839_v14, %s6962_s11  ;;  %2339 = vrot.lane.b32.xlu0 %v3842_v15, %s6962_s11 }
 0x122   : > { %6931 = sst [smem:[#allocation120_spill]] %s4087_s19 }
 0x123   : > { %s4099_s9 = sld [smem:[#allocation8 + $0x4b]] }
 0x124   : > { %s4105_s26 = sld [smem:[#allocation8 + $0x6f]] }
 0x125   : > { %s4113_s2 = sld [smem:[#allocation8 + $0x93]]  ;;  %2399 = vrot.lane.b32.xlu1 %v3808_v9, %s6764_s15  ;;  %2397 = vrot.lane.b32.xlu0 %v3796_v7, %s6764_s15  ;;  %v343_v9 = vsel %vm275_vm3, %v340_v0, %v342_v2  ;;  %v278_v0 = vsel %vm4263_vm4, %v277_v3, 0.0  ;;  %v279_v2 = vsel %vm4252_vm2, %v276_v10, 0.0  ;;  %v361_v10 = vmul.f32 %v360_v18, %v345_v61 }
 0x126   : > { %s4125_s19 = sld [smem:[#allocation8 + $0xdb]]  ;;  %v346_v54 = vsel %vm4252_vm2, %v343_v9, 0.0  ;;  %v373_v7 = vmul.f32 %v372_v20, %v345_v61  ;;  %v288_v52 = vmul.f32 %v287_v25, %v278_v0  ;;  %v300_v51 = vmul.f32 %v299_v27, %v278_v0 }
 0x127   : > { %6934 = sst [smem:[#allocation121_spill]] %s4093_s28  ;;  %v350_v60 = vmul.f32 %v348_v16, %v346_v54  ;;  %v356_v3 = vmul.f32 %v354_v17, %v346_v54  ;;  %v362_v9 = vmul.f32 %v360_v18, %v346_v54  ;;  %v374_v16 = vmul.f32 %v372_v20, %v346_v54  ;;  %v409_v20 = vpop.permute.xlu1 %408 }
 0x128   : > { %s4131_s10 = sld [smem:[#allocation8 + $0xff]]  ;;  %v379_v17 = vmul.f32 %v378_v21, %v345_v61  ;;  %v385_v18 = vmul.f32 %v384_v22, %v345_v61  ;;  %v386_v56 = vmul.f32 %v384_v22, %v346_v54  ;;  %v392_v59 = vmul.f32 %v390_v23, %v346_v54 }
 0x129   : > { %6939 = sst [smem:[#allocation122_spill]] %s4099_s9  ;;  %2456 = vrot.lane.b32.xlu1 %v3805_v8, %s6764_s15  ;;  %2454 = vrot.lane.b32.xlu0 %v3793_v6, %s6764_s15  ;;  %v380_v6 = vmul.f32 %v378_v21, %v346_v54  ;;  %v282_v21 = vmul.f32 %v281_v24, %v278_v0  ;;  %v283_v22 = vmul.f32 %v281_v24, %v279_v2 }
 0x12a   : > { %6944 = sst [smem:[#allocation123_spill]] %s4105_s26  ;;  %v306_v50 = vmul.f32 %v305_v28, %v278_v0  ;;  %v307_v49 = vmul.f32 %v305_v28, %v279_v2  ;;  %v312_v24 = vmul.f32 %v311_v29, %v278_v0  ;;  %v313_v48 = vmul.f32 %v311_v29, %v279_v2 }
 0x12b   : > { %6949 = sst [smem:[#allocation124_spill]] %s4113_s2  ;;  %v324_v47 = vmul.f32 %v323_v31, %v278_v0  ;;  %v351_v46 = vadd.f32 %v349_v55, %v282_v21  ;;  %v352_v45 = vadd.f32 %v350_v60, %v283_v22  ;;  %v357_v44 = vadd.f32 %v355_v63, %v288_v52  ;;  %v476_v40 = vpop.permute.xlu1 %475 }
 0x12c   : > { %s4119_s26 = sld [smem:[#allocation8 + $0xb7]]  ;;  %v375_v38 = vadd.f32 %v373_v7, %v306_v50  ;;  %v376_v29 = vadd.f32 %v374_v16, %v307_v49  ;;  %v381_v37 = vadd.f32 %v379_v17, %v312_v24  ;;  %v411_v50 = vsel %vm275_vm3, %v409_v20, %v407_v53 }
 0x12d   : > { %6957 = sst [smem:[#allocation126_spill]] %s4125_s19  ;;  %v477_v49 = vsel %vm275_vm3, %v474_v39, %v476_v40 }
 0x12e   : > { %6961 = sst [smem:[#allocation127_spill]] %s4131_s10  ;;  %v480_v7 = vsel %vm4252_vm2, %v477_v49, 0.0 }
 0x12f   : > { %s4142_s21 = sld [smem:[#allocation8 + $0xc]] }
 0x130   : > { %s4148_s27 = sld [smem:[#allocation8 + $0x30]] }
 0x131   : > { %s6969_s10 = sld [smem:[#allocation93_spill]] }
 0x132   : > { %6952 = sst [smem:[#allocation125_spill]] %s4119_s26 }
 0x133   : > { %s6970_s19 = sld [smem:[#allocation94_spill]] }
 0x134   : > { %s4154_s2 = sld [smem:[#allocation8 + $0x54]] }
 0x135   : > { %s4160_s28 = sld [smem:[#allocation8 + $0x78]] }
 0x136   : > { %s4171_s16 = sld [smem:[#allocation8 + $0x9c]] }
 0x137   : > { %s4177_s6 = sld [smem:[#allocation8 + $0xc0]] }
 0x138   : > { %s4183_s0 = sld [smem:[#allocation8 + $0xe4]] }
 0x139   : > { %s4189_s26 = sld [smem:[#allocation8 + $0x108]] }
 0x13a   : > { %6973 = sst [smem:[#allocation93_spill]] %s4154_s2 }
 0x13b   : > { %s6990_s22 = sld [smem:[#allocation114_spill]] }
 0x13c   : > { %6980 = sst [smem:[#allocation94_spill]] %s4171_s16 }
 0x13d   : > { %6981 = sst [smem:[#allocation128_spill]] %s4177_s6 }
 0x13e   : > { %6986 = sst [smem:[#allocation129_spill]] %s4183_s0 }
 0x13f   : > { %6989 = sst [smem:[#allocation130_spill]] %s4189_s26 }
 0x140   : > { %s6991_s30 = sld [smem:[#allocation115_spill]] }
 0x141   : > { %s4199_s14 = sld [smem:[#allocation8 + $0x15]] }
 0x142   : > { %s4205_s7 = sld [smem:[#allocation8 + $0x39]] }
 0x143   : > { %s6994_s29 = sld [smem:[#allocation117_spill]] }
 0x144   : > { %s6995_s11 = sld [smem:[#allocation118_spill]] }
 0x145   : > { %s6996_s13 = sld [smem:[#allocation119_spill]] }
 0x146   : > { %s6997_s17 = sld [smem:[#allocation120_spill]] }
 0x147   : > { %6992 = sst [smem:[#allocation114_spill]] %s4199_s14 }
 0x148   : > { %6993 = sst [smem:[#allocation115_spill]] %s4205_s7 }
 0x149   : > { %s4211_s12 = sld [smem:[#allocation8 + $0x5d]] }
 0x14a   : > { %s6999_s20 = sld [smem:[#allocation121_spill]] }
 0x14b   : > { %s7000_s3 = sld [smem:[#allocation122_spill]] }
 0x14c   : > { %s7001_s9 = sld [smem:[#allocation123_spill]] }
 0x14d   : > { %s4217_s24 = sld [smem:[#allocation8 + $0x81]] }
 0x14e   : > { %s7003_s5 = sld [smem:[#allocation124_spill]] }
 0x14f   : > { %6998 = sst [smem:[#allocation117_spill]] %s4211_s12  ;;  %s7021_s12 = smov 111  }
 0x150   : > { %s7004_s4 = sld [smem:[#allocation125_spill]]  ;;  %2512 = vrot.lane.b32.xlu1 %v3822_v11, %s7021_s12  ;;  %2510 = vrot.lane.b32.xlu0 %v3825_v12, %s7021_s12  ;;  %v367_v11 = vmul.f32 %v366_v19, %v345_v61  ;;  %v368_v12 = vmul.f32 %v366_v19, %v346_v54  ;;  %v391_v19 = vmul.f32 %v390_v23, %v345_v61 }
 0x151   : > { %s7005_s18 = sld [smem:[#allocation126_spill]]  ;;  %v289_v61 = vmul.f32 %v287_v25, %v279_v2  ;;  %v294_v23 = vmul.f32 %v293_v26, %v278_v0  ;;  %v295_v54 = vmul.f32 %v293_v26, %v279_v2  ;;  %v318_v25 = vmul.f32 %v317_v30, %v278_v0 }
 0x152   : > { %s7006_s1 = sld [smem:[#allocation127_spill]]  ;;  %v325_v26 = vmul.f32 %v323_v31, %v279_v2  ;;  %v369_v41 = vadd.f32 %v367_v11, %v300_v51  ;;  %v393_v52 = vadd.f32 %v391_v19, %v324_v47  ;;  %v410_v51 = vsel %vm275_vm3, %v407_v53, %v409_v20 }
 0x153   : > { %7002 = sst [smem:[#allocation118_spill]] %s4217_s24  ;;  %v363_v43 = vadd.f32 %v361_v10, %v294_v23  ;;  %v364_v42 = vadd.f32 %v362_v9, %v295_v54  ;;  %v387_v0 = vadd.f32 %v385_v18, %v318_v25  ;;  %v413_v47 = vsel %vm4252_vm2, %v410_v51, 0.0 }
 0x154   : > { %s4232_s8 = sld [smem:[#allocation8 + $0xa5]]  ;;  %2568 = vrot.lane.b32.xlu1 %v3839_v14, %s7021_s12  ;;  %2566 = vrot.lane.b32.xlu0 %v3842_v15, %s7021_s12  ;;  %v301_v14 = vmul.f32 %v299_v27, %v279_v2  ;;  %v319_v15 = vmul.f32 %v317_v30, %v279_v2  ;;  %v358_v27 = vadd.f32 %v356_v3, %v289_v61 }
 0x155   : > { %v382_v30 = vadd.f32 %v380_v6, %v313_v48  ;;  %v394_v2 = vadd.f32 %v392_v59, %v325_v26  ;;  %v478_v48 = vsel %vm275_vm3, %v476_v40, %v474_v39  ;;  %v417_v6 = vmul.f32 %v415_v32, %v413_v47  ;;  %s7036_s15 = sld [smem:[#allocation47_spill]]  ;;  %v532_v26 = vpop.permute.xlu1 %531 }
 0x156   : > { %v370_v28 = vadd.f32 %v368_v12, %v301_v14  ;;  %v388_v31 = vadd.f32 %v386_v56, %v319_v15  ;;  %v412_v56 = vsel %vm4263_vm4, %v411_v50, 0.0  ;;  %v479_v59 = vsel %vm4263_vm4, %v478_v48, 0.0  ;;  %s7037_s2 = sld [smem:[#allocation48_spill]] }
 0x157   : > { %v416_v53 = vmul.f32 %v415_v32, %v412_v56  ;;  %v422_v39 = vmul.f32 %v421_v33, %v412_v56  ;;  %v423_v40 = vmul.f32 %v421_v33, %v413_v47  ;;  %v428_v55 = vmul.f32 %v427_v34, %v412_v56  ;;  %s7038_s16 = sld [smem:[#allocation49_spill]] }
 0x158   : > { %v429_v8 = vmul.f32 %v427_v34, %v413_v47  ;;  %v434_v60 = vmul.f32 %v433_v35, %v412_v56  ;;  %v435_v63 = vmul.f32 %v433_v35, %v413_v47  ;;  %v419_v3 = vadd.f32 %v417_v6, %v352_v45  ;;  %s7042_s0 = sld [smem:[#allocation50_spill]] }
 0x159   : > { %v418_v32 = vadd.f32 %v416_v53, %v351_v46  ;;  %v424_v10 = vadd.f32 %v422_v39, %v357_v44  ;;  %v425_v9 = vadd.f32 %v423_v40, %v358_v27  ;;  %v430_v11 = vadd.f32 %v428_v55, %v363_v43  ;;  %s7045_s7 = sld [smem:[#allocation51_spill]]  ;;  %v530_v27 = vpop.permute.xlu0 %529 }
 0x15a   : > { %7009 = sst [smem:[#allocation119_spill]] %s4232_s8  ;;  %v431_v12 = vadd.f32 %v429_v8, %v364_v42  ;;  %v436_v33 = vadd.f32 %v434_v60, %v369_v41  ;;  %v437_v16 = vadd.f32 %v435_v63, %v370_v28  ;;  %v440_v17 = vmul.f32 %v439_v36, %v412_v56 }
 0x15b   : > { %v441_v18 = vmul.f32 %v439_v36, %v413_v47  ;;  %v7039_v34 = vstv %s7036_s15  ;;  %s7047_s8 = sld [smem:[#allocation52_spill]] }
 0x15c   : > { %v446_v19 = vmul.f32 %v7039_v34, %v412_v56  ;;  %v7040_v20 = vmov %v7039_v34  ;;  %v7041_v22 = vstv %s7037_s2  ;;  %v442_v36 = vadd.f32 %v440_v17, %v375_v38  ;;  %s7048_s12 = sld [smem:[#allocation53_spill]] }
 0x15d   : > { %v447_v21 = vmul.f32 %v7040_v20, %v413_v47  ;;  %v452_v35 = vmul.f32 %v7041_v22, %v412_v56  ;;  %v7043_v61 = vmov %v7041_v22  ;;  %v7044_v44 = vstv %s7038_s16  ;;  %s7051_s14 = sld [smem:[#allocation54_spill]] }
 0x15e   : > { %v453_v45 = vmul.f32 %v7043_v61, %v413_v47  ;;  %v458_v43 = vmul.f32 %v7044_v44, %v412_v56  ;;  %v7046_v42 = vmov %v7044_v44  ;;  %v443_v46 = vadd.f32 %v441_v18, %v376_v29  ;;  %s7054_s24 = sld [smem:[#allocation55_spill]] }
 0x15f   : > { %v459_v41 = vmul.f32 %v7046_v42, %v413_v47  ;;  %v448_v23 = vadd.f32 %v446_v19, %v381_v37  ;;  %v449_v54 = vadd.f32 %v447_v21, %v382_v30  ;;  %v454_v14 = vadd.f32 %v452_v35, %v387_v0  ;;  %s7057_s26 = sld [smem:[#allocation56_spill]] }
 0x160   : > { %v455_v24 = vadd.f32 %v453_v45, %v388_v31  ;;  %v460_v25 = vadd.f32 %v458_v43, %v393_v52  ;;  %v7049_v28 = vstv %s7042_s0  ;;  %v7052_v48 = vstv %s7045_s7  ;;  %s7060_s6 = sld [smem:[#allocation57_spill]] }
 0x161   : > { %v461_v15 = vadd.f32 %v459_v41, %v394_v2  ;;  %v483_v51 = vmul.f32 %v7049_v28, %v479_v59  ;;  %v7050_v50 = vmov %v7049_v28  ;;  %v489_v56 = vmul.f32 %v7052_v48, %v479_v59  ;;  %s7069_s15 = sld [smem:[#allocation58_spill]] }
 0x162   : > { %v484_v49 = vmul.f32 %v7050_v50, %v480_v7  ;;  %v7053_v38 = vmov %v7052_v48  ;;  %v7055_v47 = vstv %s7047_s8  ;;  %v7058_v31 = vstv %s7048_s12  ;;  %s7070_s2 = sld [smem:[#allocation59_spill]] }
 0x163   : > { %v490_v29 = vmul.f32 %v7053_v38, %v480_v7  ;;  %v495_v37 = vmul.f32 %v7055_v47, %v479_v59  ;;  %v7056_v30 = vmov %v7055_v47  ;;  %v501_v52 = vmul.f32 %v7058_v31, %v479_v59  ;;  %s7071_s16 = sld [smem:[#allocation60_spill]] }
 0x164   : > { %v496_v0 = vmul.f32 %v7056_v30, %v480_v7  ;;  %v7059_v2 = vmov %v7058_v31  ;;  %v485_v6 = vadd.f32 %v483_v51, %v418_v32  ;;  %v486_v39 = vadd.f32 %v484_v49, %v419_v3  ;;  %s7072_s0 = sld [smem:[#allocation61_spill]] }
 0x165   : > { %v502_v53 = vmul.f32 %v7059_v2, %v480_v7  ;;  %v491_v40 = vadd.f32 %v489_v56, %v424_v10  ;;  %v492_v55 = vadd.f32 %v490_v29, %v425_v9  ;;  %v497_v8 = vadd.f32 %v495_v37, %v430_v11  ;;  %v589_v11 = vpop.permute.xlu1 %588  ;;  %s7075_s7 = sld [smem:[#allocation62_spill]] }
 0x166   : > { %v498_v60 = vadd.f32 %v496_v0, %v431_v12  ;;  %v503_v63 = vadd.f32 %v501_v52, %v436_v33  ;;  %v7061_v18 = vstv %s7051_s14  ;;  %v7063_v21 = vstv %s7054_s24  ;;  %v587_v12 = vpop.permute.xlu0 %586  ;;  %s7078_s8 = sld [smem:[#allocation63_spill]] }
 0x167   : > { %v504_v17 = vadd.f32 %v502_v53, %v437_v16  ;;  %v507_v34 = vmul.f32 %v7061_v18, %v479_v59  ;;  %v7062_v19 = vmov %v7061_v18  ;;  %v513_v22 = vmul.f32 %v7063_v21, %v479_v59  ;;  %s7081_s12 = sld [smem:[#allocation64_spill]] }
 0x168   : > { %v508_v20 = vmul.f32 %v7062_v19, %v480_v7  ;;  %v7064_v35 = vmov %v7063_v21  ;;  %v7065_v45 = vstv %s7057_s26  ;;  %v7067_v32 = vstv %s7060_s6  ;;  %s7083_s14 = sld [smem:[#allocation65_spill]] }
 0x169   : > { %v514_v61 = vmul.f32 %v7064_v35, %v480_v7  ;;  %v519_v44 = vmul.f32 %v7065_v45, %v479_v59  ;;  %v7066_v43 = vmov %v7065_v45  ;;  %v525_v3 = vmul.f32 %v7067_v32, %v479_v59  ;;  %s7088_s24 = sld [smem:[#allocation66_spill]] }
 0x16a   : > { %v520_v42 = vmul.f32 %v7066_v43, %v480_v7  ;;  %v7068_v10 = vmov %v7067_v32  ;;  %v509_v33 = vadd.f32 %v507_v34, %v442_v36  ;;  %v510_v16 = vadd.f32 %v508_v20, %v443_v46  ;;  %s7090_s26 = sld [smem:[#allocation67_spill]] }
 0x16b   : > { %v526_v9 = vmul.f32 %v7068_v10, %v480_v7  ;;  %v515_v41 = vadd.f32 %v513_v22, %v448_v23  ;;  %v516_v28 = vadd.f32 %v514_v61, %v449_v54  ;;  %v521_v51 = vadd.f32 %v519_v44, %v454_v14  ;;  %s7094_s6 = sld [smem:[#allocation68_spill]] }
 0x16c   : > { %v522_v50 = vadd.f32 %v520_v42, %v455_v24  ;;  %v527_v49 = vadd.f32 %v525_v3, %v460_v25  ;;  %v534_v59 = vsel %vm533_vm5, %v530_v27, %v532_v26  ;;  %v535_v7 = vsel %vm533_vm5, %v532_v26, %v530_v27 }
 0x16d   : > { %v528_v48 = vadd.f32 %v526_v9, %v461_v15  ;;  %v4450_v36 = vsel %vm533_vm5, %v587_v12, %v589_v11  ;;  %v591_v46 = vsel %vm533_vm5, %v589_v11, %v587_v12  ;;  %v536_v23 = vsel %vm246_vm0, %v535_v7, 0.0 }
 0x16e   : > { %v7073_v54 = vstv %s7069_s15  ;;  %v7074_v24 = vstv %s7070_s2  ;;  %v7076_v15 = vstv %s7071_s16  ;;  %v7082_v30 = vstv %s7072_s0  ;;  %s7096_s15 = sld [smem:[#allocation69_spill]] }
 0x16f   : > { %v541_v14 = vmul.f32 %v7073_v54, %v534_v59  ;;  %v547_v25 = vmul.f32 %v7074_v24, %v534_v59  ;;  %v553_v56 = vmul.f32 %v7076_v15, %v534_v59  ;;  %v7077_v38 = vmov %v7073_v54  ;;  %s7101_s2 = sld [smem:[#allocation70_spill]] }
 0x170   : > { %v540_v26 = vmul.f32 %v7077_v38, %v536_v23  ;;  %v7079_v27 = vmov %v7074_v24  ;;  %v7080_v47 = vmov %v7076_v15  ;;  %v558_v0 = vmul.f32 %v7082_v30, %v536_v23  ;;  %s7104_s16 = sld [smem:[#allocation71_spill]] }
 0x171   : > { %v546_v29 = vmul.f32 %v7079_v27, %v536_v23  ;;  %v552_v37 = vmul.f32 %v7080_v47, %v536_v23  ;;  %v543_v31 = vadd.f32 %v541_v14, %v486_v39  ;;  %v549_v52 = vadd.f32 %v547_v25, %v492_v55  ;;  %s7105_s0 = sld [smem:[#allocation72_spill]] }
 0x172   : > { %v555_v2 = vadd.f32 %v553_v56, %v498_v60  ;;  %v7084_v53 = vmov %v7082_v30  ;;  %v542_v34 = vadd.f32 %v540_v26, %v485_v6  ;;  %v560_v21 = vadd.f32 %v558_v0, %v503_v63  ;;  %v643_v30 = vpop.permute.xlu0 %642 }
 0x173   : > { %v559_v18 = vmul.f32 %v7084_v53, %v534_v59  ;;  %v548_v19 = vadd.f32 %v546_v29, %v491_v40  ;;  %v554_v20 = vadd.f32 %v552_v37, %v497_v8  ;;  %v7085_v35 = vstv %s7075_s7  ;;  %v645_v37 = vpop.permute.xlu1 %644  ;;  %s7108_s7 = sld [smem:[#allocation73_spill]] }
 0x174   : > { %v564_v61 = vmul.f32 %v7085_v35, %v536_v23  ;;  %v7086_v45 = vmov %v7085_v35  ;;  %v7087_v43 = vstv %s7078_s8  ;;  %v7091_v55 = vstv %s7081_s12  ;;  %s7115_s8 = sld [smem:[#allocation74_spill]] }
 0x175   : > { %v561_v22 = vadd.f32 %v559_v18, %v504_v17  ;;  %v565_v44 = vmul.f32 %v7086_v45, %v534_v59  ;;  %v570_v42 = vmul.f32 %v7087_v43, %v536_v23  ;;  %v7089_v32 = vmov %v7087_v43  ;;  %s7117_s12 = sld [smem:[#allocation75_spill]] }
 0x176   : > { %v571_v39 = vmul.f32 %v7089_v32, %v534_v59  ;;  %v576_v60 = vmul.f32 %v7091_v55, %v536_v23  ;;  %v7092_v3 = vmov %v7091_v55  ;;  %v7093_v40 = vstv %s7083_s14  ;;  %s7119_s14 = sld [smem:[#allocation76_spill]] }
 0x177   : > { %v577_v6 = vmul.f32 %v7092_v3, %v534_v59  ;;  %v582_v8 = vmul.f32 %v7093_v40, %v536_v23  ;;  %v566_v63 = vadd.f32 %v564_v61, %v509_v33  ;;  %v567_v17 = vadd.f32 %v565_v44, %v510_v16 }
 0x178   : > { %v572_v10 = vadd.f32 %v570_v42, %v515_v41  ;;  %v7095_v9 = vmov %v7093_v40  ;;  %v573_v12 = vadd.f32 %v571_v39, %v516_v28  ;;  %v578_v7 = vadd.f32 %v576_v60, %v521_v51 }
 0x179   : > { %v583_v11 = vmul.f32 %v7095_v9, %v534_v59  ;;  %v579_v54 = vadd.f32 %v577_v6, %v522_v50  ;;  %v584_v14 = vadd.f32 %v582_v8, %v527_v49  ;;  %v592_v25 = vsel %vm246_vm0, %v591_v46, 0.0 }
 0x17a   : > { %v7097_v15 = vstv %s7088_s24  ;;  %v7098_v23 = vstv %s7090_s26  ;;  %v7102_v26 = vstv %s7094_s6  ;;  %v7106_v46 = vstv %s7096_s15  ;;  %s7120_s24 = sld [smem:[#allocation77_spill]] }
 0x17b   : > { %v585_v24 = vadd.f32 %v583_v11, %v528_v48  ;;  %v597_v56 = vmul.f32 %v7097_v15, %v4450_v36  ;;  %v603_v33 = vmul.f32 %v7098_v23, %v4450_v36  ;;  %v7099_v16 = vmov %v7097_v15  ;;  %s7123_s26 = sld [smem:[#allocation78_spill]] }
 0x17c   : > { %v596_v41 = vmul.f32 %v7099_v16, %v592_v25  ;;  %v7100_v38 = vmov %v7098_v23  ;;  %v608_v28 = vmul.f32 %v7102_v26, %v592_v25  ;;  %v7103_v51 = vmov %v7102_v26  ;;  %v699_v23 = vpop.permute.xlu0 %698  ;;  %s7126_s6 = sld [smem:[#allocation79_spill]] }
 0x17d   : > { %v602_v59 = vmul.f32 %v7100_v38, %v592_v25  ;;  %v609_v50 = vmul.f32 %v7103_v51, %v4450_v36  ;;  %v599_v49 = vadd.f32 %v597_v56, %v543_v31  ;;  %v605_v48 = vadd.f32 %v603_v33, %v549_v52  ;;  %s7130_s15 = sld [smem:[#allocation80_spill]] }
 0x17e   : > { %v614_v27 = vmul.f32 %v7106_v46, %v592_v25  ;;  %v7107_v29 = vmov %v7106_v46  ;;  %v598_v0 = vadd.f32 %v596_v41, %v542_v34  ;;  %v610_v18 = vadd.f32 %v608_v28, %v554_v20 }
 0x17f   : > { %v615_v47 = vmul.f32 %v7107_v29, %v4450_v36  ;;  %v604_v53 = vadd.f32 %v602_v59, %v548_v19  ;;  %v611_v35 = vadd.f32 %v609_v50, %v555_v2  ;;  %v7109_v44 = vstv %s7101_s2  ;;  %s7131_s2 = sld [smem:[#allocation81_spill]] }
 0x180   : > { %v616_v61 = vadd.f32 %v614_v27, %v560_v21  ;;  %v620_v31 = vmul.f32 %v7109_v44, %v592_v25  ;;  %v7110_v52 = vmov %v7109_v44  ;;  %v7111_v42 = vstv %s7104_s16  ;;  %s7143_s16 = sld [smem:[#allocation82_spill]] }
 0x181   : > { %v617_v45 = vadd.f32 %v615_v47, %v561_v22  ;;  %v621_v43 = vmul.f32 %v7110_v52, %v4450_v36  ;;  %v626_v32 = vmul.f32 %v7111_v42, %v592_v25  ;;  %v7112_v39 = vmov %v7111_v42 }
 0x182   : > { %v627_v55 = vmul.f32 %v7112_v39, %v4450_v36  ;;  %v7113_v60 = vstv %s7105_s0  ;;  %v622_v19 = vadd.f32 %v620_v31, %v566_v63  ;;  %v7116_v20 = vstv %s7108_s7  ;;  %s7144_s0 = sld [smem:[#allocation83_spill]] }
 0x183   : > { %v632_v3 = vmul.f32 %v7113_v60, %v592_v25  ;;  %v7114_v6 = vmov %v7113_v60  ;;  %v623_v2 = vadd.f32 %v621_v43, %v567_v17  ;;  %v638_v21 = vmul.f32 %v7116_v20, %v592_v25  ;;  %s7145_s7 = sld [smem:[#allocation84_spill]] }
 0x184   : > { %v633_v34 = vmul.f32 %v7114_v6, %v4450_v36  ;;  %v7118_v22 = vmov %v7116_v20  ;;  %v628_v8 = vadd.f32 %v626_v32, %v572_v10  ;;  %v629_v9 = vadd.f32 %v627_v55, %v573_v12 }
 0x185   : > { %v639_v40 = vmul.f32 %v7118_v22, %v4450_v36  ;;  %v634_v11 = vadd.f32 %v632_v3, %v578_v7  ;;  %v640_v63 = vadd.f32 %v638_v21, %v584_v14  ;;  %v646_v17 = vsel %vm533_vm5, %v643_v30, %v645_v37  ;;  %v701_v36 = vpop.permute.xlu1 %700  ;;  %v757_v21 = vpop.permute.xlu0 %756 }
 0x186   : > { %v635_v15 = vadd.f32 %v633_v34, %v579_v54  ;;  %v647_v25 = vsel %vm533_vm5, %v645_v37, %v643_v30  ;;  %v7121_v10 = vstv %s7115_s8  ;;  %v7122_v12 = vstv %s7117_s12  ;;  %s7150_s8 = sld [smem:[#allocation85_spill]] }
 0x187   : > { %v641_v56 = vadd.f32 %v639_v40, %v585_v24  ;;  %v648_v33 = vsel %vm246_vm0, %v647_v25, 0.0  ;;  %v653_v16 = vmul.f32 %v7121_v10, %v646_v17  ;;  %v659_v7 = vmul.f32 %v7122_v12, %v646_v17  ;;  %s7153_s12 = sld [smem:[#allocation86_spill]] }
 0x188   : > { %v7124_v54 = vstv %s7119_s14  ;;  %v7125_v24 = vmov %v7121_v10  ;;  %v7127_v38 = vmov %v7122_v12  ;;  %v7129_v51 = vstv %s7120_s24  ;;  %s7156_s14 = sld [smem:[#allocation87_spill]] }
 0x189   : > { %v665_v14 = vmul.f32 %v7124_v54, %v646_v17  ;;  %v652_v41 = vmul.f32 %v7125_v24, %v648_v33  ;;  %v658_v59 = vmul.f32 %v7127_v38, %v648_v33  ;;  %v7128_v26 = vmov %v7124_v54  ;;  %v759_v20 = vpop.permute.xlu1 %758  ;;  %s7159_s24 = sld [smem:[#allocation88_spill]] }
 0x18a   : > { %v664_v28 = vmul.f32 %v7128_v26, %v648_v33  ;;  %v670_v50 = vmul.f32 %v7129_v51, %v648_v33  ;;  %v655_v46 = vadd.f32 %v653_v16, %v599_v49  ;;  %v661_v27 = vadd.f32 %v659_v7, %v605_v48 }
 0x18b   : > { %v667_v29 = vadd.f32 %v665_v14, %v611_v35  ;;  %v7132_v47 = vmov %v7129_v51  ;;  %v654_v30 = vadd.f32 %v652_v41, %v598_v0  ;;  %v660_v44 = vadd.f32 %v658_v59, %v604_v53 }
 0x18c   : > { %v671_v37 = vmul.f32 %v7132_v47, %v646_v17  ;;  %v666_v31 = vadd.f32 %v664_v28, %v610_v18  ;;  %v672_v52 = vadd.f32 %v670_v50, %v616_v61  ;;  %v7133_v42 = vstv %s7123_s26  ;;  %s7161_s26 = sld [smem:[#allocation89_spill]] }
 0x18d   : > { %v676_v32 = vmul.f32 %v7133_v42, %v648_v33  ;;  %v7134_v39 = vmov %v7133_v42  ;;  %v7135_v60 = vstv %s7126_s6  ;;  %v7136_v6 = vand.u32 15, %v4138_v13  ;;  %s7170_s6 = sld [smem:[#allocation90_spill]] }
 0x18e   : > { %v673_v43 = vadd.f32 %v671_v37, %v617_v45  ;;  %v677_v55 = vmul.f32 %v7134_v39, %v646_v17  ;;  %v682_v3 = vmul.f32 %v7135_v60, %v648_v33  ;;  %v7139_v48 = vmov %v7135_v60 }
 0x18f   : > { %vm4561_vm7 = vcmp.le.s32.totalorder %v7136_v6, 14  ;;  %v683_v35 = vmul.f32 %v7139_v48, %v646_v17  ;;  %v7140_v0 = vstv %s7130_s15  ;;  %v7142_v61 = vstv %s7131_s2  ;;  %s7171_s15 = sld [smem:[#allocation91_spill]] }
 0x190   : > { %v688_v53 = vmul.f32 %v7140_v0, %v648_v33  ;;  %v7141_v18 = vmov %v7140_v0  ;;  %v694_v45 = vmul.f32 %v7142_v61, %v648_v33  ;;  %v678_v22 = vadd.f32 %v676_v32, %v622_v19  ;;  %s7172_s2 = sld [smem:[#allocation92_spill]]  ;;  %vm4625_vm9 = vmand %vm246_vm0, %vm4561_vm7 }
 0x191   : > { %v689_v34 = vmul.f32 %v7141_v18, %v646_v17  ;;  %v679_v40 = vadd.f32 %v677_v55, %v623_v2  ;;  %v684_v25 = vadd.f32 %v682_v3, %v628_v8  ;;  %v7146_v10 = vmov %v7142_v61 }
 0x192   : > { %v695_v16 = vmul.f32 %v7146_v10, %v646_v17  ;;  %v7147_v12 = vand.u32 15, %v4167_v58  ;;  %v685_v33 = vadd.f32 %v683_v35, %v629_v9  ;;  %v690_v54 = vadd.f32 %v688_v53, %v634_v11 }
 0x193   : > { %v691_v14 = vadd.f32 %v689_v34, %v635_v15  ;;  %v696_v24 = vadd.f32 %v694_v45, %v640_v63  ;;  %v702_v2 = vsel %vm533_vm5, %v699_v23, %v701_v36  ;;  %v703_v8 = vsel %vm533_vm5, %v701_v36, %v699_v23 }
 0x194   : > { %vm4577_vm8 = vcmp.le.s32.totalorder %v7147_v12, 14  ;;  %v697_v19 = vadd.f32 %v695_v16, %v641_v56  ;;  %v761_v17 = vsel %vm760_vm6, %v757_v21, %v759_v20  ;;  %v704_v41 = vsel %vm246_vm0, %v703_v8, 0.0 }
 0x195   : > { %v7151_v38 = vstv %s7143_s16  ;;  %v7152_v9 = vstv %s7144_s0  ;;  %v7154_v15 = vstv %s7145_s7  ;;  %v7160_v50 = vstv %s7150_s8  ;;  %s7180_s16 = sld [smem:[#allocation95_spill]]  ;;  %vm6068_vm0 = vmand %vm249_vm12, %vm4577_vm8 }
 0x196   : > { %v709_v59 = vmul.f32 %v7151_v38, %v702_v2  ;;  %v715_v11 = vmul.f32 %v7152_v9, %v702_v2  ;;  %v721_v63 = vmul.f32 %v7154_v15, %v702_v2  ;;  %v7155_v56 = vmov %v7151_v38  ;;  %s7183_s0 = sld [smem:[#allocation96_spill]] }
 0x197   : > { %v708_v26 = vmul.f32 %v7155_v56, %v704_v41  ;;  %v7157_v28 = vmov %v7152_v9  ;;  %v7158_v23 = vmov %v7154_v15  ;;  %v726_v47 = vmul.f32 %v7160_v50, %v704_v41  ;;  %s7185_s7 = sld [smem:[#allocation97_spill]] }
 0x198   : > { %v714_v36 = vmul.f32 %v7157_v28, %v704_v41  ;;  %v720_v51 = vmul.f32 %v7158_v23, %v704_v41  ;;  %v711_v37 = vadd.f32 %v709_v59, %v655_v46  ;;  %v717_v42 = vadd.f32 %v715_v11, %v661_v27  ;;  %s7195_s8 = sld [smem:[#allocation99_spill]] }
 0x199   : > { %v723_v32 = vadd.f32 %v721_v63, %v667_v29  ;;  %v7162_v39 = vmov %v7160_v50  ;;  %v710_v60 = vadd.f32 %v708_v26, %v654_v30  ;;  %v728_v48 = vadd.f32 %v726_v47, %v672_v52  ;;  %v816_v30 = vpop.permute.xlu1 %815 }
 0x19a   : > { %v727_v55 = vmul.f32 %v7162_v39, %v702_v2  ;;  %v716_v3 = vadd.f32 %v714_v36, %v660_v44  ;;  %v722_v6 = vadd.f32 %v720_v51, %v666_v31  ;;  %v7163_v0 = vstv %s7153_s12  ;;  %v814_v44 = vpop.permute.xlu0 %813  ;;  %s7196_s12 = sld [smem:[#allocation100_spill]] }
 0x19b   : > { %v732_v53 = vmul.f32 %v7163_v0, %v704_v41  ;;  %v7164_v18 = vmov %v7163_v0  ;;  %v7165_v61 = vstv %s7156_s14  ;;  %v7167_v12 = vstv %s7159_s24  ;;  %s7201_s14 = sld [smem:[#allocation102_spill]] }
 0x19c   : > { %v729_v35 = vadd.f32 %v727_v55, %v673_v43  ;;  %v733_v34 = vmul.f32 %v7164_v18, %v702_v2  ;;  %v738_v45 = vmul.f32 %v7165_v61, %v704_v41  ;;  %v7166_v10 = vmov %v7165_v61  ;;  %s7204_s24 = sld [smem:[#allocation103_spill]] }
 0x19d   : > { %v739_v16 = vmul.f32 %v7166_v10, %v702_v2  ;;  %v744_v46 = vmul.f32 %v7167_v12, %v704_v41  ;;  %v7168_v27 = vmov %v7167_v12  ;;  %v7169_v8 = vstv %s7161_s26  ;;  %s7207_s26 = sld [smem:[#allocation104_spill]] }
 0x19e   : > { %v745_v29 = vmul.f32 %v7168_v27, %v702_v2  ;;  %v750_v38 = vmul.f32 %v7169_v8, %v704_v41  ;;  %v734_v31 = vadd.f32 %v732_v53, %v678_v22  ;;  %v735_v52 = vadd.f32 %v733_v34, %v679_v40 }
 0x19f   : > { %v740_v43 = vadd.f32 %v738_v45, %v684_v25  ;;  %v7173_v59 = vmov %v7169_v8  ;;  %v741_v41 = vadd.f32 %v739_v16, %v685_v33  ;;  %v746_v15 = vadd.f32 %v744_v46, %v690_v54 }
 0x1a0   : > { %v751_v9 = vmul.f32 %v7173_v59, %v702_v2  ;;  %v747_v22 = vadd.f32 %v745_v29, %v691_v14  ;;  %v752_v63 = vadd.f32 %v750_v38, %v696_v24  ;;  %v762_v25 = vsel %vm760_vm6, %v759_v20, %v757_v21 }
 0x1a1   : > { %v764_v2 = vsel %vm4577_vm8, %v761_v17, 0.0  ;;  %v817_v56 = vsel %vm760_vm6, %v814_v44, %v816_v30  ;;  %v763_v26 = vsel %vm4625_vm9, %v762_v25, 0.0  ;;  %v7176_v28 = vstv %s7170_s6  ;;  %s7209_s6 = sld [smem:[#allocation105_spill]] }
 0x1a2   : > { %v753_v40 = vadd.f32 %v751_v9, %v697_v19  ;;  %v768_v36 = vmul.f32 %v7176_v28, %v764_v2  ;;  %v7177_v33 = vstv %s7171_s15  ;;  %v7178_v14 = vstv %s7172_s2  ;;  %s7218_s15 = sld [smem:[#allocation106_spill]] }
 0x1a3   : > { %v774_v54 = vmul.f32 %v7177_v33, %v764_v2  ;;  %v780_v24 = vmul.f32 %v7178_v14, %v764_v2  ;;  %v7179_v19 = vmov %v7176_v28  ;;  %v7181_v21 = vmov %v7177_v33  ;;  %s7219_s2 = sld [smem:[#allocation107_spill]] }
 0x1a4   : > { %v767_v20 = vmul.f32 %v7179_v19, %v763_v26  ;;  %v773_v17 = vmul.f32 %v7181_v21, %v763_v26  ;;  %v7182_v23 = vmov %v7178_v14  ;;  %v7184_v50 = vstv %s6969_s10  ;;  %s7194_s10 = sld [smem:[#allocation98_spill]] }
 0x1a5   : > { %v779_v51 = vmul.f32 %v7182_v23, %v763_v26  ;;  %v785_v47 = vmul.f32 %v7184_v50, %v763_v26  ;;  %v770_v39 = vadd.f32 %v768_v36, %v711_v37  ;;  %v776_v55 = vadd.f32 %v774_v54, %v717_v42 }
 0x1a6   : > { %v782_v0 = vadd.f32 %v780_v24, %v723_v32  ;;  %v7186_v53 = vmov %v7184_v50  ;;  %v769_v34 = vadd.f32 %v767_v20, %v710_v60  ;;  %v775_v61 = vadd.f32 %v773_v17, %v716_v3  ;;  %v872_v60 = vpop.permute.xlu1 %871  ;;  %v870_v3 = vpop.permute.xlu0 %869 }
 0x1a7   : > { %v786_v18 = vmul.f32 %v7186_v53, %v764_v2  ;;  %v781_v45 = vadd.f32 %v779_v51, %v722_v6  ;;  %v787_v10 = vadd.f32 %v785_v47, %v728_v48  ;;  %v7187_v12 = vstv %s6970_s19  ;;  %s7198_s19 = sld [smem:[#allocation101_spill]] }
 0x1a8   : > { %v791_v46 = vmul.f32 %v7187_v12, %v763_v26  ;;  %v7188_v27 = vmov %v7187_v12  ;;  %v7189_v8 = vstv %s7180_s16  ;;  %v7191_v25 = vstv %s7183_s0  ;;  %s7220_s16 = sld [smem:[#allocation108_spill]] }
 0x1a9   : > { %v788_v16 = vadd.f32 %v786_v18, %v729_v35  ;;  %v792_v29 = vmul.f32 %v7188_v27, %v764_v2  ;;  %v797_v38 = vmul.f32 %v7189_v8, %v763_v26  ;;  %v7190_v59 = vmov %v7189_v8  ;;  %s7222_s0 = sld [smem:[#allocation109_spill]] }
 0x1aa   : > { %v798_v9 = vmul.f32 %v7190_v59, %v764_v2  ;;  %v803_v37 = vmul.f32 %v7191_v25, %v763_v26  ;;  %v7192_v42 = vmov %v7191_v25  ;;  %v7193_v28 = vstv %s7185_s7  ;;  %s7225_s7 = sld [smem:[#allocation110_spill]] }
 0x1ab   : > { %v804_v32 = vmul.f32 %v7192_v42, %v764_v2  ;;  %v809_v36 = vmul.f32 %v7193_v28, %v763_v26  ;;  %v793_v6 = vadd.f32 %v791_v46, %v734_v31  ;;  %v794_v48 = vadd.f32 %v792_v29, %v735_v52 }
 0x1ac   : > { %v799_v35 = vadd.f32 %v797_v38, %v740_v43  ;;  %v7197_v33 = vmov %v7193_v28  ;;  %v800_v14 = vadd.f32 %v798_v9, %v741_v41  ;;  %v805_v24 = vadd.f32 %v803_v37, %v746_v15 }
 0x1ad   : > { %v810_v54 = vmul.f32 %v7197_v33, %v764_v2  ;;  %v806_v19 = vadd.f32 %v804_v32, %v747_v22  ;;  %v811_v20 = vadd.f32 %v809_v36, %v752_v63  ;;  %v818_v21 = vsel %vm760_vm6, %v816_v30, %v814_v44 }
 0x1ae   : > { %v820_v31 = vsel %vm4577_vm8, %v817_v56, 0.0  ;;  %v873_v52 = vsel %vm760_vm6, %v870_v3, %v872_v60  ;;  %v819_v43 = vsel %vm4625_vm9, %v818_v21, 0.0  ;;  %v7199_v2 = vstv %s7194_s10  ;;  %s7230_s10 = sld [smem:[#allocation111_spill]] }
 0x1af   : > { %v812_v26 = vadd.f32 %v810_v54, %v753_v40  ;;  %v824_v17 = vmul.f32 %v7199_v2, %v820_v31  ;;  %v7200_v41 = vstv %s7195_s8  ;;  %v7202_v22 = vstv %s7196_s12  ;;  %s7232_s8 = sld [smem:[#allocation112_spill]] }
 0x1b0   : > { %v830_v15 = vmul.f32 %v7200_v41, %v820_v31  ;;  %v836_v63 = vmul.f32 %v7202_v22, %v820_v31  ;;  %v7203_v40 = vmov %v7199_v2  ;;  %v7205_v44 = vmov %v7200_v41  ;;  %s7241_s12 = sld [smem:[#allocation113_spill]] }
 0x1b1   : > { %v823_v30 = vmul.f32 %v7203_v40, %v819_v43  ;;  %v829_v56 = vmul.f32 %v7205_v44, %v819_v43  ;;  %v7206_v23 = vmov %v7202_v22  ;;  %v7208_v50 = vstv %s7198_s19  ;;  %s4887_s19 = sld [smem:[#allocation8 + $0xf6]] }
 0x1b2   : > { %v835_v51 = vmul.f32 %v7206_v23, %v819_v43  ;;  %v841_v47 = vmul.f32 %v7208_v50, %v819_v43  ;;  %v826_v53 = vadd.f32 %v824_v17, %v770_v39  ;;  %v832_v18 = vadd.f32 %v830_v15, %v776_v55 }
 0x1b3   : > { %v838_v12 = vadd.f32 %v836_v63, %v782_v0  ;;  %v7210_v46 = vmov %v7208_v50  ;;  %v825_v29 = vadd.f32 %v823_v30, %v769_v34  ;;  %v831_v8 = vadd.f32 %v829_v56, %v775_v61  ;;  %v928_v34 = vpop.permute.xlu1 %927  ;;  %v926_v61 = vpop.permute.xlu0 %925 }
 0x1b4   : > { %v842_v27 = vmul.f32 %v7210_v46, %v820_v31  ;;  %v837_v38 = vadd.f32 %v835_v51, %v781_v45  ;;  %v843_v59 = vadd.f32 %v841_v47, %v787_v10  ;;  %v7211_v25 = vstv %s7201_s14  ;;  %s7300_s14 = sld [smem:[#allocation118_spill]] }
 0x1b5   : > { %v847_v37 = vmul.f32 %v7211_v25, %v819_v43  ;;  %v7212_v42 = vmov %v7211_v25  ;;  %v7213_v28 = vstv %s7204_s24  ;;  %v7215_v21 = vstv %s7207_s26  ;;  %s4893_s24 = sld [smem:[#allocation8 + $0x11a]] }
 0x1b6   : > { %v844_v9 = vadd.f32 %v842_v27, %v788_v16  ;;  %v848_v32 = vmul.f32 %v7212_v42, %v820_v31  ;;  %v853_v36 = vmul.f32 %v7213_v28, %v819_v43  ;;  %v7214_v33 = vmov %v7213_v28  ;;  %s4901_s26 = sld [smem:[#allocation8 + $0x4]] }
 0x1b7   : > { %v854_v54 = vmul.f32 %v7214_v33, %v820_v31  ;;  %v859_v39 = vmul.f32 %v7215_v21, %v819_v43  ;;  %v7216_v55 = vmov %v7215_v21  ;;  %v7217_v2 = vstv %s7209_s6  ;;  %s4911_s6 = sld [smem:[#allocation8 + $0x28]] }
 0x1b8   : > { %v860_v0 = vmul.f32 %v7216_v55, %v820_v31  ;;  %v865_v17 = vmul.f32 %v7217_v2, %v819_v43  ;;  %v849_v45 = vadd.f32 %v847_v37, %v793_v6  ;;  %v850_v10 = vadd.f32 %v848_v32, %v794_v48 }
 0x1b9   : > { %v855_v16 = vadd.f32 %v853_v36, %v799_v35  ;;  %v7221_v41 = vmov %v7217_v2  ;;  %v856_v22 = vadd.f32 %v854_v54, %v800_v14  ;;  %v861_v63 = vadd.f32 %v859_v39, %v805_v24 }
 0x1ba   : > { %v866_v15 = vmul.f32 %v7221_v41, %v820_v31  ;;  %v862_v40 = vadd.f32 %v860_v0, %v806_v19  ;;  %v867_v43 = vadd.f32 %v865_v17, %v811_v20  ;;  %v874_v6 = vsel %vm760_vm6, %v872_v60, %v870_v3 }
 0x1bb   : > { %v876_v48 = vsel %vm4577_vm8, %v873_v52, 0.0  ;;  %v929_v35 = vsel %vm760_vm6, %v926_v61, %v928_v34  ;;  %v875_v31 = vsel %vm4625_vm9, %v874_v6, 0.0  ;;  %v7223_v44 = vstv %s7218_s15  ;;  %s7306_s15 = sld [smem:[#allocation119_spill]] }
 0x1bc   : > { %v868_v30 = vadd.f32 %v866_v15, %v812_v26  ;;  %v880_v56 = vmul.f32 %v7223_v44, %v876_v48  ;;  %v7224_v14 = vstv %s7219_s2  ;;  %v7226_v19 = vstv %s7220_s16  ;;  %s4921_s2 = sld [smem:[#allocation8 + $0x4c]] }
 0x1bd   : > { %v886_v24 = vmul.f32 %v7224_v14, %v876_v48  ;;  %v892_v20 = vmul.f32 %v7226_v19, %v876_v48  ;;  %v7227_v26 = vmov %v7223_v44  ;;  %v7228_v3 = vmov %v7224_v14  ;;  %s4931_s16 = sld [smem:[#allocation8 + $0x70]] }
 0x1be   : > { %v879_v60 = vmul.f32 %v7227_v26, %v875_v31  ;;  %v885_v52 = vmul.f32 %v7228_v3, %v875_v31  ;;  %v7229_v23 = vmov %v7226_v19  ;;  %v7231_v50 = vstv %s7222_s0  ;;  %s4941_s0 = sld [smem:[#allocation8 + $0x94]] }
 0x1bf   : > { %v891_v51 = vmul.f32 %v7229_v23, %v875_v31  ;;  %v897_v47 = vmul.f32 %v7231_v50, %v875_v31  ;;  %v882_v46 = vadd.f32 %v880_v56, %v826_v53  ;;  %v888_v27 = vadd.f32 %v886_v24, %v832_v18 }
 0x1c0   : > { %v894_v25 = vadd.f32 %v892_v20, %v838_v12  ;;  %v7233_v37 = vmov %v7231_v50  ;;  %v881_v32 = vadd.f32 %v879_v60, %v825_v29  ;;  %v887_v28 = vadd.f32 %v885_v52, %v831_v8  ;;  %v984_v29 = vpop.permute.xlu1 %983  ;;  %v982_v8 = vpop.permute.xlu0 %981 }
 0x1c1   : > { %v898_v42 = vmul.f32 %v7233_v37, %v876_v48  ;;  %v893_v36 = vadd.f32 %v891_v51, %v837_v38  ;;  %v899_v33 = vadd.f32 %v897_v47, %v843_v59  ;;  %v7234_v21 = vstv %s7225_s7  ;;  %s4951_s7 = sld [smem:[#allocation8 + $0xb8]] }
 0x1c2   : > { %v903_v39 = vmul.f32 %v7234_v21, %v875_v31  ;;  %v7235_v55 = vmov %v7234_v21  ;;  %v7236_v2 = vstv %s4028_s25  ;;  %v7238_v6 = vstv %s7230_s10  ;;  %s7245_s25 = sld [smem:[#allocation116_spill]] }
 0x1c3   : > { %v900_v54 = vadd.f32 %v898_v42, %v844_v9  ;;  %v904_v0 = vmul.f32 %v7235_v55, %v876_v48  ;;  %v909_v17 = vmul.f32 %v7236_v2, %v875_v31  ;;  %v7237_v41 = vmov %v7236_v2  ;;  %s4955_s10 = sld [smem:[#allocation8 + $0xdc]] }
 0x1c4   : > { %v910_v15 = vmul.f32 %v7237_v41, %v876_v48  ;;  %v915_v53 = vmul.f32 %v7238_v6, %v875_v31  ;;  %v7239_v18 = vmov %v7238_v6  ;;  %v7240_v44 = vstv %s7232_s8  ;;  %s4963_s8 = sld [smem:[#allocation8 + $0x100]] }
 0x1c5   : > { %v916_v12 = vmul.f32 %v7239_v18, %v876_v48  ;;  %v921_v56 = vmul.f32 %v7240_v44, %v875_v31  ;;  %v905_v38 = vadd.f32 %v903_v39, %v849_v45  ;;  %v906_v59 = vadd.f32 %v904_v0, %v850_v10 }
 0x1c6   : > { %v911_v9 = vadd.f32 %v909_v17, %v855_v16  ;;  %v7242_v14 = vmov %v7240_v44  ;;  %v912_v19 = vadd.f32 %v910_v15, %v856_v22  ;;  %v917_v20 = vadd.f32 %v915_v53, %v861_v63 }
 0x1c7   : > { %v922_v24 = vmul.f32 %v7242_v14, %v876_v48  ;;  %v918_v26 = vadd.f32 %v916_v12, %v862_v40  ;;  %v923_v60 = vadd.f32 %v921_v56, %v867_v43  ;;  %v930_v3 = vsel %vm760_vm6, %v928_v34, %v926_v61 }
 0x1c8   : > { %v932_v45 = vsel %vm4577_vm8, %v929_v35, 0.0  ;;  %v986_v10 = vsel %vm985_vm10, %v982_v8, %v984_v29  ;;  %v931_v16 = vsel %vm4625_vm9, %v930_v3, 0.0  ;;  %v7243_v48 = vstv %s7241_s12  ;;  %s7312_s12 = sld [smem:[#allocation25_spill]] }
 0x1c9   : > { %v924_v31 = vadd.f32 %v922_v24, %v868_v30  ;;  %v936_v52 = vmul.f32 %v7243_v48, %v932_v45  ;;  %v7244_v22 = vstv %s4041_s23  ;;  %v7246_v40 = vstv %s6990_s22  ;;  %s7297_s23 = sld [smem:[#allocation114_spill]] }
 0x1ca   : > { %v942_v63 = vmul.f32 %v7244_v22, %v932_v45  ;;  %v948_v43 = vmul.f32 %v7246_v40, %v932_v45  ;;  %v7247_v30 = vmov %v7243_v48  ;;  %v7248_v61 = vmov %v7244_v22  ;;  %s7298_s22 = sld [smem:[#allocation115_spill]] }
 0x1cb   : > { %v935_v34 = vmul.f32 %v7247_v30, %v931_v16  ;;  %v941_v35 = vmul.f32 %v7248_v61, %v931_v16  ;;  %v7249_v23 = vmov %v7246_v40  ;;  %v7250_v50 = vstv %s6991_s30  ;;  %s4859_s30 = sld [smem:[#allocation8 + $0x42]] }
 0x1cc   : > { %v947_v51 = vmul.f32 %v7249_v23, %v931_v16  ;;  %v953_v11 = vmul.f32 %v7250_v50, %v931_v16  ;;  %v938_v47 = vadd.f32 %v936_v52, %v882_v46  ;;  %v944_v37 = vadd.f32 %v942_v63, %v888_v27 }
 0x1cd   : > { %v950_v42 = vadd.f32 %v948_v43, %v894_v25  ;;  %v7251_v21 = vmov %v7250_v50  ;;  %v937_v55 = vadd.f32 %v935_v34, %v881_v32  ;;  %v943_v0 = vadd.f32 %v941_v35, %v887_v28  ;;  %v1041_v32 = vpop.permute.xlu1 %1040  ;;  %v1039_v28 = vpop.permute.xlu0 %1038 }
 0x1ce   : > { %v954_v39 = vmul.f32 %v7251_v21, %v932_v45  ;;  %v949_v2 = vadd.f32 %v947_v51, %v893_v36  ;;  %v955_v17 = vadd.f32 %v953_v11, %v899_v33  ;;  %v7252_v15 = vstv %s7245_s25  ;;  %s4973_s25 = sld [smem:[#allocation8 + $0xd]] }
 0x1cf   : > { %v959_v6 = vmul.f32 %v7252_v15, %v931_v16  ;;  %v7253_v53 = vmov %v7252_v15  ;;  %v7254_v12 = vstv %s6994_s29  ;;  %v7256_v24 = vstv %s6995_s11  ;;  %s4804_s29 = sld [smem:[#allocation8 + $0xc9]] }
 0x1d0   : > { %v956_v41 = vadd.f32 %v954_v39, %v900_v54  ;;  %v960_v18 = vmul.f32 %v7253_v53, %v932_v45  ;;  %v965_v44 = vmul.f32 %v7254_v12, %v931_v16  ;;  %v7255_v56 = vmov %v7254_v12  ;;  %s7299_s11 = sld [smem:[#allocation117_spill]] }
 0x1d1   : > { %v966_v14 = vmul.f32 %v7255_v56, %v932_v45  ;;  %v971_v46 = vmul.f32 %v7256_v24, %v931_v16  ;;  %v7257_v27 = vmov %v7256_v24  ;;  %v7258_v3 = vstv %s6996_s13  ;;  %s7284_s13 = sld [smem:[#allocation128_spill]] }
 0x1d2   : > { %v972_v25 = vmul.f32 %v7257_v27, %v932_v45  ;;  %v977_v48 = vmul.f32 %v7258_v3, %v931_v16  ;;  %v961_v36 = vadd.f32 %v959_v6, %v905_v38  ;;  %v962_v33 = vadd.f32 %v960_v18, %v906_v59 }
 0x1d3   : > { %v967_v54 = vadd.f32 %v965_v44, %v911_v9  ;;  %v7259_v52 = vmov %v7258_v3  ;;  %v968_v63 = vadd.f32 %v966_v14, %v912_v19  ;;  %v973_v40 = vadd.f32 %v971_v46, %v917_v20 }
 0x1d4   : > { %v978_v22 = vmul.f32 %v7259_v52, %v932_v45  ;;  %v974_v43 = vadd.f32 %v972_v25, %v918_v26  ;;  %v979_v30 = vadd.f32 %v977_v48, %v923_v60  ;;  %v987_v16 = vsel %vm985_vm10, %v984_v29, %v982_v8 }
 0x1d5   : > { %v989_v38 = vsel %vm4252_vm2, %v986_v10, 0.0  ;;  %v1042_v59 = vsel %vm985_vm10, %v1039_v28, %v1041_v32  ;;  %v988_v9 = vsel %vm4226_vm1, %v987_v16, 0.0  ;;  %v7260_v45 = vstv %s6997_s17  ;;  %s7275_s17 = sld [smem:[#allocation93_spill]] }
 0x1d6   : > { %v980_v34 = vadd.f32 %v978_v22, %v924_v31  ;;  %v993_v19 = vmul.f32 %v7260_v45, %v989_v38  ;;  %v7261_v61 = vstv %s6999_s20  ;;  %v7262_v26 = vstv %s7000_s3  ;;  %s7287_s20 = sld [smem:[#allocation130_spill]] }
 0x1d7   : > { %v999_v20 = vmul.f32 %v7261_v61, %v989_v38  ;;  %v1005_v60 = vmul.f32 %v7262_v26, %v989_v38  ;;  %v7263_v29 = vmov %v7260_v45  ;;  %v7264_v31 = vmov %v7261_v61  ;;  %s4885_s3 = sld [smem:[#allocation8 + $0xd2]] }
 0x1d8   : > { %v992_v8 = vmul.f32 %v7263_v29, %v988_v9  ;;  %v998_v10 = vmul.f32 %v7264_v31, %v988_v9  ;;  %v7265_v35 = vmov %v7262_v26  ;;  %v7266_v51 = vstv %s7001_s9  ;;  %s7281_s9 = sld [smem:[#allocation94_spill]] }
 0x1d9   : > { %v1004_v23 = vmul.f32 %v7265_v35, %v988_v9  ;;  %v1010_v50 = vmul.f32 %v7266_v51, %v988_v9  ;;  %v995_v11 = vadd.f32 %v993_v19, %v938_v47  ;;  %v1001_v21 = vadd.f32 %v999_v20, %v944_v37 }
 0x1da   : > { %v1007_v39 = vadd.f32 %v1005_v60, %v950_v42  ;;  %v7267_v15 = vmov %v7266_v51  ;;  %v994_v53 = vadd.f32 %v992_v8, %v937_v55  ;;  %v1000_v18 = vadd.f32 %v998_v10, %v943_v0 }
 0x1db   : > { %v1011_v6 = vmul.f32 %v7267_v15, %v989_v38  ;;  %v1006_v12 = vadd.f32 %v1004_v23, %v949_v2  ;;  %v1012_v44 = vadd.f32 %v1010_v50, %v955_v17  ;;  %v7268_v14 = vstv %s7003_s5  ;;  %s4849_s5 = sld [smem:[#allocation8 + $0x1e]] }
 0x1dc   : > { %v1016_v24 = vmul.f32 %v7268_v14, %v988_v9  ;;  %v7269_v46 = vmov %v7268_v14  ;;  %v7270_v25 = vstv %s7004_s4  ;;  %v7272_v22 = vstv %s7005_s18  ;;  %s4832_s4 = sld [smem:[#allocation8 + $0xed]] }
 0x1dd   : > { %v1013_v56 = vadd.f32 %v1011_v6, %v956_v41  ;;  %v1017_v27 = vmul.f32 %v7269_v46, %v989_v38  ;;  %v1022_v3 = vmul.f32 %v7270_v25, %v988_v9  ;;  %v7271_v48 = vmov %v7270_v25  ;;  %s7286_s18 = sld [smem:[#allocation129_spill]] }
 0x1de   : > { %v1023_v52 = vmul.f32 %v7271_v48, %v989_v38  ;;  %v1028_v47 = vmul.f32 %v7272_v22, %v988_v9  ;;  %v7273_v37 = vmov %v7272_v22  ;;  %v7274_v16 = vstv %s7006_s1  ;;  %s4839_s1 = sld [smem:[#allocation8 + $0x111]] }
 0x1df   : > { %v1029_v42 = vmul.f32 %v7273_v37, %v989_v38  ;;  %v1034_v45 = vmul.f32 %v7274_v16, %v988_v9  ;;  %v1018_v55 = vadd.f32 %v1016_v24, %v961_v36  ;;  %v1019_v0 = vadd.f32 %v1017_v27, %v962_v33 }
 0x1e0   : > { %v1024_v2 = vadd.f32 %v1022_v3, %v967_v54  ;;  %v7276_v17 = vmov %v7274_v16  ;;  %v1025_v19 = vadd.f32 %v1023_v52, %v968_v63  ;;  %v1030_v61 = vadd.f32 %v1028_v47, %v973_v40  ;;  %v1097_v16 = vpop.permute.xlu1 %1096 }
 0x1e1   : > { %v1035_v41 = vmul.f32 %v7276_v17, %v989_v38  ;;  %v1031_v20 = vadd.f32 %v1029_v42, %v974_v43  ;;  %v1036_v26 = vadd.f32 %v1034_v45, %v979_v30  ;;  %v1043_v36 = vsel %vm985_vm10, %v1041_v32, %v1039_v28 }
 0x1e2   : > { %v1045_v33 = vsel %vm4252_vm2, %v1042_v59, 0.0  ;;  %v1133_v54 = vstv %s4804_s29  ;;  %v1044_v63 = vsel %vm4226_vm1, %v1043_v36, 0.0  ;;  %v7277_v40 = vstv %s4142_s21  ;;  %s4871_s21 = sld [smem:[#allocation8 + $0x8a]] }
 0x1e3   : > { %v1037_v60 = vadd.f32 %v1035_v41, %v980_v34  ;;  %v1049_v43 = vmul.f32 %v7277_v40, %v1045_v33  ;;  %v7278_v38 = vstv %s4148_s27  ;;  %v7279_v9 = vstv %s7275_s17  ;;  %s4863_s27 = sld [smem:[#allocation8 + $0x66]] }
 0x1e4   : > { %v1055_v30 = vmul.f32 %v7278_v38, %v1045_v33  ;;  %v1061_v29 = vmul.f32 %v7279_v9, %v1045_v33  ;;  %v7280_v34 = vmov %v7277_v40  ;;  %v7282_v28 = vmov %v7278_v38  ;;  %s4980_s29 = sld [smem:[#allocation8 + $0x31]] }
 0x1e5   : > { %v1048_v32 = vmul.f32 %v7280_v34, %v1044_v63  ;;  %v1054_v59 = vmul.f32 %v7282_v28, %v1044_v63  ;;  %v7283_v8 = vmov %v7279_v9  ;;  %v7285_v10 = vstv %s4160_s28  ;;  %s4881_s28 = sld [smem:[#allocation8 + $0xae]] }
 0x1e6   : > { %v1060_v31 = vmul.f32 %v7283_v8, %v1044_v63  ;;  %v1066_v35 = vmul.f32 %v7285_v10, %v1044_v63  ;;  %v1051_v23 = vadd.f32 %v1049_v43, %v995_v11  ;;  %v1057_v51 = vadd.f32 %v1055_v30, %v1001_v21  ;;  %s4986_s17 = sld [smem:[#allocation8 + $0x55]] }
 0x1e7   : > { %v1063_v50 = vadd.f32 %v1061_v29, %v1007_v39  ;;  %v7288_v15 = vmov %v7285_v10  ;;  %v1050_v14 = vadd.f32 %v1048_v32, %v994_v53  ;;  %v1056_v24 = vadd.f32 %v1054_v59, %v1000_v18 }
 0x1e8   : > { %v1067_v6 = vmul.f32 %v7288_v15, %v1045_v33  ;;  %v1062_v46 = vadd.f32 %v1060_v31, %v1006_v12  ;;  %v1068_v27 = vadd.f32 %v1066_v35, %v1012_v44  ;;  %v7289_v3 = vstv %s7281_s9  ;;  %s5012_s9 = sld [smem:[#allocation8 + $0xc1]] }
 0x1e9   : > { %v1072_v48 = vmul.f32 %v7289_v3, %v1044_v63  ;;  %v7290_v52 = vmov %v7289_v3  ;;  %v7291_v47 = vstv %s7284_s13  ;;  %v7293_v37 = vstv %s7286_s18  ;;  %s5022_s13 = sld [smem:[#allocation8 + $0xe5]] }
 0x1ea   : > { %v1069_v25 = vadd.f32 %v1067_v6, %v1013_v56  ;;  %v1073_v22 = vmul.f32 %v7290_v52, %v1045_v33  ;;  %v1078_v11 = vmul.f32 %v7291_v47, %v1044_v63  ;;  %v7292_v21 = vmov %v7291_v47  ;;  %v1095_v56 = vpop.permute.xlu0 %1094  ;;  %s5032_s18 = sld [smem:[#allocation8 + $0x109]] }
 0x1eb   : > { %v1079_v39 = vmul.f32 %v7292_v21, %v1045_v33  ;;  %v1084_v42 = vmul.f32 %v7293_v37, %v1044_v63  ;;  %v7294_v53 = vmov %v7293_v37  ;;  %v7295_v12 = vstv %s7287_s20  ;;  %s5054_s20 = sld [smem:[#allocation8 + $0x16]] }
 0x1ec   : > { %v1085_v18 = vmul.f32 %v7294_v53, %v1045_v33  ;;  %v1090_v44 = vmul.f32 %v7295_v12, %v1044_v63  ;;  %v1074_v45 = vadd.f32 %v1072_v48, %v1018_v55  ;;  %v1075_v17 = vadd.f32 %v1073_v22, %v1019_v0 }
 0x1ed   : > { %v1080_v41 = vadd.f32 %v1078_v11, %v1024_v2  ;;  %v7296_v36 = vmov %v7295_v12  ;;  %v1081_v43 = vadd.f32 %v1079_v39, %v1025_v19  ;;  %v1086_v38 = vadd.f32 %v1084_v42, %v1030_v61 }
 0x1ee   : > { %v1091_v40 = vmul.f32 %v7296_v36, %v1045_v33  ;;  %v1087_v30 = vadd.f32 %v1085_v18, %v1031_v20  ;;  %v1092_v63 = vadd.f32 %v1090_v44, %v1036_v26  ;;  %v1139_v55 = vstv %s4832_s4  ;;  %s4994_s4 = sld [smem:[#allocation8 + $0x79]] }
 0x1ef   : > { %v1145_v0 = vstv %s4839_s1  ;;  %v1098_v2 = vsel %vm985_vm10, %v1095_v56, %v1097_v16  ;;  %v1099_v19 = vsel %vm985_vm10, %v1097_v16, %v1095_v56  ;;  %v1159_v20 = vstv %s4849_s5  ;;  %s5003_s1 = sld [smem:[#allocation8 + $0x9d]] }
 0x1f0   : > { %v1093_v9 = vadd.f32 %v1091_v40, %v1037_v60  ;;  %v1101_v61 = vsel %vm4252_vm2, %v1098_v2, 0.0  ;;  %v1165_v26 = vstv %s4859_s30  ;;  %v1100_v60 = vsel %vm4226_vm1, %v1099_v19, 0.0  ;;  %s5159_s5 = sld [smem:[#allocation8 + $0x5e]] }
 0x1f1   : > { %v7301_v33 = vstv %s7297_s23  ;;  %v7302_v34 = vstv %s7298_s22  ;;  %v7303_v28 = vstv %s7299_s11  ;;  %v7308_v3 = vstv %s7300_s14  ;;  %s5064_s23 = sld [smem:[#allocation8 + $0x3a]] }
 0x1f2   : > { %v1105_v29 = vmul.f32 %v7301_v33, %v1101_v61  ;;  %v1111_v32 = vmul.f32 %v7302_v34, %v1101_v61  ;;  %v1117_v59 = vmul.f32 %v7303_v28, %v1101_v61  ;;  %v7304_v8 = vmov %v7301_v33  ;;  %s5169_s30 = sld [smem:[#allocation8 + $0x82]] }
 0x1f3   : > { %v1104_v31 = vmul.f32 %v7304_v8, %v1100_v60  ;;  %v7305_v10 = vmov %v7302_v34  ;;  %v7307_v15 = vmov %v7303_v28  ;;  %v1122_v48 = vmul.f32 %v7308_v3, %v1100_v60  ;;  %s5221_s22 = sld [smem:[#allocation8 + $0x1f]] }
 0x1f4   : > { %v1110_v35 = vmul.f32 %v7305_v10, %v1100_v60  ;;  %v1116_v6 = vmul.f32 %v7307_v15, %v1100_v60  ;;  %v4923_v52 = vadd.f32 %v1105_v29, %v1051_v23  ;;  %v4925_v22 = vadd.f32 %v1111_v32, %v1057_v51  ;;  %s5235_s11 = sld [smem:[#allocation8 + $0x43]] }
 0x1f5   : > { %v4927_v47 = vadd.f32 %v1117_v59, %v1063_v50  ;;  %v7309_v11 = vmov %v7308_v3  ;;  %v4933_v39 = vadd.f32 %v1104_v31, %v1050_v14  ;;  %v4939_v53 = vadd.f32 %v1122_v48, %v1068_v27  ;;  %v1151_v48 = vpop.permute.xlu0 %1150  ;;  %s5275_s14 = sld [smem:[#allocation8 + $0x8b]] }
 0x1f6   : > { %v1123_v21 = vmul.f32 %v7309_v11, %v1101_v61  ;;  %v4935_v37 = vadd.f32 %v1110_v35, %v1056_v24  ;;  %v4937_v42 = vadd.f32 %v1116_v6, %v1062_v46  ;;  %v7310_v51 = vstv %s7306_s15  ;;  %v1153_v11 = vpop.permute.xlu1 %1152  ;;  %s5345_s15 = sld [smem:[#allocation8 + $0x11b]] }
 0x1f7   : > { %v1128_v18 = vmul.f32 %v7310_v51, %v1100_v60  ;;  %v7311_v50 = vmov %v7310_v51  ;;  %v1134_v44 = vmul.f32 %v1133_v54, %v1100_v60  ;;  %v1135_v14 = vmul.f32 %v1133_v54, %v1101_v61 }
 0x1f8   : > { %v4943_v23 = vadd.f32 %v1123_v21, %v1069_v25  ;;  %v1129_v12 = vmul.f32 %v7311_v50, %v1101_v61  ;;  %v1140_v24 = vmul.f32 %v1139_v55, %v1100_v60  ;;  %v1141_v46 = vmul.f32 %v1139_v55, %v1101_v61 }
 0x1f9   : > { %v1146_v27 = vmul.f32 %v1145_v0, %v1100_v60  ;;  %v4957_v25 = vadd.f32 %v1128_v18, %v1074_v45  ;;  %v4961_v56 = vadd.f32 %v1134_v44, %v1080_v41  ;;  %v1147_v36 = vmul.f32 %v1145_v0, %v1101_v61 }
 0x1fa   : > { %v4959_v16 = vadd.f32 %v1129_v12, %v1075_v17  ;;  %v4965_v54 = vadd.f32 %v1135_v14, %v1081_v43  ;;  %v4967_v40 = vadd.f32 %v1140_v24, %v1086_v38  ;;  %v4969_v55 = vadd.f32 %v1141_v46, %v1087_v30  ;;  %v3466_v30 = vld [vmem:[%s7312_s12] sm:$0x3]  ;;  %v3467_v46 = vld [vmem:[%s7312_s12 + $0x2] sm:$0x3] }
 0x1fb   : > { %v4971_v45 = vadd.f32 %v1146_v27, %v1092_v63  ;;  %v4975_v17 = vadd.f32 %v1147_v36, %v1093_v9  ;;  %v1171_v41 = vstv %s4863_s27  ;;  %v1177_v0 = vstv %s4871_s21  ;;  %s5177_s27 = sld [smem:[#allocation8 + $0xa6]] }
 0x1fc   : > { %v1183_v2 = vstv %s4881_s28  ;;  %v1189_v43 = vstv %s4885_s3  ;;  %v1195_v38 = vstv %s4887_s19  ;;  %v1207_v61 = vstv %s4901_s26  ;;  %s5183_s21 = sld [smem:[#allocation8 + $0xca]] }
 0x1fd   : > { %v4989_v63 = vmul.f32 %v3466_v30, %v1207_v61  ;;  %v1223_v60 = vstv %s4911_s6  ;;  %v1239_v33 = vstv %s4921_s2  ;;  %v1255_v9 = vstv %s4931_s16  ;;  %s5193_s28 = sld [smem:[#allocation8 + $0xee]] }
 0x1fe   : > { %v4996_v29 = vmul.f32 %v3466_v30, %v1223_v60  ;;  %v4998_v34 = vmul.f32 %v3466_v30, %v1239_v33  ;;  %v5000_v32 = vmul.f32 %v3466_v30, %v1255_v9  ;;  %v1271_v28 = vstv %s4941_s0  ;;  %s5207_s3 = sld [smem:[#allocation8 + $0x112]] }
 0x1ff   : > { %v5009_v31 = vmul.f32 %v3466_v30, %v1271_v28  ;;  %v1287_v10 = vstv %s4951_s7  ;;  %v1303_v50 = vstv %s4955_s10  ;;  %v1319_v12 = vstv %s4963_s8  ;;  %s5253_s19 = sld [smem:[#allocation8 + $0x67]] }
 0x200   : > { %v5034_v18 = vmul.f32 %v3466_v30, %v1287_v10  ;;  %v1335_v44 = vstv %s4973_s25  ;;  %v5039_v14 = vmul.f32 %v3466_v30, %v1303_v50  ;;  %v5041_v24 = vmul.f32 %v3466_v30, %v1319_v12  ;;  %s5319_s26 = sld [smem:[#allocation8 + $0xd3]] }
 0x201   : > { %v5044_v27 = vmul.f32 %v3467_v46, %v1335_v44  ;;  %v1351_v36 = vstv %s4980_s29  ;;  %v1367_v9 = vstv %s4986_s17  ;;  %v1383_v10 = vstv %s4994_s4  ;;  %s5335_s6 = sld [smem:[#allocation8 + $0xf7]] }
 0x202   : > { %v5051_v33 = vmul.f32 %v3467_v46, %v1351_v36  ;;  %v5074_v30 = vmul.f32 %v3467_v46, %v1367_v9  ;;  %v1399_v60 = vstv %s5003_s1  ;;  %v1415_v50 = vstv %s5012_s9  ;;  %s5357_s2 = sld [smem:[#allocation8 + $0x5]] }
 0x203   : > { %v5079_v61 = vmul.f32 %v3467_v46, %v1383_v10  ;;  %v5081_v51 = vmul.f32 %v3467_v46, %v1399_v60  ;;  %v5083_v12 = vmul.f32 %v3467_v46, %v1415_v50  ;;  %v1431_v21 = vstv %s5022_s13  ;;  %v5121_v10 = vld [vmem:[%s7312_s12 + $0x4] sm:$0x3]  ;;  %s5367_s16 = sld [smem:[#allocation8 + $0x29]] }
 0x204   : > { %v5090_v9 = vmul.f32 %v3467_v46, %v1431_v21  ;;  %v1447_v36 = vstv %s5032_s18  ;;  %v1154_v44 = vsel %vm985_vm10, %v1151_v48, %v1153_v11  ;;  %v1155_v21 = vsel %vm985_vm10, %v1153_v11, %v1151_v48  ;;  %s5377_s0 = sld [smem:[#allocation8 + $0x4d]] }
 0x205   : > { %v5109_v50 = vmul.f32 %v3467_v46, %v1447_v36  ;;  %v1463_v3 = vstv %s5054_s20  ;;  %v1156_v28 = vsel %vm4226_vm1, %v1155_v21, 0.0  ;;  %v1157_v60 = vsel %vm4252_vm2, %v1154_v44, 0.0  ;;  %s5387_s7 = sld [smem:[#allocation8 + $0x71]] }
 0x206   : > { %v5124_v46 = vmul.f32 %v5121_v10, %v1463_v3  ;;  %v1160_v11 = vmul.f32 %v1159_v20, %v1156_v28  ;;  %v1161_v21 = vmul.f32 %v1159_v20, %v1157_v60  ;;  %v1166_v44 = vmul.f32 %v1165_v26, %v1156_v28  ;;  %s5395_s10 = sld [smem:[#allocation8 + $0x95]] }
 0x207   : > { %v1167_v15 = vmul.f32 %v1165_v26, %v1157_v60  ;;  %v1172_v3 = vmul.f32 %v1171_v41, %v1156_v28  ;;  %v1173_v36 = vmul.f32 %v1171_v41, %v1157_v60  ;;  %v1178_v35 = vmul.f32 %v1177_v0, %v1156_v28  ;;  %s5406_s8 = sld [smem:[#allocation8 + $0xb9]] }
 0x208   : > { %v1162_v6 = vadd.f32 %v1160_v11, %v4933_v39  ;;  %v1163_v48 = vadd.f32 %v1161_v21, %v4923_v52  ;;  %v1179_v20 = vmul.f32 %v1177_v0, %v1157_v60  ;;  %v1168_v8 = vadd.f32 %v1166_v44, %v4935_v37  ;;  %s5425_s25 = sld [smem:[#allocation8 + $0x101]] }
 0x209   : > { %v1169_v26 = vadd.f32 %v1167_v15, %v4925_v22  ;;  %v1174_v59 = vadd.f32 %v1172_v3, %v4937_v42  ;;  %v1175_v41 = vadd.f32 %v1173_v36, %v4927_v47  ;;  %v1180_v19 = vadd.f32 %v1178_v35, %v4939_v53  ;;  %s5454_s29 = sld [smem:[#allocation8 + $0xe]] }
 0x20a   : > { %v1181_v39 = vadd.f32 %v1179_v20, %v4943_v23  ;;  %v1184_v52 = vmul.f32 %v1183_v2, %v1156_v28  ;;  %v1185_v11 = vmul.f32 %v1183_v2, %v1157_v60  ;;  %v1190_v37 = vmul.f32 %v1189_v43, %v1156_v28  ;;  %s5463_s17 = sld [smem:[#allocation8 + $0x32]] }
 0x20b   : > { %v1191_v0 = vmul.f32 %v1189_v43, %v1157_v60  ;;  %v1196_v22 = vmul.f32 %v1195_v38, %v1156_v28  ;;  %v1197_v42 = vmul.f32 %v1195_v38, %v1157_v60  ;;  %v7313_v23 = vstv %s4893_s24  ;;  %s5297_s24 = sld [smem:[#allocation8 + $0xaf]] }
 0x20c   : > { %v1186_v47 = vadd.f32 %v1184_v52, %v4957_v25  ;;  %v1187_v53 = vadd.f32 %v1185_v11, %v4959_v16  ;;  %v1202_v35 = vmul.f32 %v7313_v23, %v1156_v28  ;;  %v7314_v15 = vmov %v7313_v23  ;;  %s5481_s4 = sld [smem:[#allocation8 + $0x56]] }
 0x20d   : > { %v1203_v2 = vmul.f32 %v7314_v15, %v1157_v60  ;;  %v1192_v36 = vadd.f32 %v1190_v37, %v4961_v56  ;;  %v1193_v43 = vadd.f32 %v1191_v0, %v4965_v54  ;;  %v1198_v21 = vadd.f32 %v1196_v22, %v4967_v40  ;;  %s5499_s1 = sld [smem:[#allocation8 + $0x7a]] }
 0x20e   : > { %v1199_v38 = vadd.f32 %v1197_v42, %v4969_v55  ;;  %v1204_v25 = vadd.f32 %v1202_v35, %v4971_v45  ;;  %v7315_v28 = vrot.slane %v4989_v63, %v3783_v4  ;;  %v7316_v44 = vrot.slane %v4989_v63, %v3786_v5  ;;  %s5517_s9 = sld [smem:[#allocation8 + $0x9e]] }
 0x20f   : > { %v1205_v16 = vadd.f32 %v1203_v2, %v4975_v17  ;;  %v7317_v54 = vrot.slane %v4996_v29, %v3783_v4  ;;  %v7318_v55 = vrot.slane %v4996_v29, %v3786_v5  ;;  %v7319_v17 = vrot.slane %v4998_v34, %v3783_v4  ;;  %s5519_s13 = sld [smem:[#allocation8 + $0xc2]] }
 0x210   : > { %v1220_v60 = vadd.f32 %v7315_v28, %v1162_v6  ;;  %v1221_v56 = vadd.f32 %v7316_v44, %v1163_v48  ;;  %v7320_v6 = vrot.slane %v4998_v34, %v3786_v5  ;;  %v7321_v63 = vrot.slane %v5000_v32, %v3783_v4  ;;  %s5522_s18 = sld [smem:[#allocation8 + $0xe6]] }
 0x211   : > { %v1236_v40 = vadd.f32 %v7317_v54, %v1168_v8  ;;  %v1237_v45 = vadd.f32 %v7318_v55, %v1169_v26  ;;  %v1252_v3 = vadd.f32 %v7319_v17, %v1174_v59  ;;  %v7322_v8 = vrot.slane %v5000_v32, %v3786_v5  ;;  %s5530_s20 = sld [smem:[#allocation8 + $0x10a]] }
 0x212   : > { %v1253_v20 = vadd.f32 %v7320_v6, %v1175_v41  ;;  %v1268_v48 = vadd.f32 %v7321_v63, %v1180_v19  ;;  %v7323_v29 = vrot.slane %v5009_v31, %v3783_v4  ;;  %v7324_v59 = vrot.slane %v5009_v31, %v3786_v5 }
 0x213   : > { %v1269_v52 = vadd.f32 %v7322_v8, %v1181_v39  ;;  %v7325_v34 = vrot.slane %v5034_v18, %v3783_v4  ;;  %v7326_v19 = vrot.slane %v5034_v18, %v3786_v5  ;;  %v7327_v32 = vrot.slane %v5039_v14, %v3783_v4 }
 0x214   : > { %v1284_v26 = vadd.f32 %v7323_v29, %v1186_v47  ;;  %v1285_v11 = vadd.f32 %v7324_v59, %v1187_v53  ;;  %v7328_v0 = vrot.slane %v5039_v14, %v3786_v5  ;;  %v7329_v31 = vrot.slane %v5041_v24, %v3783_v4 }
 0x215   : > { %v1300_v41 = vadd.f32 %v7325_v34, %v1192_v36  ;;  %v1301_v37 = vadd.f32 %v7326_v19, %v1193_v43  ;;  %v1316_v39 = vadd.f32 %v7327_v32, %v1198_v21  ;;  %v7330_v47 = vrot.slane %v5041_v24, %v3786_v5 }
 0x216   : > { %v1317_v22 = vadd.f32 %v7328_v0, %v1199_v38  ;;  %v1332_v42 = vadd.f32 %v7329_v31, %v1204_v25  ;;  %v7331_v18 = vrot.slane %v5044_v27, %v3783_v4  ;;  %v7332_v35 = vrot.slane %v5044_v27, %v3786_v5 }
 0x217   : > { %v1333_v53 = vadd.f32 %v7330_v47, %v1205_v16  ;;  %v7333_v15 = vrot.slane %v5051_v33, %v3783_v4  ;;  %v7334_v24 = vrot.slane %v5051_v33, %v3786_v5  ;;  %v7335_v43 = vrot.slane %v5074_v30, %v3783_v4 }
 0x218   : > { %v5246_v23 = vadd.f32 %v7331_v18, %v1220_v60  ;;  %v5251_v14 = vadd.f32 %v7332_v35, %v1221_v56  ;;  %v7336_v27 = vrot.slane %v5074_v30, %v3786_v5  ;;  %v7337_v25 = vrot.slane %v5079_v61, %v3783_v4 }
 0x219   : > { %v5258_v2 = vadd.f32 %v7333_v15, %v1236_v40  ;;  %v5263_v36 = vadd.f32 %v7334_v24, %v1237_v45  ;;  %v5268_v21 = vadd.f32 %v7335_v43, %v1252_v3  ;;  %v7338_v33 = vrot.slane %v5079_v61, %v3786_v5 }
 0x21a   : > { %v5273_v38 = vadd.f32 %v7336_v27, %v1253_v20  ;;  %v5280_v16 = vadd.f32 %v7337_v25, %v1268_v48  ;;  %v7339_v60 = vrot.slane %v5081_v51, %v3783_v4  ;;  %v7340_v44 = vrot.slane %v5081_v51, %v3786_v5 }
 0x21b   : > { %v5285_v28 = vadd.f32 %v7338_v33, %v1269_v52  ;;  %v7341_v61 = vrot.slane %v5083_v12, %v3783_v4  ;;  %v7342_v40 = vrot.slane %v5083_v12, %v3786_v5  ;;  %v7343_v45 = vrot.slane %v5090_v9, %v3783_v4  ;;  %v3469_v33 = vld [vmem:[%s7312_s12 + $0x6] sm:$0x3]  ;;  %s5415_s12 = sld [smem:[#allocation8 + $0xdd]] }
 0x21c   : > { %v5290_v30 = vadd.f32 %v7339_v60, %v1284_v26  ;;  %v5295_v56 = vadd.f32 %v7340_v44, %v1285_v11  ;;  %v7344_v51 = vrot.slane %v5090_v9, %v3786_v5  ;;  %v7345_v6 = vrot.slane %v5109_v50, %v3783_v4 }
 0x21d   : > { %v5302_v54 = vadd.f32 %v7341_v61, %v1300_v41  ;;  %v5307_v55 = vadd.f32 %v7342_v40, %v1301_v37  ;;  %v5312_v17 = vadd.f32 %v7343_v45, %v1316_v39  ;;  %v7346_v12 = vrot.slane %v5109_v50, %v3786_v5 }
 0x21e   : > { %v5317_v3 = vadd.f32 %v7344_v51, %v1317_v22  ;;  %v5324_v20 = vadd.f32 %v7345_v6, %v1332_v42  ;;  %v1469_v48 = vrot.slane %v5124_v46, %v3783_v4  ;;  %v1473_v9 = vrot.slane %v5124_v46, %v3786_v5 }
 0x21f   : > { %v5329_v63 = vadd.f32 %v7346_v12, %v1333_v53  ;;  %v7347_v8 = vstv %s5064_s23  ;;  %v1495_v29 = vstv %s5159_s5  ;;  %v1511_v26 = vstv %s5169_s30  ;;  %s5538_s23 = sld [smem:[#allocation8 + $0x17]] }
 0x220   : > { %v5340_v52 = vmul.f32 %v5121_v10, %v7347_v8  ;;  %v1527_v59 = vstv %s5177_s27  ;;  %v5348_v50 = vmul.f32 %v5121_v10, %v1495_v29  ;;  %v5351_v11 = vmul.f32 %v5121_v10, %v1511_v26  ;;  %s5544_s5 = sld [smem:[#allocation8 + $0x3b]] }
 0x221   : > { %v5354_v34 = vmul.f32 %v5121_v10, %v1527_v59  ;;  %v1543_v41 = vstv %s5183_s21  ;;  %v1559_v39 = vstv %s5193_s28  ;;  %v1575_v24 = vstv %s5207_s3  ;;  %s5554_s30 = sld [smem:[#allocation8 + $0x5f]] }
 0x222   : > { %v1485_v19 = vrot.slane %v5340_v52, %v3783_v4  ;;  %v5364_v32 = vmul.f32 %v5121_v10, %v1543_v41  ;;  %v5390_v15 = vmul.f32 %v5121_v10, %v1559_v39  ;;  %v1591_v43 = vstv %s5221_s22  ;;  %s5556_s27 = sld [smem:[#allocation8 + $0x83]] }
 0x223   : > { %v1607_v27 = vstv %s5235_s11  ;;  %v5398_v25 = vmul.f32 %v5121_v10, %v1575_v24  ;;  %v5401_v60 = vmul.f32 %v3469_v33, %v1591_v43  ;;  %v1623_v61 = vstv %s5253_s19  ;;  %s5574_s21 = sld [smem:[#allocation8 + $0xa7]] }
 0x224   : > { %v5403_v44 = vmul.f32 %v3469_v33, %v1607_v27  ;;  %v1565_v40 = vrot.slane %v5390_v15, %v3783_v4  ;;  %v1569_v45 = vrot.slane %v5390_v15, %v3786_v5  ;;  %v5412_v51 = vmul.f32 %v3469_v33, %v1623_v61  ;;  %s5576_s28 = sld [smem:[#allocation8 + $0xcb]] }
 0x225   : > { %v1639_v10 = vstv %s5275_s14  ;;  %v1581_v6 = vrot.slane %v5398_v25, %v3783_v4  ;;  %v1585_v12 = vrot.slane %v5398_v25, %v3786_v5  ;;  %v1597_v8 = vrot.slane %v5401_v60, %v3783_v4  ;;  %s5582_s3 = sld [smem:[#allocation8 + $0xef]] }
 0x226   : > { %v1601_v29 = vrot.slane %v5401_v60, %v3786_v5  ;;  %v1613_v26 = vrot.slane %v5403_v44, %v3783_v4  ;;  %v1617_v59 = vrot.slane %v5403_v44, %v3786_v5  ;;  %v1629_v41 = vrot.slane %v5412_v51, %v3783_v4  ;;  %s5590_s22 = sld [smem:[#allocation8 + $0x113]] }
 0x227   : > { %v1633_v39 = vrot.slane %v5412_v51, %v3786_v5  ;;  %v1640_v15 = vmul.f32 %v3469_v33, %v1639_v10  ;;  %v1655_v24 = vstv %s5297_s24  ;;  %v1671_v43 = vstv %s5319_s26  ;;  %s5598_s11 = sld [smem:[#allocation8 + $0x20]] }
 0x228   : > { %v1687_v27 = vstv %s5335_s6  ;;  %v1656_v25 = vmul.f32 %v3469_v33, %v1655_v24  ;;  %v1672_v60 = vmul.f32 %v3469_v33, %v1671_v43  ;;  %v1703_v35 = vstv %s5345_s15  ;;  %s5608_s19 = sld [smem:[#allocation8 + $0x44]] }
 0x229   : > { %v1688_v61 = vmul.f32 %v3469_v33, %v1687_v27  ;;  %v1645_v44 = vrot.slane %v1640_v15, %v3783_v4  ;;  %v1649_v18 = vrot.slane %v1640_v15, %v3786_v5  ;;  %v1704_v53 = vmul.f32 %v3469_v33, %v1703_v35  ;;  %s5618_s14 = sld [smem:[#allocation8 + $0x68]] }
 0x22a   : > { %v1661_v10 = vrot.slane %v1656_v25, %v3783_v4  ;;  %v1665_v24 = vrot.slane %v1656_v25, %v3786_v5  ;;  %v1677_v43 = vrot.slane %v1672_v60, %v3783_v4  ;;  %v1681_v27 = vrot.slane %v1672_v60, %v3786_v5  ;;  %s5620_s24 = sld [smem:[#allocation8 + $0x8c]] }
 0x22b   : > { %v1693_v47 = vrot.slane %v1688_v61, %v3783_v4  ;;  %v1697_v42 = vrot.slane %v1688_v61, %v3786_v5  ;;  %v1709_v31 = vrot.slane %v1704_v53, %v3783_v4  ;;  %v1713_v15 = vrot.slane %v1704_v53, %v3786_v5  ;;  %s5622_s26 = sld [smem:[#allocation8 + $0xb0]] }
 0x22c   : > { %v1734_v35 = vstv %s5367_s16  ;;  %v1740_v33 = vstv %s5377_s0  ;;  %v1746_v51 = vstv %s5387_s7  ;;  %v1752_v22 = vstv %s5395_s10  ;;  %s5624_s6 = sld [smem:[#allocation8 + $0xd4]] }
 0x22d   : > { %v1476_v60 = vadd.f32 %v1469_v48, %v5246_v23  ;;  %v1477_v53 = vadd.f32 %v1473_v9, %v5251_v14  ;;  %v1492_v61 = vadd.f32 %v1485_v19, %v5258_v2  ;;  %v7348_v37 = vrot.slane %v5340_v52, %v3786_v5  ;;  %s5630_s15 = sld [smem:[#allocation8 + $0xf8]] }
 0x22e   : > { %v7349_v23 = vrot.slane %v5348_v50, %v3783_v4  ;;  %v7350_v46 = vrot.slane %v5348_v50, %v3786_v5  ;;  %v7351_v2 = vrot.slane %v5351_v11, %v3783_v4  ;;  %s5646_s16 = sld [smem:[#allocation8 + $0x6]] }
 0x22f   : > { %v1493_v25 = vadd.f32 %v7348_v37, %v5263_v36  ;;  %v7352_v36 = vrot.slane %v5351_v11, %v3786_v5  ;;  %s5656_s0 = sld [smem:[#allocation8 + $0x2a]] }
 0x230   : > { %v1508_v48 = vadd.f32 %v7349_v23, %v5268_v21  ;;  %v1509_v14 = vadd.f32 %v7350_v46, %v5273_v38  ;;  %v1524_v9 = vadd.f32 %v7351_v2, %v5280_v16  ;;  %v7353_v21 = vrot.slane %v5354_v34, %v3783_v4  ;;  %s5666_s7 = sld [smem:[#allocation8 + $0x4e]] }
 0x231   : > { %v1525_v52 = vadd.f32 %v7352_v36, %v5285_v28  ;;  %v7354_v38 = vrot.slane %v5354_v34, %v3786_v5  ;;  %v7355_v16 = vrot.slane %v5364_v32, %v3783_v4  ;;  %v7356_v28 = vrot.slane %v5364_v32, %v3786_v5  ;;  %v1721_v4 = vpop.permute.xlu1 %1720  ;;  %s5668_s10 = sld [smem:[#allocation8 + $0x72]] }
 0x232   : > { %v1540_v19 = vadd.f32 %v7353_v21, %v5290_v30  ;;  %v1572_v23 = vadd.f32 %v1565_v40, %v5312_v17  ;;  %v1573_v30 = vadd.f32 %v1569_v45, %v5317_v3  ;;  %v1588_v46 = vadd.f32 %v1581_v6, %v5324_v20 }
 0x233   : > { %v1541_v50 = vadd.f32 %v7354_v38, %v5295_v56  ;;  %v1556_v37 = vadd.f32 %v7355_v16, %v5302_v54  ;;  %v1557_v11 = vadd.f32 %v7356_v28, %v5307_v55  ;;  %v1589_v2 = vadd.f32 %v1585_v12, %v5329_v63  ;;  %v1719_v54 = vpop.permute.xlu0 %1718 }
 0x234   : > { %v1604_v34 = vadd.f32 %v1597_v8, %v1476_v60  ;;  %v1605_v56 = vadd.f32 %v1601_v29, %v1477_v53  ;;  %v1620_v36 = vadd.f32 %v1613_v26, %v1492_v61  ;;  %v1621_v21 = vadd.f32 %v1617_v59, %v1493_v25 }
 0x235   : > { %v1636_v38 = vadd.f32 %v1629_v41, %v1508_v48  ;;  %v1637_v16 = vadd.f32 %v1633_v39, %v1509_v14  ;;  %v1652_v0 = vadd.f32 %v1645_v44, %v1524_v9  ;;  %v1653_v5 = vadd.f32 %v1649_v18, %v1525_v52 }
 0x236   : > { %v1668_v55 = vadd.f32 %v1661_v10, %v1540_v19  ;;  %v1669_v17 = vadd.f32 %v1665_v24, %v1541_v50  ;;  %v1684_v3 = vadd.f32 %v1677_v43, %v1556_v37  ;;  %v1685_v20 = vadd.f32 %v1681_v27, %v1557_v11 }
 0x237   : > { %v1700_v63 = vadd.f32 %v1693_v47, %v1572_v23  ;;  %v1701_v32 = vadd.f32 %v1697_v42, %v1573_v30  ;;  %v1716_v40 = vadd.f32 %v1709_v31, %v1588_v46  ;;  %v1717_v45 = vadd.f32 %v1713_v15, %v1589_v2 }
 0x238   : > { %v1723_v18 = vsel %vm1722_vm11, %v1719_v54, %v1721_v4  ;;  %v1724_v6 = vsel %vm1722_vm11, %v1721_v4, %v1719_v54  ;;  %v1784_v47 = vstv %s5454_s29  ;;  %v1790_v12 = vstv %s5463_s17  ;;  %v1776_v4 = vpop.permute.xlu0 %1775  ;;  %s5680_s29 = sld [smem:[#allocation8 + $0x102]] }
 0x239   : > { %v1725_v31 = vsel %vm4561_vm7, %v1723_v18, 0.0  ;;  %v1726_v42 = vsel %vm4577_vm8, %v1724_v6, 0.0  ;;  %v1796_v8 = vstv %s5481_s4  ;;  %v1802_v29 = vstv %s5499_s1  ;;  %s5688_s17 = sld [smem:[#allocation8 + $0xf]] }
 0x23a   : > { %v7357_v26 = vstv %s5357_s2  ;;  %v1735_v44 = vmul.f32 %v1734_v35, %v1725_v31  ;;  %v1736_v10 = vmul.f32 %v1734_v35, %v1726_v42  ;;  %v1741_v24 = vmul.f32 %v1740_v33, %v1725_v31  ;;  %s5638_s2 = sld [smem:[#allocation8 + $0x11c]] }
 0x23b   : > { %v1729_v59 = vmul.f32 %v7357_v26, %v1725_v31  ;;  %v7358_v41 = vmov %v7357_v26  ;;  %v1742_v43 = vmul.f32 %v1740_v33, %v1726_v42  ;;  %v1747_v27 = vmul.f32 %v1746_v51, %v1725_v31  ;;  %s5696_s4 = sld [smem:[#allocation8 + $0x33]] }
 0x23c   : > { %v1730_v39 = vmul.f32 %v7358_v41, %v1726_v42  ;;  %v1748_v15 = vmul.f32 %v1746_v51, %v1726_v42  ;;  %v1737_v60 = vadd.f32 %v1735_v44, %v1620_v36  ;;  %v1738_v53 = vadd.f32 %v1736_v10, %v1621_v21  ;;  %s5706_s1 = sld [smem:[#allocation8 + $0x57]] }
 0x23d   : > { %v1731_v35 = vadd.f32 %v1729_v59, %v1604_v34  ;;  %v1743_v61 = vadd.f32 %v1741_v24, %v1636_v38  ;;  %v1744_v48 = vadd.f32 %v1742_v43, %v1637_v16  ;;  %v1749_v33 = vadd.f32 %v1747_v27, %v1652_v0  ;;  %v1778_v38 = vpop.permute.xlu1 %1777 }
 0x23e   : > { %v1732_v25 = vadd.f32 %v1730_v39, %v1605_v56  ;;  %v1750_v14 = vadd.f32 %v1748_v15, %v1653_v5  ;;  %v1753_v9 = vmul.f32 %v1752_v22, %v1725_v31  ;;  %v1754_v52 = vmul.f32 %v1752_v22, %v1726_v42 }
 0x23f   : > { %v7359_v51 = vstv %s5406_s8  ;;  %v7361_v28 = vstv %s5415_s12  ;;  %v7363_v46 = vstv %s5425_s25  ;;  %v1808_v6 = vstv %s5517_s9  ;;  %s5670_s8 = sld [smem:[#allocation8 + $0x96]] }
 0x240   : > { %v1759_v19 = vmul.f32 %v7359_v51, %v1725_v31  ;;  %v7360_v50 = vmov %v7359_v51  ;;  %v1765_v11 = vmul.f32 %v7361_v28, %v1725_v31  ;;  %v7362_v23 = vmov %v7361_v28  ;;  %s5672_s12 = sld [smem:[#allocation8 + $0xba]] }
 0x241   : > { %v1760_v37 = vmul.f32 %v7360_v50, %v1726_v42  ;;  %v1766_v30 = vmul.f32 %v7362_v23, %v1726_v42  ;;  %v1771_v2 = vmul.f32 %v7363_v46, %v1725_v31  ;;  %v7364_v34 = vmov %v7363_v46  ;;  %s5674_s25 = sld [smem:[#allocation8 + $0xde]] }
 0x242   : > { %v1772_v0 = vmul.f32 %v7364_v34, %v1726_v42  ;;  %v1755_v56 = vadd.f32 %v1753_v9, %v1668_v55  ;;  %v1756_v36 = vadd.f32 %v1754_v52, %v1669_v17  ;;  %v1761_v21 = vadd.f32 %v1759_v19, %v1684_v3  ;;  %s5716_s9 = sld [smem:[#allocation8 + $0x7b]] }
 0x243   : > { %v1762_v22 = vadd.f32 %v1760_v37, %v1685_v20  ;;  %v1767_v54 = vadd.f32 %v1765_v11, %v1700_v63  ;;  %v1768_v16 = vadd.f32 %v1766_v30, %v1701_v32  ;;  %v1773_v5 = vadd.f32 %v1771_v2, %v1716_v40 }
 0x244   : > { %v1774_v18 = vadd.f32 %v1772_v0, %v1717_v45  ;;  %v1814_v55 = vstv %s5519_s13  ;;  %v1820_v17 = vstv %s5522_s18  ;;  %v1826_v3 = vstv %s5530_s20  ;;  %s5718_s13 = sld [smem:[#allocation8 + $0x9f]] }
 0x245   : > { %v1779_v20 = vsel %vm1722_vm11, %v1776_v4, %v1778_v38  ;;  %v1780_v63 = vsel %vm1722_vm11, %v1778_v38, %v1776_v4  ;;  %v1840_v32 = vstv %s5538_s23  ;;  %v1846_v40 = vstv %s5544_s5  ;;  %s5720_s18 = sld [smem:[#allocation8 + $0xc3]] }
 0x246   : > { %v1781_v45 = vsel %vm4561_vm7, %v1779_v20, 0.0  ;;  %v1782_v31 = vsel %vm4577_vm8, %v1780_v63, 0.0  ;;  %v1852_v42 = vstv %s5554_s30  ;;  %v1858_v26 = vstv %s5556_s27  ;;  %s5744_s20 = sld [smem:[#allocation8 + $0xe7]] }
 0x247   : > { %v1785_v59 = vmul.f32 %v1784_v47, %v1781_v45  ;;  %v1786_v41 = vmul.f32 %v1784_v47, %v1782_v31  ;;  %v1791_v39 = vmul.f32 %v1790_v12, %v1781_v45  ;;  %v1792_v44 = vmul.f32 %v1790_v12, %v1782_v31  ;;  %s5752_s23 = sld [smem:[#allocation8 + $0x10b]] }
 0x248   : > { %v1797_v10 = vmul.f32 %v1796_v8, %v1781_v45  ;;  %v1798_v24 = vmul.f32 %v1796_v8, %v1782_v31  ;;  %v1803_v43 = vmul.f32 %v1802_v29, %v1781_v45  ;;  %v1804_v27 = vmul.f32 %v1802_v29, %v1782_v31  ;;  %s5762_s5 = sld [smem:[#allocation8 + $0x18]] }
 0x249   : > { %v1787_v15 = vadd.f32 %v1785_v59, %v1731_v35  ;;  %v1788_v9 = vadd.f32 %v1786_v41, %v1732_v25  ;;  %v1793_v52 = vadd.f32 %v1791_v39, %v1737_v60  ;;  %v1794_v47 = vadd.f32 %v1792_v44, %v1738_v53  ;;  %s5772_s30 = sld [smem:[#allocation8 + $0x3c]] }
 0x24a   : > { %v1799_v51 = vadd.f32 %v1797_v10, %v1743_v61  ;;  %v1800_v12 = vadd.f32 %v1798_v24, %v1744_v48  ;;  %v1805_v19 = vadd.f32 %v1803_v43, %v1749_v33  ;;  %v1806_v50 = vadd.f32 %v1804_v27, %v1750_v14  ;;  %v1834_v61 = vpop.permute.xlu1 %1833  ;;  %v1832_v48 = vpop.permute.xlu0 %1831  ;;  %s5774_s27 = sld [smem:[#allocation8 + $0x60]] }
 0x24b   : > { %v1809_v37 = vmul.f32 %v1808_v6, %v1781_v45  ;;  %v1810_v28 = vmul.f32 %v1808_v6, %v1782_v31  ;;  %v1815_v11 = vmul.f32 %v1814_v55, %v1781_v45  ;;  %v1816_v8 = vmul.f32 %v1814_v55, %v1782_v31 }
 0x24c   : > { %v1821_v23 = vmul.f32 %v1820_v17, %v1781_v45  ;;  %v1822_v30 = vmul.f32 %v1820_v17, %v1782_v31  ;;  %v1827_v29 = vmul.f32 %v1826_v3, %v1781_v45  ;;  %v1828_v35 = vmul.f32 %v1826_v3, %v1782_v31 }
 0x24d   : > { %v1811_v25 = vadd.f32 %v1809_v37, %v1755_v56  ;;  %v1812_v60 = vadd.f32 %v1810_v28, %v1756_v36  ;;  %v1817_v53 = vadd.f32 %v1815_v11, %v1761_v21  ;;  %v1818_v46 = vadd.f32 %v1816_v8, %v1762_v22 }
 0x24e   : > { %v1823_v33 = vadd.f32 %v1821_v23, %v1767_v54  ;;  %v1824_v14 = vadd.f32 %v1822_v30, %v1768_v16  ;;  %v1829_v2 = vadd.f32 %v1827_v29, %v1773_v5  ;;  %v1830_v34 = vadd.f32 %v1828_v35, %v1774_v18 }
 0x24f   : > { %v1864_v0 = vstv %s5574_s21  ;;  %v1870_v56 = vstv %s5576_s28  ;;  %v1876_v36 = vstv %s5582_s3  ;;  %v1882_v21 = vstv %s5590_s22  ;;  %s5776_s21 = sld [smem:[#allocation8 + $0x84]] }
 0x250   : > { %v1835_v22 = vsel %vm1722_vm11, %v1832_v48, %v1834_v61  ;;  %v1836_v38 = vsel %vm1722_vm11, %v1834_v61, %v1832_v48  ;;  %v1896_v4 = vstv %s5598_s11  ;;  %v1902_v54 = vstv %s5608_s19  ;;  %s5778_s28 = sld [smem:[#allocation8 + $0xa8]] }
 0x251   : > { %v1837_v16 = vsel %vm4561_vm7, %v1835_v22, 0.0  ;;  %v1838_v5 = vsel %vm4577_vm8, %v1836_v38, 0.0  ;;  %v1908_v18 = vstv %s5618_s14  ;;  %v1914_v6 = vstv %s5620_s24  ;;  %s5786_s3 = sld [smem:[#allocation8 + $0xcc]] }
 0x252   : > { %v1841_v55 = vmul.f32 %v1840_v32, %v1837_v16  ;;  %v1842_v17 = vmul.f32 %v1840_v32, %v1838_v5  ;;  %v1847_v3 = vmul.f32 %v1846_v40, %v1837_v16  ;;  %v1848_v20 = vmul.f32 %v1846_v40, %v1838_v5  ;;  %s5794_s22 = sld [smem:[#allocation8 + $0xf0]] }
 0x253   : > { %v1853_v63 = vmul.f32 %v1852_v42, %v1837_v16  ;;  %v1854_v45 = vmul.f32 %v1852_v42, %v1838_v5  ;;  %v1859_v31 = vmul.f32 %v1858_v26, %v1837_v16  ;;  %v1860_v59 = vmul.f32 %v1858_v26, %v1838_v5  ;;  %s5804_s11 = sld [smem:[#allocation8 + $0x114]] }
 0x254   : > { %v1843_v41 = vadd.f32 %v1841_v55, %v1787_v15  ;;  %v1844_v39 = vadd.f32 %v1842_v17, %v1788_v9  ;;  %v1849_v44 = vadd.f32 %v1847_v3, %v1793_v52  ;;  %v1850_v32 = vadd.f32 %v1848_v20, %v1794_v47  ;;  %s5814_s19 = sld [smem:[#allocation8 + $0x21]] }
 0x255   : > { %v1855_v10 = vadd.f32 %v1853_v63, %v1799_v51  ;;  %v1856_v40 = vadd.f32 %v1854_v45, %v1800_v12  ;;  %v1861_v24 = vadd.f32 %v1859_v31, %v1805_v19  ;;  %v1862_v43 = vadd.f32 %v1860_v59, %v1806_v50  ;;  %v1890_v51 = vpop.permute.xlu1 %1889  ;;  %v1888_v12 = vpop.permute.xlu0 %1887  ;;  %s5816_s14 = sld [smem:[#allocation8 + $0x45]] }
 0x256   : > { %v1865_v27 = vmul.f32 %v1864_v0, %v1837_v16  ;;  %v1866_v37 = vmul.f32 %v1864_v0, %v1838_v5  ;;  %v1871_v28 = vmul.f32 %v1870_v56, %v1837_v16  ;;  %v1872_v42 = vmul.f32 %v1870_v56, %v1838_v5  ;;  %s5826_s24 = sld [smem:[#allocation8 + $0x69]] }
 0x257   : > { %v1877_v11 = vmul.f32 %v1876_v36, %v1837_v16  ;;  %v1878_v8 = vmul.f32 %v1876_v36, %v1838_v5  ;;  %v1883_v26 = vmul.f32 %v1882_v21, %v1837_v16  ;;  %v1884_v23 = vmul.f32 %v1882_v21, %v1838_v5 }
 0x258   : > { %v1867_v15 = vadd.f32 %v1865_v27, %v1811_v25  ;;  %v1868_v9 = vadd.f32 %v1866_v37, %v1812_v60  ;;  %v1873_v52 = vadd.f32 %v1871_v28, %v1817_v53  ;;  %v1874_v47 = vadd.f32 %v1872_v42, %v1818_v46 }
 0x259   : > { %v1879_v19 = vadd.f32 %v1877_v11, %v1823_v33  ;;  %v1880_v50 = vadd.f32 %v1878_v8, %v1824_v14  ;;  %v1885_v30 = vadd.f32 %v1883_v26, %v1829_v2  ;;  %v1886_v29 = vadd.f32 %v1884_v23, %v1830_v34  ;;  %v1948_v8 = vpop.permute.xlu1 %1947  ;;  %v1946_v26 = vpop.permute.xlu0 %1945 }
 0x25a   : > { %v1920_v35 = vstv %s5622_s26  ;;  %v1926_v25 = vstv %s5624_s6  ;;  %v1932_v60 = vstv %s5630_s15  ;;  %v1938_v53 = vstv %s5638_s2  ;;  %s5828_s26 = sld [smem:[#allocation8 + $0x8d]] }
 0x25b   : > { %v1891_v46 = vsel %vm1722_vm11, %v1888_v12, %v1890_v51  ;;  %v1892_v61 = vsel %vm1722_vm11, %v1890_v51, %v1888_v12  ;;  %v1955_v48 = vstv %s5646_s16  ;;  %v1961_v33 = vstv %s5656_s0  ;;  %s5834_s6 = sld [smem:[#allocation8 + $0xb1]] }
 0x25c   : > { %v1893_v14 = vsel %vm4561_vm7, %v1891_v46, 0.0  ;;  %v1894_v2 = vsel %vm4577_vm8, %v1892_v61, 0.0  ;;  %v1967_v34 = vstv %s5666_s7  ;;  %v1973_v0 = vstv %s5668_s10  ;;  %s5842_s15 = sld [smem:[#allocation8 + $0xd5]] }
 0x25d   : > { %v1897_v56 = vmul.f32 %v1896_v4, %v1893_v14  ;;  %v1898_v36 = vmul.f32 %v1896_v4, %v1894_v2  ;;  %v1903_v21 = vmul.f32 %v1902_v54, %v1893_v14  ;;  %v1904_v22 = vmul.f32 %v1902_v54, %v1894_v2  ;;  %s5850_s2 = sld [smem:[#allocation8 + $0xf9]] }
 0x25e   : > { %v1909_v38 = vmul.f32 %v1908_v18, %v1893_v14  ;;  %v1910_v16 = vmul.f32 %v1908_v18, %v1894_v2  ;;  %v1915_v5 = vmul.f32 %v1914_v6, %v1893_v14  ;;  %v1916_v55 = vmul.f32 %v1914_v6, %v1894_v2  ;;  %s5852_s16 = sld [smem:[#allocation8 + $0x11d]] }
 0x25f   : > { %v1899_v17 = vadd.f32 %v1897_v56, %v1843_v41  ;;  %v1900_v3 = vadd.f32 %v1898_v36, %v1844_v39  ;;  %v1905_v20 = vadd.f32 %v1903_v21, %v1849_v44  ;;  %v1906_v4 = vadd.f32 %v1904_v22, %v1850_v32  ;;  %s5854_s0 = sld [smem:[#allocation8 + $0x7]] }
 0x260   : > { %v1911_v63 = vadd.f32 %v1909_v38, %v1855_v10  ;;  %v1912_v54 = vadd.f32 %v1910_v16, %v1856_v40  ;;  %v1917_v45 = vadd.f32 %v1915_v5, %v1861_v24  ;;  %v1918_v31 = vadd.f32 %v1916_v55, %v1862_v43  ;;  %s5856_s7 = sld [smem:[#allocation8 + $0x2b]] }
 0x261   : > { %v1921_v59 = vmul.f32 %v1920_v35, %v1893_v14  ;;  %v1922_v18 = vmul.f32 %v1920_v35, %v1894_v2  ;;  %v1927_v27 = vmul.f32 %v1926_v25, %v1893_v14  ;;  %v1928_v37 = vmul.f32 %v1926_v25, %v1894_v2  ;;  %s5858_s10 = sld [smem:[#allocation8 + $0x4f]] }
 0x262   : > { %v1933_v6 = vmul.f32 %v1932_v60, %v1893_v14  ;;  %v1934_v41 = vmul.f32 %v1932_v60, %v1894_v2  ;;  %v1939_v39 = vmul.f32 %v1938_v53, %v1893_v14  ;;  %v1940_v44 = vmul.f32 %v1938_v53, %v1894_v2 }
 0x263   : > { %v1923_v32 = vadd.f32 %v1921_v59, %v1867_v15  ;;  %v1924_v10 = vadd.f32 %v1922_v18, %v1868_v9  ;;  %v1929_v40 = vadd.f32 %v1927_v27, %v1873_v52  ;;  %v1930_v24 = vadd.f32 %v1928_v37, %v1874_v47 }
 0x264   : > { %v1935_v43 = vadd.f32 %v1933_v6, %v1879_v19  ;;  %v1936_v28 = vadd.f32 %v1934_v41, %v1880_v50  ;;  %v1941_v42 = vadd.f32 %v1939_v39, %v1885_v30  ;;  %v1942_v11 = vadd.f32 %v1940_v44, %v1886_v29  ;;  %v2005_v44 = vpop.permute.xlu1 %2004 }
 0x265   : > { %v1979_v23 = vstv %s5670_s8  ;;  %v1985_v51 = vstv %s5672_s12  ;;  %v1991_v12 = vstv %s5674_s25  ;;  %v1997_v35 = vstv %s5680_s29  ;;  %s5860_s8 = sld [smem:[#allocation8 + $0x73]] }
 0x266   : > { %v2011_v15 = vstv %s5688_s17  ;;  %v2017_v9 = vstv %s5696_s4  ;;  %v1950_v47 = vsel %vm1949_vm13, %v1946_v26, %v1948_v8  ;;  %v1951_v19 = vsel %vm1949_vm13, %v1948_v8, %v1946_v26  ;;  %v2003_v8 = vpop.permute.xlu0 %2002  ;;  %s5862_s12 = sld [smem:[#allocation8 + $0x97]] }
 0x267   : > { %v2023_v50 = vstv %s5706_s1  ;;  %v2029_v30 = vstv %s5716_s9  ;;  %v1952_v57 = vsel %vm4226_vm1, %v1950_v47, 0.0  ;;  %v1953_v29 = vsel %vm5734_vm14, %v1951_v19, 0.0  ;;  %s5868_s25 = sld [smem:[#allocation8 + $0xbb]] }
 0x268   : > { %v2035_v25 = vstv %s5718_s13  ;;  %v2041_v60 = vstv %s5720_s18  ;;  %v1956_v53 = vmul.f32 %v1955_v48, %v1952_v57  ;;  %v1957_v46 = vmul.f32 %v1955_v48, %v1953_v29  ;;  %s5876_s29 = sld [smem:[#allocation8 + $0xdf]] }
 0x269   : > { %v1962_v61 = vmul.f32 %v1961_v33, %v1952_v57  ;;  %v1963_v14 = vmul.f32 %v1961_v33, %v1953_v29  ;;  %v1968_v2 = vmul.f32 %v1967_v34, %v1952_v57  ;;  %v1969_v56 = vmul.f32 %v1967_v34, %v1953_v29  ;;  %s5884_s17 = sld [smem:[#allocation8 + $0x103]] }
 0x26a   : > { %v1974_v36 = vmul.f32 %v1973_v0, %v1952_v57  ;;  %v1975_v21 = vmul.f32 %v1973_v0, %v1953_v29  ;;  %v1958_v22 = vadd.f32 %v1956_v53, %v1899_v17  ;;  %v1959_v38 = vadd.f32 %v1957_v46, %v1900_v3  ;;  %s5886_s4 = sld [smem:[#allocation8 + $0x10]] }
 0x26b   : > { %v1964_v16 = vadd.f32 %v1962_v61, %v1905_v20  ;;  %v1965_v48 = vadd.f32 %v1963_v14, %v1906_v4  ;;  %v1970_v5 = vadd.f32 %v1968_v2, %v1911_v63  ;;  %v1971_v55 = vadd.f32 %v1969_v56, %v1912_v54  ;;  %s5888_s1 = sld [smem:[#allocation8 + $0x34]] }
 0x26c   : > { %v1976_v59 = vadd.f32 %v1974_v36, %v1917_v45  ;;  %v1977_v33 = vadd.f32 %v1975_v21, %v1918_v31  ;;  %v1980_v18 = vmul.f32 %v1979_v23, %v1952_v57  ;;  %v1981_v27 = vmul.f32 %v1979_v23, %v1953_v29  ;;  %s5890_s9 = sld [smem:[#allocation8 + $0x58]] }
 0x26d   : > { %v1986_v37 = vmul.f32 %v1985_v51, %v1952_v57  ;;  %v1987_v6 = vmul.f32 %v1985_v51, %v1953_v29  ;;  %v1992_v41 = vmul.f32 %v1991_v12, %v1952_v57  ;;  %v1993_v34 = vmul.f32 %v1991_v12, %v1953_v29  ;;  %s5896_s13 = sld [smem:[#allocation8 + $0x7c]] }
 0x26e   : > { %v1998_v39 = vmul.f32 %v1997_v35, %v1952_v57  ;;  %v1999_v0 = vmul.f32 %v1997_v35, %v1953_v29  ;;  %v1982_v17 = vadd.f32 %v1980_v18, %v1923_v32  ;;  %v1983_v3 = vadd.f32 %v1981_v27, %v1924_v10  ;;  %s5902_s18 = sld [smem:[#allocation8 + $0xa0]] }
 0x26f   : > { %v1988_v20 = vadd.f32 %v1986_v37, %v1929_v40  ;;  %v1989_v4 = vadd.f32 %v1987_v6, %v1930_v24  ;;  %v1994_v63 = vadd.f32 %v1992_v41, %v1935_v43  ;;  %v1995_v54 = vadd.f32 %v1993_v34, %v1936_v28 }
 0x270   : > { %v2000_v45 = vadd.f32 %v1998_v39, %v1941_v42  ;;  %v2001_v31 = vadd.f32 %v1999_v0, %v1942_v11  ;;  %v2047_v26 = vstv %s5744_s20  ;;  %v2053_v32 = vstv %s5752_s23  ;;  %s5910_s20 = sld [smem:[#allocation8 + $0xc4]] }
 0x271   : > { %v2006_v10 = vsel %vm1949_vm13, %v2003_v8, %v2005_v44  ;;  %v2007_v40 = vsel %vm1949_vm13, %v2005_v44, %v2003_v8  ;;  %v2067_v28 = vstv %s5762_s5  ;;  %v2073_v42 = vstv %s5772_s30  ;;  %s5914_s23 = sld [smem:[#allocation8 + $0xe8]] }
 0x272   : > { %v2008_v24 = vsel %vm4226_vm1, %v2006_v10, 0.0  ;;  %v2009_v43 = vsel %vm5734_vm14, %v2007_v40, 0.0  ;;  %v2079_v6 = vstv %s5774_s27  ;;  %v2085_v41 = vstv %s5776_s21  ;;  %s5916_s5 = sld [smem:[#allocation8 + $0x10c]] }
 0x273   : > { %v2012_v11 = vmul.f32 %v2011_v15, %v2008_v24  ;;  %v2013_v23 = vmul.f32 %v2011_v15, %v2009_v43  ;;  %v2018_v51 = vmul.f32 %v2017_v9, %v2008_v24  ;;  %v2019_v12 = vmul.f32 %v2017_v9, %v2009_v43  ;;  %s5918_s30 = sld [smem:[#allocation8 + $0x19]] }
 0x274   : > { %v2024_v35 = vmul.f32 %v2023_v50, %v2008_v24  ;;  %v2025_v47 = vmul.f32 %v2023_v50, %v2009_v43  ;;  %v2030_v19 = vmul.f32 %v2029_v30, %v2008_v24  ;;  %v2031_v57 = vmul.f32 %v2029_v30, %v2009_v43  ;;  %s5920_s27 = sld [smem:[#allocation8 + $0x3d]] }
 0x275   : > { %v2014_v15 = vadd.f32 %v2012_v11, %v1958_v22  ;;  %v2015_v29 = vadd.f32 %v2013_v23, %v1959_v38  ;;  %v2020_v53 = vadd.f32 %v2018_v51, %v1964_v16  ;;  %v2021_v9 = vadd.f32 %v2019_v12, %v1965_v48  ;;  %s5922_s21 = sld [smem:[#allocation8 + $0x61]] }
 0x276   : > { %v2026_v46 = vadd.f32 %v2024_v35, %v1970_v5  ;;  %v2027_v61 = vadd.f32 %v2025_v47, %v1971_v55  ;;  %v2032_v14 = vadd.f32 %v2030_v19, %v1976_v59  ;;  %v2033_v2 = vadd.f32 %v2031_v57, %v1977_v33  ;;  %v2061_v33 = vpop.permute.xlu1 %2060 }
 0x277   : > { %v2036_v56 = vmul.f32 %v2035_v25, %v2008_v24  ;;  %v2037_v50 = vmul.f32 %v2035_v25, %v2009_v43  ;;  %v2042_v36 = vmul.f32 %v2041_v60, %v2008_v24  ;;  %v2043_v30 = vmul.f32 %v2041_v60, %v2009_v43  ;;  %v2059_v25 = vpop.permute.xlu0 %2058 }
 0x278   : > { %v2048_v21 = vmul.f32 %v2047_v26, %v2008_v24  ;;  %v2049_v22 = vmul.f32 %v2047_v26, %v2009_v43  ;;  %v2054_v38 = vmul.f32 %v2053_v32, %v2008_v24  ;;  %v2055_v16 = vmul.f32 %v2053_v32, %v2009_v43 }
 0x279   : > { %v2038_v48 = vadd.f32 %v2036_v56, %v1982_v17  ;;  %v2039_v5 = vadd.f32 %v2037_v50, %v1983_v3  ;;  %v2044_v55 = vadd.f32 %v2042_v36, %v1988_v20  ;;  %v2045_v59 = vadd.f32 %v2043_v30, %v1989_v4 }
 0x27a   : > { %v2050_v18 = vadd.f32 %v2048_v21, %v1994_v63  ;;  %v2051_v60 = vadd.f32 %v2049_v22, %v1995_v54  ;;  %v2056_v27 = vadd.f32 %v2054_v38, %v2000_v45  ;;  %v2057_v37 = vadd.f32 %v2055_v16, %v2001_v31 }
 0x27b   : > { %v2091_v34 = vstv %s5778_s28  ;;  %v2097_v39 = vstv %s5786_s3  ;;  %v2103_v0 = vstv %s5794_s22  ;;  %v2109_v44 = vstv %s5804_s11  ;;  %s5924_s28 = sld [smem:[#allocation8 + $0x85]] }
 0x27c   : > { %v2062_v8 = vsel %vm1949_vm13, %v2059_v25, %v2061_v33  ;;  %v2063_v17 = vsel %vm1949_vm13, %v2061_v33, %v2059_v25  ;;  %v2123_v4 = vstv %s5814_s19  ;;  %v2129_v63 = vstv %s5816_s14  ;;  %s5926_s3 = sld [smem:[#allocation8 + $0xa9]] }
 0x27d   : > { %v2064_v3 = vsel %vm4226_vm1, %v2062_v8, 0.0  ;;  %v2065_v20 = vsel %vm5734_vm14, %v2063_v17, 0.0  ;;  %v2135_v16 = vstv %s5826_s24  ;;  %v2141_v33 = vstv %s5828_s26  ;;  %s5928_s22 = sld [smem:[#allocation8 + $0xcd]] }
 0x27e   : > { %v2068_v54 = vmul.f32 %v2067_v28, %v2064_v3  ;;  %v2069_v45 = vmul.f32 %v2067_v28, %v2065_v20  ;;  %v2074_v31 = vmul.f32 %v2073_v42, %v2064_v3  ;;  %v2075_v26 = vmul.f32 %v2073_v42, %v2065_v20  ;;  %s5933_s11 = sld [smem:[#allocation8 + $0xf1]] }
 0x27f   : > { %v2080_v32 = vmul.f32 %v2079_v6, %v2064_v3  ;;  %v2081_v10 = vmul.f32 %v2079_v6, %v2065_v20  ;;  %v2086_v40 = vmul.f32 %v2085_v41, %v2064_v3  ;;  %v2087_v24 = vmul.f32 %v2085_v41, %v2065_v20  ;;  %s5941_s19 = sld [smem:[#allocation8 + $0x115]] }
 0x280   : > { %v2070_v43 = vadd.f32 %v2068_v54, %v2014_v15  ;;  %v2071_v11 = vadd.f32 %v2069_v45, %v2015_v29  ;;  %v2076_v23 = vadd.f32 %v2074_v31, %v2020_v53  ;;  %v2077_v51 = vadd.f32 %v2075_v26, %v2021_v9  ;;  %s5947_s14 = sld [smem:[#allocation8 + $0x22]] }
 0x281   : > { %v2082_v12 = vadd.f32 %v2080_v32, %v2026_v46  ;;  %v2083_v35 = vadd.f32 %v2081_v10, %v2027_v61  ;;  %v2088_v47 = vadd.f32 %v2086_v40, %v2032_v14  ;;  %v2089_v28 = vadd.f32 %v2087_v24, %v2033_v2  ;;  %v2117_v46 = vpop.permute.xlu1 %2116  ;;  %v2115_v61 = vpop.permute.xlu0 %2114  ;;  %s5951_s24 = sld [smem:[#allocation8 + $0x46]] }
 0x282   : > { %v2092_v19 = vmul.f32 %v2091_v34, %v2064_v3  ;;  %v2093_v42 = vmul.f32 %v2091_v34, %v2065_v20  ;;  %v2098_v57 = vmul.f32 %v2097_v39, %v2064_v3  ;;  %v2099_v56 = vmul.f32 %v2097_v39, %v2065_v20  ;;  %s5953_s26 = sld [smem:[#allocation8 + $0x6a]] }
 0x283   : > { %v2104_v50 = vmul.f32 %v2103_v0, %v2064_v3  ;;  %v2105_v36 = vmul.f32 %v2103_v0, %v2065_v20  ;;  %v2110_v30 = vmul.f32 %v2109_v44, %v2064_v3  ;;  %v2111_v21 = vmul.f32 %v2109_v44, %v2065_v20 }
 0x284   : > { %v2094_v15 = vadd.f32 %v2092_v19, %v2038_v48  ;;  %v2095_v29 = vadd.f32 %v2093_v42, %v2039_v5  ;;  %v2100_v53 = vadd.f32 %v2098_v57, %v2044_v55  ;;  %v2101_v9 = vadd.f32 %v2099_v56, %v2045_v59 }
 0x285   : > { %v2106_v14 = vadd.f32 %v2104_v50, %v2050_v18  ;;  %v2107_v2 = vadd.f32 %v2105_v36, %v2051_v60  ;;  %v2112_v22 = vadd.f32 %v2110_v30, %v2056_v27  ;;  %v2113_v38 = vadd.f32 %v2111_v21, %v2057_v37  ;;  %v2173_v56 = vpop.permute.xlu1 %2172  ;;  %v2171_v50 = vpop.permute.xlu0 %2170 }
 0x286   : > { %v2147_v48 = vstv %s5834_s6  ;;  %v2153_v5 = vstv %s5842_s15  ;;  %v2159_v55 = vstv %s5850_s2  ;;  %v2165_v59 = vstv %s5852_s16  ;;  %s5955_s6 = sld [smem:[#allocation8 + $0x8e]] }
 0x287   : > { %v2118_v25 = vsel %vm1949_vm13, %v2115_v61, %v2117_v46  ;;  %v2119_v18 = vsel %vm1949_vm13, %v2117_v46, %v2115_v61  ;;  %v2180_v37 = vstv %s5854_s0  ;;  %v2186_v6 = vstv %s5856_s7  ;;  %s5957_s15 = sld [smem:[#allocation8 + $0xb2]] }
 0x288   : > { %v2120_v60 = vsel %vm4226_vm1, %v2118_v25, 0.0  ;;  %v2121_v27 = vsel %vm5734_vm14, %v2119_v18, 0.0  ;;  %v2192_v36 = vstv %s5858_s10  ;;  %v2198_v30 = vstv %s5860_s8  ;;  %s5959_s2 = sld [smem:[#allocation8 + $0xd6]] }
 0x289   : > { %v2124_v41 = vmul.f32 %v2123_v4, %v2120_v60  ;;  %v2125_v34 = vmul.f32 %v2123_v4, %v2121_v27  ;;  %v2130_v39 = vmul.f32 %v2129_v63, %v2120_v60  ;;  %v2131_v0 = vmul.f32 %v2129_v63, %v2121_v27  ;;  %s5961_s16 = sld [smem:[#allocation8 + $0xfa]] }
 0x28a   : > { %v2136_v44 = vmul.f32 %v2135_v16, %v2120_v60  ;;  %v2137_v8 = vmul.f32 %v2135_v16, %v2121_v27  ;;  %v2142_v17 = vmul.f32 %v2141_v33, %v2120_v60  ;;  %v2143_v3 = vmul.f32 %v2141_v33, %v2121_v27  ;;  %s5963_s0 = sld [smem:[#allocation8 + $0x11e]] }
 0x28b   : > { %v2126_v62 = vadd.f32 %v2124_v41, %v2070_v43  ;;  %v2127_v20 = vadd.f32 %v2125_v34, %v2071_v11  ;;  %v2132_v52 = vadd.f32 %v2130_v39, %v2076_v23  ;;  %v2133_v54 = vadd.f32 %v2131_v0, %v2077_v51  ;;  %s5968_s7 = sld [smem:[#allocation8 + $0x8]] }
 0x28c   : > { %v2138_v45 = vadd.f32 %v2136_v44, %v2082_v12  ;;  %v2139_v31 = vadd.f32 %v2137_v8, %v2083_v35  ;;  %v2144_v26 = vadd.f32 %v2142_v17, %v2088_v47  ;;  %v2145_v4 = vadd.f32 %v2143_v3, %v2089_v28  ;;  %s5974_s10 = sld [smem:[#allocation8 + $0x2c]] }
 0x28d   : > { %v2148_v32 = vmul.f32 %v2147_v48, %v2120_v60  ;;  %v2149_v63 = vmul.f32 %v2147_v48, %v2121_v27  ;;  %v2154_v10 = vmul.f32 %v2153_v5, %v2120_v60  ;;  %v2155_v40 = vmul.f32 %v2153_v5, %v2121_v27  ;;  %s5982_s8 = sld [smem:[#allocation8 + $0x50]] }
 0x28e   : > { %v2160_v24 = vmul.f32 %v2159_v55, %v2120_v60  ;;  %v2161_v19 = vmul.f32 %v2159_v55, %v2121_v27  ;;  %v2166_v43 = vmul.f32 %v2165_v59, %v2120_v60  ;;  %v2167_v11 = vmul.f32 %v2165_v59, %v2121_v27 }
 0x28f   : > { %v2150_v23 = vadd.f32 %v2148_v32, %v2094_v15  ;;  %v2151_v51 = vadd.f32 %v2149_v63, %v2095_v29  ;;  %v2156_v12 = vadd.f32 %v2154_v10, %v2100_v53  ;;  %v2157_v35 = vadd.f32 %v2155_v40, %v2101_v9 }
 0x290   : > { %v2162_v47 = vadd.f32 %v2160_v24, %v2106_v14  ;;  %v2163_v28 = vadd.f32 %v2161_v19, %v2107_v2  ;;  %v2168_v42 = vadd.f32 %v2166_v43, %v2112_v22  ;;  %v2169_v57 = vadd.f32 %v2167_v11, %v2113_v38 }
 0x291   : > { %v2204_v21 = vstv %s5862_s12  ;;  %v2210_v46 = vstv %s5868_s25  ;;  %v2216_v15 = vstv %s5876_s29  ;;  %v2222_v61 = vstv %s5884_s17  ;;  %s5986_s12 = sld [smem:[#allocation8 + $0x74]] }
 0x292   : > { %v2236_v29 = vstv %s5886_s4  ;;  %v2175_v53 = vsel %vm2174_vm15, %v2171_v50, %v2173_v56  ;;  %v2176_v9 = vsel %vm2174_vm15, %v2173_v56, %v2171_v50  ;;  %v2242_v14 = vstv %s5888_s1  ;;  %s5988_s25 = sld [smem:[#allocation8 + $0x98]] }
 0x293   : > { %v2248_v2 = vstv %s5890_s9  ;;  %v2178_v22 = vsel %vm249_vm12, %v2176_v9, 0.0  ;;  %v2181_v38 = vmul.f32 %v2180_v37, %v2175_v53  ;;  %v2187_v16 = vmul.f32 %v2186_v6, %v2175_v53  ;;  %s5990_s29 = sld [smem:[#allocation8 + $0xbc]] }
 0x294   : > { %v2193_v33 = vmul.f32 %v2192_v36, %v2175_v53  ;;  %v2182_v48 = vmul.f32 %v2180_v37, %v2178_v22  ;;  %v2188_v5 = vmul.f32 %v2186_v6, %v2178_v22  ;;  %v2194_v55 = vmul.f32 %v2192_v36, %v2178_v22  ;;  %s5992_s17 = sld [smem:[#allocation8 + $0xe0]] }
 0x295   : > { %v2199_v59 = vmul.f32 %v2198_v30, %v2175_v53  ;;  %v2183_v25 = vadd.f32 %v2181_v38, %v2126_v62  ;;  %v2189_v18 = vadd.f32 %v2187_v16, %v2132_v52  ;;  %v2200_v27 = vmul.f32 %v2198_v30, %v2178_v22  ;;  %s5994_s4 = sld [smem:[#allocation8 + $0x104]] }
 0x296   : > { %v2195_v60 = vadd.f32 %v2193_v33, %v2138_v45  ;;  %v2184_v41 = vadd.f32 %v2182_v48, %v2127_v20  ;;  %v2190_v34 = vadd.f32 %v2188_v5, %v2133_v54  ;;  %v2196_v39 = vadd.f32 %v2194_v55, %v2139_v31  ;;  %s5996_s1 = sld [smem:[#allocation8 + $0x11]] }
 0x297   : > { %v2201_v0 = vadd.f32 %v2199_v59, %v2144_v26  ;;  %v2202_v44 = vadd.f32 %v2200_v27, %v2145_v4  ;;  %v2205_v8 = vmul.f32 %v2204_v21, %v2175_v53  ;;  %v2206_v37 = vmul.f32 %v2204_v21, %v2178_v22  ;;  %v2230_v26 = vpop.permute.xlu1 %2229  ;;  %v2228_v4 = vpop.permute.xlu0 %2227  ;;  %s5998_s9 = sld [smem:[#allocation8 + $0x35]] }
 0x298   : > { %v2211_v6 = vmul.f32 %v2210_v46, %v2175_v53  ;;  %v2212_v17 = vmul.f32 %v2210_v46, %v2178_v22  ;;  %v2217_v3 = vmul.f32 %v2216_v15, %v2175_v53  ;;  %v2218_v62 = vmul.f32 %v2216_v15, %v2178_v22 }
 0x299   : > { %v2223_v52 = vmul.f32 %v2222_v61, %v2175_v53  ;;  %v2207_v20 = vadd.f32 %v2205_v8, %v2150_v23  ;;  %v2208_v54 = vadd.f32 %v2206_v37, %v2151_v51  ;;  %v2224_v31 = vmul.f32 %v2222_v61, %v2178_v22 }
 0x29a   : > { %v2213_v45 = vadd.f32 %v2211_v6, %v2156_v12  ;;  %v2214_v32 = vadd.f32 %v2212_v17, %v2157_v35  ;;  %v2219_v63 = vadd.f32 %v2217_v3, %v2162_v47  ;;  %v2220_v10 = vadd.f32 %v2218_v62, %v2163_v28 }
 0x29b   : > { %v2225_v40 = vadd.f32 %v2223_v52, %v2168_v42  ;;  %v2226_v24 = vadd.f32 %v2224_v31, %v2169_v57  ;;  %v2254_v19 = vstv %s5896_s13  ;;  %v2260_v43 = vstv %s5902_s18  ;;  %s6000_s13 = sld [smem:[#allocation8 + $0x59]] }
 0x29c   : > { %v2266_v11 = vstv %s5910_s20  ;;  %v2272_v23 = vstv %s5914_s23  ;;  %v2278_v51 = vstv %s5916_s5  ;;  %v2231_v12 = vsel %vm2174_vm15, %v2228_v4, %v2230_v26  ;;  %s6005_s18 = sld [smem:[#allocation8 + $0x7d]] }
 0x29d   : > { %v2232_v35 = vsel %vm2174_vm15, %v2230_v26, %v2228_v4  ;;  %v2237_v28 = vmul.f32 %v2236_v29, %v2231_v12  ;;  %v2243_v42 = vmul.f32 %v2242_v14, %v2231_v12  ;;  %v2249_v57 = vmul.f32 %v2248_v2, %v2231_v12  ;;  %s6011_s20 = sld [smem:[#allocation8 + $0xa1]] }
 0x29e   : > { %v2234_v47 = vsel %vm249_vm12, %v2232_v35, 0.0  ;;  %v2255_v30 = vmul.f32 %v2254_v19, %v2231_v12  ;;  %v2261_v33 = vmul.f32 %v2260_v43, %v2231_v12  ;;  %v2273_v48 = vmul.f32 %v2272_v23, %v2231_v12  ;;  %s6019_s23 = sld [smem:[#allocation8 + $0xc5]] }
 0x29f   : > { %v2238_v56 = vmul.f32 %v2236_v29, %v2234_v47  ;;  %v2244_v50 = vmul.f32 %v2242_v14, %v2234_v47  ;;  %v2250_v36 = vmul.f32 %v2248_v2, %v2234_v47  ;;  %v2239_v21 = vadd.f32 %v2237_v28, %v2183_v25  ;;  %s6025_s5 = sld [smem:[#allocation8 + $0xe9]] }
 0x2a0   : > { %v2245_v46 = vadd.f32 %v2243_v42, %v2189_v18  ;;  %v2251_v15 = vadd.f32 %v2249_v57, %v2195_v60  ;;  %v2256_v61 = vmul.f32 %v2254_v19, %v2234_v47  ;;  %v2257_v38 = vadd.f32 %v2255_v30, %v2201_v0  ;;  %v2286_v0 = vpop.permute.xlu1 %2285 }
 0x2a1   : > { %v2240_v53 = vadd.f32 %v2238_v56, %v2184_v41  ;;  %v2246_v9 = vadd.f32 %v2244_v50, %v2190_v34  ;;  %v2252_v22 = vadd.f32 %v2250_v36, %v2196_v39  ;;  %v2262_v29 = vmul.f32 %v2260_v43, %v2234_v47 }
 0x2a2   : > { %v2258_v16 = vadd.f32 %v2256_v61, %v2202_v44  ;;  %v2267_v14 = vmul.f32 %v2266_v11, %v2231_v12  ;;  %v2268_v2 = vmul.f32 %v2266_v11, %v2234_v47  ;;  %v2274_v5 = vmul.f32 %v2272_v23, %v2234_v47  ;;  %v2284_v44 = vpop.permute.xlu0 %2283 }
 0x2a3   : > { %v2279_v55 = vmul.f32 %v2278_v51, %v2231_v12  ;;  %v2263_v59 = vadd.f32 %v2261_v33, %v2207_v20  ;;  %v2264_v25 = vadd.f32 %v2262_v29, %v2208_v54  ;;  %v2280_v60 = vmul.f32 %v2278_v51, %v2234_v47 }
 0x2a4   : > { %v2269_v18 = vadd.f32 %v2267_v14, %v2213_v45  ;;  %v2270_v27 = vadd.f32 %v2268_v2, %v2214_v32  ;;  %v2275_v41 = vadd.f32 %v2273_v48, %v2219_v63  ;;  %v2276_v34 = vadd.f32 %v2274_v5, %v2220_v10  ;;  %v2342_v14 = vpop.permute.xlu1 %2341 }
 0x2a5   : > { %v2281_v39 = vadd.f32 %v2279_v55, %v2225_v40  ;;  %v2282_v8 = vadd.f32 %v2280_v60, %v2226_v24  ;;  %v2292_v37 = vstv %s5918_s30  ;;  %v2298_v6 = vstv %s5920_s27  ;;  %s6029_s30 = sld [smem:[#allocation8 + $0x10d]] }
 0x2a6   : > { %v2304_v17 = vstv %s5922_s21  ;;  %v2310_v3 = vstv %s5924_s28  ;;  %v2316_v62 = vstv %s5926_s3  ;;  %v2322_v52 = vstv %s5928_s22  ;;  %v2340_v2 = vpop.permute.xlu0 %2339  ;;  %s6037_s27 = sld [smem:[#allocation8 + $0x1a]] }
 0x2a7   : > { %v2328_v20 = vstv %s5933_s11  ;;  %v2334_v54 = vstv %s5941_s19  ;;  %v2287_v45 = vsel %vm2174_vm15, %v2284_v44, %v2286_v0  ;;  %v2288_v31 = vsel %vm2174_vm15, %v2286_v0, %v2284_v44  ;;  %s6039_s21 = sld [smem:[#allocation8 + $0x3e]] }
 0x2a8   : > { %v2348_v26 = vstv %s5947_s14  ;;  %v2290_v4 = vsel %vm249_vm12, %v2288_v31, 0.0  ;;  %v2293_v32 = vmul.f32 %v2292_v37, %v2287_v45  ;;  %v2299_v63 = vmul.f32 %v2298_v6, %v2287_v45  ;;  %s6041_s28 = sld [smem:[#allocation8 + $0x62]] }
 0x2a9   : > { %v2305_v10 = vmul.f32 %v2304_v17, %v2287_v45  ;;  %v2294_v40 = vmul.f32 %v2292_v37, %v2290_v4  ;;  %v2300_v24 = vmul.f32 %v2298_v6, %v2290_v4  ;;  %v2306_v19 = vmul.f32 %v2304_v17, %v2290_v4  ;;  %s6043_s3 = sld [smem:[#allocation8 + $0x86]] }
 0x2aa   : > { %v2311_v43 = vmul.f32 %v2310_v3, %v2287_v45  ;;  %v2295_v11 = vadd.f32 %v2293_v32, %v2239_v21  ;;  %v2301_v23 = vadd.f32 %v2299_v63, %v2245_v46  ;;  %v2312_v12 = vmul.f32 %v2310_v3, %v2290_v4  ;;  %s6051_s22 = sld [smem:[#allocation8 + $0xaa]] }
 0x2ab   : > { %v2307_v51 = vadd.f32 %v2305_v10, %v2251_v15  ;;  %v2296_v35 = vadd.f32 %v2294_v40, %v2240_v53  ;;  %v2302_v47 = vadd.f32 %v2300_v24, %v2246_v9  ;;  %v2308_v28 = vadd.f32 %v2306_v19, %v2252_v22  ;;  %s6059_s11 = sld [smem:[#allocation8 + $0xce]] }
 0x2ac   : > { %v2313_v42 = vadd.f32 %v2311_v43, %v2257_v38  ;;  %v2314_v57 = vadd.f32 %v2312_v12, %v2258_v16  ;;  %v2317_v56 = vmul.f32 %v2316_v62, %v2287_v45  ;;  %v2318_v50 = vmul.f32 %v2316_v62, %v2290_v4  ;;  %s6072_s19 = sld [smem:[#allocation8 + $0xf2]] }
 0x2ad   : > { %v2323_v36 = vmul.f32 %v2322_v52, %v2287_v45  ;;  %v2324_v30 = vmul.f32 %v2322_v52, %v2290_v4  ;;  %v2329_v61 = vmul.f32 %v2328_v20, %v2287_v45  ;;  %v2330_v21 = vmul.f32 %v2328_v20, %v2290_v4  ;;  %s6078_s14 = sld [smem:[#allocation8 + $0x116]] }
 0x2ae   : > { %v2335_v46 = vmul.f32 %v2334_v54, %v2287_v45  ;;  %v2319_v15 = vadd.f32 %v2317_v56, %v2263_v59  ;;  %v2320_v53 = vadd.f32 %v2318_v50, %v2264_v25  ;;  %v2336_v22 = vmul.f32 %v2334_v54, %v2290_v4 }
 0x2af   : > { %v2325_v9 = vadd.f32 %v2323_v36, %v2269_v18  ;;  %v2326_v38 = vadd.f32 %v2324_v30, %v2270_v27  ;;  %v2331_v16 = vadd.f32 %v2329_v61, %v2275_v41  ;;  %v2332_v33 = vadd.f32 %v2330_v21, %v2276_v34  ;;  %v2400_v36 = vpop.permute.xlu1 %2399  ;;  %v2398_v30 = vpop.permute.xlu0 %2397 }
 0x2b0   : > { %v2337_v29 = vadd.f32 %v2335_v46, %v2281_v39  ;;  %v2338_v48 = vadd.f32 %v2336_v22, %v2282_v8  ;;  %v2354_v5 = vstv %s5951_s24  ;;  %v2360_v55 = vstv %s5953_s26  ;;  %s6086_s24 = sld [smem:[#allocation8 + $0x23]] }
 0x2b1   : > { %v2366_v59 = vstv %s5955_s6  ;;  %v2372_v25 = vstv %s5957_s15  ;;  %v2378_v18 = vstv %s5959_s2  ;;  %v2384_v60 = vstv %s5961_s16  ;;  %s6094_s26 = sld [smem:[#allocation8 + $0x47]] }
 0x2b2   : > { %v2390_v27 = vstv %s5963_s0  ;;  %v2343_v41 = vsel %vm2174_vm15, %v2340_v2, %v2342_v14  ;;  %v2344_v34 = vsel %vm2174_vm15, %v2342_v14, %v2340_v2  ;;  %v2407_v39 = vstv %s5968_s7  ;;  %s6104_s6 = sld [smem:[#allocation8 + $0x6b]] }
 0x2b3   : > { %v2413_v0 = vstv %s5974_s10  ;;  %v2346_v44 = vsel %vm249_vm12, %v2344_v34, 0.0  ;;  %v2349_v8 = vmul.f32 %v2348_v26, %v2343_v41  ;;  %v2355_v37 = vmul.f32 %v2354_v5, %v2343_v41  ;;  %s6106_s15 = sld [smem:[#allocation8 + $0x8f]] }
 0x2b4   : > { %v2361_v6 = vmul.f32 %v2360_v55, %v2343_v41  ;;  %v2350_v17 = vmul.f32 %v2348_v26, %v2346_v44  ;;  %v2356_v3 = vmul.f32 %v2354_v5, %v2346_v44  ;;  %v2362_v62 = vmul.f32 %v2360_v55, %v2346_v44  ;;  %s6110_s2 = sld [smem:[#allocation8 + $0xb3]] }
 0x2b5   : > { %v2367_v52 = vmul.f32 %v2366_v59, %v2343_v41  ;;  %v6031_v20 = vadd.f32 %v2349_v8, %v2295_v11  ;;  %v6033_v54 = vadd.f32 %v2355_v37, %v2301_v23  ;;  %v2368_v31 = vmul.f32 %v2366_v59, %v2346_v44  ;;  %s6113_s16 = sld [smem:[#allocation8 + $0xd7]] }
 0x2b6   : > { %v6035_v45 = vadd.f32 %v2361_v6, %v2307_v51  ;;  %v2352_v4 = vadd.f32 %v2350_v17, %v2296_v35  ;;  %v2358_v32 = vadd.f32 %v2356_v3, %v2302_v47  ;;  %v2364_v63 = vadd.f32 %v2362_v62, %v2308_v28  ;;  %s6115_s0 = sld [smem:[#allocation8 + $0xfb]] }
 0x2b7   : > { %v2369_v10 = vadd.f32 %v2367_v52, %v2313_v42  ;;  %v2370_v26 = vadd.f32 %v2368_v31, %v2314_v57  ;;  %v2373_v40 = vmul.f32 %v2372_v25, %v2343_v41  ;;  %v2374_v24 = vmul.f32 %v2372_v25, %v2346_v44  ;;  %s6117_s7 = sld [smem:[#allocation8 + $0x11f]] }
 0x2b8   : > { %v2379_v19 = vmul.f32 %v2378_v18, %v2343_v41  ;;  %v2380_v43 = vmul.f32 %v2378_v18, %v2346_v44  ;;  %v2385_v11 = vmul.f32 %v2384_v60, %v2343_v41  ;;  %v2386_v23 = vmul.f32 %v2384_v60, %v2346_v44  ;;  %s6122_s10 = sld [smem:[#allocation9]] }
 0x2b9   : > { %v2391_v51 = vmul.f32 %v2390_v27, %v2343_v41  ;;  %v6045_v12 = vadd.f32 %v2373_v40, %v2319_v15  ;;  %v6047_v35 = vadd.f32 %v2374_v24, %v2320_v53  ;;  %v2392_v28 = vmul.f32 %v2390_v27, %v2346_v44  ;;  %7369 = sst [smem:[#allocation120_spill]] %s6106_s15  ;;  %v2457_v40 = vpop.permute.xlu1 %2456  ;;  %v2455_v24 = vpop.permute.xlu0 %2454 }
 0x2ba   : > { %v6049_v47 = vadd.f32 %v2379_v19, %v2325_v9  ;;  %v2382_v42 = vadd.f32 %v2380_v43, %v2326_v38  ;;  %v6053_v57 = vadd.f32 %v2385_v11, %v2331_v16  ;;  %v6055_v56 = vadd.f32 %v2386_v23, %v2332_v33 }
 0x2bb   : > { %v6057_v50 = vadd.f32 %v2391_v51, %v2337_v29  ;;  %v2394_v61 = vadd.f32 %v2392_v28, %v2338_v48  ;;  %v2419_v21 = vstv %s5982_s8  ;;  %v2425_v46 = vstv %s5986_s12  ;;  %s6127_s8 = sld [smem:[#allocation9 + $0x8]] }
 0x2bc   : > { %v2431_v15 = vstv %s5988_s25  ;;  %v2437_v9 = vstv %s5990_s29  ;;  %v2443_v22 = vstv %s5992_s17  ;;  %v2449_v38 = vstv %s5994_s4  ;;  %s6133_s12 = sld [smem:[#allocation9 + $0x10]] }
 0x2bd   : > { %vm2401_vm1 = vcmp.lt.s32.totalorder %v4138_v13, 111  ;;  %v2463_v16 = vstv %s5996_s1  ;;  %v2469_v33 = vstv %s5998_s9  ;;  %v2475_v2 = vstv %s6000_s13  ;;  %s6141_s25 = sld [smem:[#allocation9 + $0x18]] }
 0x2be   : > { %v2402_v58 = vsel %vm2401_vm1, %v2398_v30, %v2400_v36  ;;  %v2403_v7 = vsel %vm2401_vm1, %v2400_v36, %v2398_v30  ;;  %v2481_v48 = vstv %s6005_s18  ;;  %v2487_v51 = vstv %s6011_s20  ;;  %s6149_s29 = sld [smem:[#allocation9 + $0x1]] }
 0x2bf   : > { %v2404_v29 = vsel %vm4561_vm7, %v2402_v58, 0.0  ;;  %v2405_v14 = vsel %vm6068_vm0, %v2403_v7, 0.0  ;;  %v2458_v28 = vsel %vm2401_vm1, %v2455_v24, %v2457_v40  ;;  %v2531_v30 = vstv %s6041_s28  ;;  %s6159_s17 = sld [smem:[#allocation9 + $0x9]] }
 0x2c0   : > { %v2408_v5 = vmul.f32 %v2407_v39, %v2404_v29  ;;  %v2409_v55 = vmul.f32 %v2407_v39, %v2405_v14  ;;  %v2414_v59 = vmul.f32 %v2413_v0, %v2404_v29  ;;  %v2415_v25 = vmul.f32 %v2413_v0, %v2405_v14  ;;  %s6169_s4 = sld [smem:[#allocation9 + $0x11]] }
 0x2c1   : > { %v2420_v18 = vmul.f32 %v2419_v21, %v2404_v29  ;;  %v2421_v60 = vmul.f32 %v2419_v21, %v2405_v14  ;;  %v2426_v27 = vmul.f32 %v2425_v46, %v2404_v29  ;;  %v2427_v41 = vmul.f32 %v2425_v46, %v2405_v14  ;;  %s6171_s1 = sld [smem:[#allocation9 + $0x19]] }
 0x2c2   : > { %v2410_v34 = vadd.f32 %v2408_v5, %v6031_v20  ;;  %v2411_v44 = vadd.f32 %v2409_v55, %v2352_v4  ;;  %v2416_v8 = vadd.f32 %v2414_v59, %v6033_v54  ;;  %v2417_v37 = vadd.f32 %v2415_v25, %v2358_v32  ;;  %s6173_s9 = sld [smem:[#allocation9 + $0x2]] }
 0x2c3   : > { %v2422_v39 = vadd.f32 %v2420_v18, %v6035_v45  ;;  %v2423_v6 = vadd.f32 %v2421_v60, %v2364_v63  ;;  %v2428_v0 = vadd.f32 %v2426_v27, %v2369_v10  ;;  %v2429_v17 = vadd.f32 %v2427_v41, %v2370_v26  ;;  %s6175_s13 = sld [smem:[#allocation9 + $0xa]] }
 0x2c4   : > { %v2432_v3 = vmul.f32 %v2431_v15, %v2404_v29  ;;  %v2433_v62 = vmul.f32 %v2431_v15, %v2405_v14  ;;  %v2438_v52 = vmul.f32 %v2437_v9, %v2404_v29  ;;  %v2439_v31 = vmul.f32 %v2437_v9, %v2405_v14  ;;  %s6177_s18 = sld [smem:[#allocation9 + $0x12]] }
 0x2c5   : > { %v2444_v20 = vmul.f32 %v2443_v22, %v2404_v29  ;;  %v2445_v4 = vmul.f32 %v2443_v22, %v2405_v14  ;;  %v2450_v54 = vmul.f32 %v2449_v38, %v2404_v29  ;;  %v2451_v32 = vmul.f32 %v2449_v38, %v2405_v14  ;;  %s6179_s20 = sld [smem:[#allocation9 + $0x1a]] }
 0x2c6   : > { %v2434_v45 = vadd.f32 %v2432_v3, %v6045_v12  ;;  %v2435_v63 = vadd.f32 %v2433_v62, %v6047_v35  ;;  %v2440_v10 = vadd.f32 %v2438_v52, %v6049_v47  ;;  %v2441_v26 = vadd.f32 %v2439_v31, %v2382_v42  ;;  %s6245_s28 = sld [smem:[#allocation2]] }
 0x2c7   : > { %v2446_v19 = vadd.f32 %v2444_v20, %v6053_v57  ;;  %v2447_v43 = vadd.f32 %v2445_v4, %v6055_v56  ;;  %v2452_v11 = vadd.f32 %v2450_v54, %v6057_v50  ;;  %v2453_v23 = vadd.f32 %v2451_v32, %v2394_v61 }
 0x2c8   : > { %v2493_v12 = vstv %s6019_s23  ;;  %v2499_v35 = vstv %s6025_s5  ;;  %v2505_v47 = vstv %s6029_s30  ;;  %v2459_v42 = vsel %vm2401_vm1, %v2457_v40, %v2455_v24  ;;  %s6181_s23 = sld [smem:[#allocation9 + $0x3]] }
 0x2c9   : > { %v2519_v57 = vstv %s6037_s27  ;;  %v2525_v56 = vstv %s6039_s21  ;;  %v2460_v50 = vsel %vm4561_vm7, %v2458_v28, 0.0  ;;  %v2461_v36 = vsel %vm6068_vm0, %v2459_v42, 0.0  ;;  %s6187_s5 = sld [smem:[#allocation9 + $0xb]] }
 0x2ca   : > { %v2537_v61 = vstv %s6043_s3  ;;  %v2464_v21 = vmul.f32 %v2463_v16, %v2460_v50  ;;  %v2465_v46 = vmul.f32 %v2463_v16, %v2461_v36  ;;  %v2470_v15 = vmul.f32 %v2469_v33, %v2460_v50  ;;  %s6195_s30 = sld [smem:[#allocation9 + $0x13]] }
 0x2cb   : > { %v2471_v9 = vmul.f32 %v2469_v33, %v2461_v36  ;;  %v2476_v22 = vmul.f32 %v2475_v2, %v2460_v50  ;;  %v2477_v38 = vmul.f32 %v2475_v2, %v2461_v36  ;;  %v2482_v58 = vmul.f32 %v2481_v48, %v2460_v50  ;;  %s6233_s27 = sld [smem:[#allocation9 + $0x14]] }
 0x2cc   : > { %v2483_v7 = vmul.f32 %v2481_v48, %v2461_v36  ;;  %v2466_v29 = vadd.f32 %v2464_v21, %v2410_v34  ;;  %v2467_v14 = vadd.f32 %v2465_v46, %v2411_v44  ;;  %v2472_v5 = vadd.f32 %v2470_v15, %v2416_v8  ;;  %s6243_s21 = sld [smem:[#allocation9 + $0x1c]] }
 0x2cd   : > { %v2473_v16 = vadd.f32 %v2471_v9, %v2417_v37  ;;  %v2478_v55 = vadd.f32 %v2476_v22, %v2422_v39  ;;  %v2479_v33 = vadd.f32 %v2477_v38, %v2423_v6  ;;  %v2484_v59 = vadd.f32 %v2482_v58, %v2428_v0  ;;  %v2513_v0 = vpop.permute.xlu1 %2512  ;;  %s6247_s3 = sld [smem:[#allocation9 + $0x5]] }
 0x2ce   : > { %v2485_v25 = vadd.f32 %v2483_v7, %v2429_v17  ;;  %v2488_v18 = vmul.f32 %v2487_v51, %v2460_v50  ;;  %v2489_v2 = vmul.f32 %v2487_v51, %v2461_v36  ;;  %v2494_v60 = vmul.f32 %v2493_v12, %v2460_v50  ;;  %v2511_v17 = vpop.permute.xlu0 %2510 }
 0x2cf   : > { %v2495_v27 = vmul.f32 %v2493_v12, %v2461_v36  ;;  %v2500_v48 = vmul.f32 %v2499_v35, %v2460_v50  ;;  %v2501_v41 = vmul.f32 %v2499_v35, %v2461_v36  ;;  %v2506_v34 = vmul.f32 %v2505_v47, %v2460_v50 }
 0x2d0   : > { %v2507_v44 = vmul.f32 %v2505_v47, %v2461_v36  ;;  %v2490_v8 = vadd.f32 %v2488_v18, %v2434_v45  ;;  %v2491_v37 = vadd.f32 %v2489_v2, %v2435_v63  ;;  %v2496_v39 = vadd.f32 %v2494_v60, %v2440_v10 }
 0x2d1   : > { %v2497_v6 = vadd.f32 %v2495_v27, %v2441_v26  ;;  %v2502_v3 = vadd.f32 %v2500_v48, %v2446_v19  ;;  %v2503_v62 = vadd.f32 %v2501_v41, %v2447_v43  ;;  %v2508_v52 = vadd.f32 %v2506_v34, %v2452_v11 }
 0x2d2   : > { %v2509_v31 = vadd.f32 %v2507_v44, %v2453_v23  ;;  %v2543_v20 = vstv %s6051_s22  ;;  %v2549_v4 = vstv %s6059_s11  ;;  %v2555_v54 = vstv %s6072_s19  ;;  %s6203_s22 = sld [smem:[#allocation9 + $0x1b]] }
 0x2d3   : > { %v2561_v32 = vstv %s6078_s14  ;;  %v2514_v45 = vsel %vm2401_vm1, %v2511_v17, %v2513_v0  ;;  %v2515_v63 = vsel %vm2401_vm1, %v2513_v0, %v2511_v17  ;;  %v2575_v10 = vstv %s6086_s24  ;;  %s6213_s11 = sld [smem:[#allocation9 + $0x4]] }
 0x2d4   : > { %v2581_v26 = vstv %s6094_s26  ;;  %v2516_v40 = vsel %vm4561_vm7, %v2514_v45, 0.0  ;;  %v2517_v24 = vsel %vm6068_vm0, %v2515_v63, 0.0  ;;  %v2587_v19 = vstv %s6104_s6  ;;  %s6223_s19 = sld [smem:[#allocation9 + $0xc]] }
 0x2d5   : > { %v2593_v43 = vstv %s6106_s15  ;;  %v2520_v11 = vmul.f32 %v2519_v57, %v2516_v40  ;;  %v2521_v23 = vmul.f32 %v2519_v57, %v2517_v24  ;;  %v2526_v51 = vmul.f32 %v2525_v56, %v2516_v40  ;;  %s6257_s14 = sld [smem:[#allocation9 + $0xd]] }
 0x2d6   : > { %v2527_v12 = vmul.f32 %v2525_v56, %v2517_v24  ;;  %v2532_v35 = vmul.f32 %v2531_v30, %v2516_v40  ;;  %v2533_v47 = vmul.f32 %v2531_v30, %v2517_v24  ;;  %v2538_v28 = vmul.f32 %v2537_v61, %v2516_v40  ;;  %s6267_s15 = sld [smem:[#allocation9 + $0x15]] }
 0x2d7   : > { %v2539_v42 = vmul.f32 %v2537_v61, %v2517_v24  ;;  %v6225_v50 = vadd.f32 %v2520_v11, %v2466_v29  ;;  %v6227_v36 = vadd.f32 %v2521_v23, %v2467_v14  ;;  %v6229_v57 = vadd.f32 %v2526_v51, %v2472_v5  ;;  %s6485_s24 = sld [smem:[#allocation9 + $0x1d]] }
 0x2d8   : > { %v6231_v21 = vadd.f32 %v2527_v12, %v2473_v16  ;;  %v6235_v56 = vadd.f32 %v2532_v35, %v2478_v55  ;;  %v6237_v46 = vadd.f32 %v2533_v47, %v2479_v33  ;;  %v6239_v30 = vadd.f32 %v2538_v28, %v2484_v59  ;;  %s6493_s26 = sld [smem:[#allocation9 + $0x6]] }
 0x2d9   : > { %v6241_v15 = vadd.f32 %v2539_v42, %v2485_v25  ;;  %v2544_v61 = vmul.f32 %v2543_v20, %v2516_v40  ;;  %v2545_v9 = vmul.f32 %v2543_v20, %v2517_v24  ;;  %v2550_v22 = vmul.f32 %v2549_v4, %v2516_v40  ;;  %s6503_s6 = sld [smem:[#allocation9 + $0xe]] }
 0x2da   : > { %v2551_v38 = vmul.f32 %v2549_v4, %v2517_v24  ;;  %v2556_v58 = vmul.f32 %v2555_v54, %v2516_v40  ;;  %v2557_v7 = vmul.f32 %v2555_v54, %v2517_v24  ;;  %v2562_v29 = vmul.f32 %v2561_v32, %v2516_v40  ;;  %v2567_v4 = vpop.permute.xlu0 %2566 }
 0x2db   : > { %v2563_v14 = vmul.f32 %v2561_v32, %v2517_v24  ;;  %v6249_v5 = vadd.f32 %v2544_v61, %v2490_v8  ;;  %v6251_v16 = vadd.f32 %v2545_v9, %v2491_v37  ;;  %v6253_v55 = vadd.f32 %v2550_v22, %v2496_v39 }
 0x2dc   : > { %v6255_v33 = vadd.f32 %v2551_v38, %v2497_v6  ;;  %v6259_v59 = vadd.f32 %v2556_v58, %v2502_v3  ;;  %v6261_v25 = vadd.f32 %v2557_v7, %v2503_v62  ;;  %v6263_v18 = vadd.f32 %v2562_v29, %v2508_v52  ;;  %v2569_v3 = vpop.permute.xlu1 %2568 }
 0x2dd   : > { %v6265_v2 = vadd.f32 %v2563_v14, %v2509_v31  ;;  %v2599_v60 = vstv %s6110_s2  ;;  %v2605_v27 = vstv %s6113_s16  ;;  %v2611_v48 = vstv %s6115_s0  ;;  %s6511_s16 = sld [smem:[#allocation9 + $0x16]] }
 0x2de   : > { %v2617_v41 = vstv %s6117_s7  ;;  %v2630_v34 = vstv %s6122_s10  ;;  %v2636_v44 = vstv %s6127_s8  ;;  %v2642_v8 = vstv %s6133_s12  ;;  %s6513_s0 = sld [smem:[#allocation9 + $0x1e]] }
 0x2df   : > { %v2648_v37 = vstv %s6141_s25  ;;  %v2660_v39 = vstv %s6149_s29  ;;  %v2666_v6 = vstv %s6159_s17  ;;  %v2672_v0 = vstv %s6169_s4  ;;  %s6515_s7 = sld [smem:[#allocation9 + $0x7]] }
 0x2e0   : > { %v2678_v17 = vstv %s6171_s1  ;;  %v2690_v62 = vstv %s6173_s9  ;;  %v2696_v52 = vstv %s6175_s13  ;;  %v2702_v31 = vstv %s6177_s18  ;;  %s6525_s10 = sld [smem:[#allocation9 + $0xf]] }
 0x2e1   : > { %v2708_v20 = vstv %s6179_s20  ;;  %v2720_v54 = vstv %s6181_s23  ;;  %v2726_v32 = vstv %s6187_s5  ;;  %v2732_v45 = vstv %s6195_s30  ;;  %s6533_s8 = sld [smem:[#allocation9 + $0x17]] }
 0x2e2   : > { %v2738_v63 = vstv %s6203_s22  ;;  %v2750_v40 = vstv %s6213_s11  ;;  %v2756_v24 = vstv %s6223_s19  ;;  %v2762_v11 = vstv %s6233_s27  ;;  %s7375_s12 = sld [smem:[#allocation19_spill]]  ;;  %s3610_s11 = smov [#allocation10]  }
 0x2e3   : > { %v2768_v23 = vstv %s6243_s21  ;;  %v2570_v51 = vsel %vm2401_vm1, %v2567_v4, %v2569_v3  ;;  %v2571_v12 = vsel %vm2401_vm1, %v2569_v3, %v2567_v4  ;;  %v6298_v35 = vstv %s6245_s28  ;;  %s7376_s25 = sld [smem:[#allocation24_spill]]  ;;  %s3528_s19 = sshll.u32 %s3610_s11, 4  ;;  %s3529_s19 = int_to_ptr.vmem [resolvable:$false] %s3528_s19 }
 0x2e4   : > { %v2780_v47 = vstv %s6247_s3  ;;  %v2572_v28 = vsel %vm4561_vm7, %v2570_v51, 0.0  ;;  %v2573_v42 = vsel %vm6068_vm0, %v2571_v12, 0.0  ;;  %s7378_s9 = sld [smem:[#allocation23_spill]]  ;;  %s3530_s27 = scalar_lea.vmem %s3529_s19, 256 }
 0x2e5   : > { %v2576_v22 = vmul.f32 %v2575_v10, %v2572_v28  ;;  %v2577_v38 = vmul.f32 %v2575_v10, %v2573_v42  ;;  %v2582_v58 = vmul.f32 %v2581_v26, %v2572_v28  ;;  %v2583_v13 = vmul.f32 %v2581_v26, %v2573_v42  ;;  %s7380_s20 = sld [smem:[#allocation134_spill]] }
 0x2e6   : > { %v2588_v7 = vmul.f32 %v2587_v19, %v2572_v28  ;;  %v2589_v29 = vmul.f32 %v2587_v19, %v2573_v42  ;;  %v2594_v49 = vmul.f32 %v2593_v43, %v2572_v28  ;;  %v2595_v14 = vmul.f32 %v2593_v43, %v2573_v42 }
 0x2e7   : > { %v2578_v53 = vadd.f32 %v2576_v22, %v6225_v50  ;;  %v2579_v3 = vadd.f32 %v2577_v38, %v6227_v36  ;;  %v2584_v4 = vadd.f32 %v2582_v58, %v6229_v57  ;;  %v2585_v10 = vadd.f32 %v2583_v13, %v6231_v21 }
 0x2e8   : > { %v2590_v51 = vadd.f32 %v2588_v7, %v6235_v56  ;;  %v2591_v26 = vadd.f32 %v2589_v29, %v6237_v46  ;;  %v6330_v12 = vadd.f32 %v2594_v49, %v6239_v30  ;;  %v6333_v19 = vadd.f32 %v2595_v14, %v6241_v15  ;;  %s3389_s29 = sshll.u32 %s7375_s12, 7 }
 0x2e9   : > { %v2600_v9 = vmul.f32 %v2599_v60, %v2572_v28  ;;  %v2601_v43 = vmul.f32 %v2599_v60, %v2573_v42  ;;  %v2606_v61 = vmul.f32 %v2605_v27, %v2572_v28  ;;  %v2607_v50 = vmul.f32 %v2605_v27, %v2573_v42  ;;  %s7377_s17 = sshll.u32 %s7376_s25, 3  ;;  %s2944_s30 = scalar_lea.sflag [#allocation5], %s7376_s25 }
 0x2ea   : > { %v2612_v22 = vmul.f32 %v2611_v48, %v2572_v28  ;;  %v2613_v36 = vmul.f32 %v2611_v48, %v2573_v42  ;;  %v2618_v38 = vmul.f32 %v2617_v41, %v2572_v28  ;;  %v2619_v57 = vmul.f32 %v2617_v41, %v2573_v42  ;;  %s239_s4 = scalar_lea.vmem [#allocation10], %s7377_s17  ;;  %p7382_p10 = scmp.ne.s32.totalorder %s7378_s9, 0 }
 0x2eb   : > { %v6336_v21 = vadd.f32 %v2600_v9, %v6249_v5  ;;  %v6339_v56 = vadd.f32 %v2601_v43, %v6251_v16  ;;  %v6342_v46 = vadd.f32 %v2606_v61, %v6253_v55  ;;  %v6345_v30 = vadd.f32 %v2607_v50, %v6255_v33  ;;  %s2958_s1 = sshll.u32 %s239_s4, 4  ;;  %s7381_s23 = smov %s7380_s20  ;;  %s6562_s1 = int_to_ptr.vmem [resolvable:$true] %s2958_s1 }
 0x2ec   : > { %v6348_v15 = vadd.f32 %v2612_v22, %v6259_v59  ;;  %v6351_v60 = vadd.f32 %v2613_v36, %v6261_v25  ;;  %v6354_v5 = vadd.f32 %v2618_v38, %v6263_v18  ;;  %v6357_v16 = vadd.f32 %v2619_v57, %v6265_v2  ;;  %s6560_s5 = scalar_lea.hbm %s7380_s20, %s3389_s29  ;;  %s3524_s22 = scalar_lea.vmem %s6562_s1, 128 }
 0x2ed   : > { %vm2622_vm2 = vcmp.gt.f32.partialorder %v2578_v53, 0.0  ;;  %vm2623_vm3 = vcmp.gt.f32.partialorder %v2579_v3, 0.0  ;;  %v2625_v55 = vmul.f32 %v6298_v35, %v2578_v53  ;;  %v2626_v33 = vmul.f32 %v6298_v35, %v2579_v3  ;;  %p3525_p12 = scmp.ne.s32.totalorder %s6562_s1, %s3524_s22  ;;  %p3531_p9 = scmp.lt.s32.totalorder %s6562_s1, %s3529_s19 }
 0x2ee   : > { %vm2653_vm4 = vcmp.gt.f32.partialorder %v2584_v4, 0.0  ;;  %vm2654_vm5 = vcmp.gt.f32.partialorder %v2585_v10, 0.0  ;;  %v2655_v59 = vmul.f32 %v6298_v35, %v2584_v4  ;;  %v2656_v25 = vmul.f32 %v6298_v35, %v2585_v10  ;;  %p3532_p1 = scmp.lt.s32.totalorder %s3530_s27, %s3524_s22 }
 0x2ef   : > { %v2627_v18 = vsel %vm2622_vm2, %v2578_v53, %v2625_v55  ;;  %v2628_v2 = vsel %vm2623_vm3, %v2579_v3, %v2626_v33  ;;  %vm2683_vm6 = vcmp.gt.f32.partialorder %v2590_v51, 0.0  ;;  %vm2684_vm7 = vcmp.gt.f32.partialorder %v2591_v26, 0.0  ;;  %p3526_p13 = pnand %p3525_p12, %p7382_p10 }
 0x2f0   : > { %v2631_v27 = vmul.f32 %v2630_v34, %v2627_v18  ;;  %v2632_v48 = vmul.f32 %v2630_v34, %v2628_v2  ;;  %v2637_v41 = vmul.f32 %v2636_v44, %v2627_v18  ;;  %v2638_v28 = vmul.f32 %v2636_v44, %v2628_v2  ;;  %p3533_p2 = por %p3532_p1, %p3531_p9 }
 0x2f1   : > { %v2643_v42 = vmul.f32 %v2642_v8, %v2627_v18  ;;  %v2644_v61 = vmul.f32 %v2642_v8, %v2628_v2  ;;  %v2649_v9 = vmul.f32 %v2648_v37, %v2627_v18  ;;  %v2650_v58 = vmul.f32 %v2648_v37, %v2628_v2  ;;  %p3527_p0 = pneg %p3526_p13 }
 0x2f2   : > { %v2657_v13 = vsel %vm2653_vm4, %v2584_v4, %v2655_v59  ;;  %v2658_v7 = vsel %vm2654_vm5, %v2585_v10, %v2656_v25  ;;  %v2685_v34 = vmul.f32 %v6298_v35, %v2590_v51  ;;  %v2686_v29 = vmul.f32 %v6298_v35, %v2591_v26 }
 0x2f3   : > { %v2661_v49 = vmul.f32 %v2660_v39, %v2657_v13  ;;  %v2662_v44 = vmul.f32 %v2660_v39, %v2658_v7  ;;  %v2667_v14 = vmul.f32 %v2666_v6, %v2657_v13  ;;  %v2668_v8 = vmul.f32 %v2666_v6, %v2658_v7  ;;  %p3534_p5 = pnand %p3533_p2, %p3527_p0 }
 0x2f4   : > { %v2673_v53 = vmul.f32 %v2672_v0, %v2657_v13  ;;  %v2674_v37 = vmul.f32 %v2672_v0, %v2658_v7  ;;  %v2679_v3 = vmul.f32 %v2678_v17, %v2657_v13  ;;  %v2680_v4 = vmul.f32 %v2678_v17, %v2658_v7 }
 0x2f5   : > { %v2663_v10 = vadd.f32 %v2661_v49, %v2631_v27  ;;  %v2664_v43 = vadd.f32 %v2662_v44, %v2632_v48  ;;  %v2669_v39 = vadd.f32 %v2667_v14, %v2637_v41  ;;  %v2670_v50 = vadd.f32 %v2668_v8, %v2638_v28 }
 0x2f6   : > { %v2675_v6 = vadd.f32 %v2673_v53, %v2643_v42  ;;  %v2676_v22 = vadd.f32 %v2674_v37, %v2644_v61  ;;  %v2681_v36 = vadd.f32 %v2679_v3, %v2649_v9  ;;  %v2682_v38 = vadd.f32 %v2680_v4, %v2650_v58 }
 0x2f7   : > { %v2687_v0 = vsel %vm2683_vm6, %v2590_v51, %v2685_v34  ;;  %v2688_v57 = vsel %vm2684_vm7, %v2591_v26, %v2686_v29  ;;  %vm2713_vm8 = vcmp.gt.f32.partialorder %v6330_v12, 0.0  ;;  %vm2714_vm9 = vcmp.gt.f32.partialorder %v6333_v19, 0.0 }
 0x2f8   : > { %v2691_v17 = vmul.f32 %v2690_v62, %v2687_v0  ;;  %v2692_v55 = vmul.f32 %v2690_v62, %v2688_v57  ;;  %v2697_v33 = vmul.f32 %v2696_v52, %v2687_v0  ;;  %v2698_v59 = vmul.f32 %v2696_v52, %v2688_v57 }
 0x2f9   : > { %v2703_v25 = vmul.f32 %v2702_v31, %v2687_v0  ;;  %v2704_v18 = vmul.f32 %v2702_v31, %v2688_v57  ;;  %v2709_v51 = vmul.f32 %v2708_v20, %v2687_v0  ;;  %v2710_v26 = vmul.f32 %v2708_v20, %v2688_v57 }
 0x2fa   : > { %v2693_v2 = vadd.f32 %v2691_v17, %v2663_v10  ;;  %v2694_v27 = vadd.f32 %v2692_v55, %v2664_v43  ;;  %v2699_v48 = vadd.f32 %v2697_v33, %v2669_v39  ;;  %v2700_v41 = vadd.f32 %v2698_v59, %v2670_v50 }
 0x2fb   : > { %v2705_v28 = vadd.f32 %v2703_v25, %v2675_v6  ;;  %v2706_v42 = vadd.f32 %v2704_v18, %v2676_v22  ;;  %v2711_v62 = vadd.f32 %v2709_v51, %v2681_v36  ;;  %v2712_v61 = vadd.f32 %v2710_v26, %v2682_v38 }
 0x2fc   : > { %v2715_v52 = vmul.f32 %v6298_v35, %v6330_v12  ;;  %v2716_v31 = vmul.f32 %v6298_v35, %v6333_v19  ;;  %vm2743_vm10 = vcmp.gt.f32.partialorder %v6336_v21, 0.0  ;;  %vm2744_vm11 = vcmp.gt.f32.partialorder %v6339_v56, 0.0 }
 0x2fd   : > { %v2745_v20 = vmul.f32 %v6298_v35, %v6336_v21  ;;  %v2746_v9 = vmul.f32 %v6298_v35, %v6339_v56  ;;  %vm2773_vm12 = vcmp.gt.f32.partialorder %v6342_v46, 0.0  ;;  %vm2774_vm13 = vcmp.gt.f32.partialorder %v6345_v30, 0.0 }
 0x2fe   : > { %v2717_v58 = vsel %vm2713_vm8, %v6330_v12, %v2715_v52  ;;  %v2718_v13 = vsel %vm2714_vm9, %v6333_v19, %v2716_v31  ;;  %v2775_v7 = vmul.f32 %v6298_v35, %v6342_v46  ;;  %v2776_v34 = vmul.f32 %v6298_v35, %v6345_v30 }
 0x2ff   : > { %v2721_v29 = vmul.f32 %v2720_v54, %v2717_v58  ;;  %v2722_v49 = vmul.f32 %v2720_v54, %v2718_v13  ;;  %v2727_v12 = vmul.f32 %v2726_v32, %v2717_v58  ;;  %v2728_v19 = vmul.f32 %v2726_v32, %v2718_v13 }
 0x300   : > { %v2733_v44 = vmul.f32 %v2732_v45, %v2717_v58  ;;  %v2734_v14 = vmul.f32 %v2732_v45, %v2718_v13  ;;  %v2739_v8 = vmul.f32 %v2738_v63, %v2717_v58  ;;  %v2740_v53 = vmul.f32 %v2738_v63, %v2718_v13 }
 0x301   : > { %v2747_v37 = vsel %vm2743_vm10, %v6336_v21, %v2745_v20  ;;  %v2748_v54 = vsel %vm2744_vm11, %v6339_v56, %v2746_v9  ;;  %v2777_v32 = vsel %vm2773_vm12, %v6342_v46, %v2775_v7  ;;  %v2778_v45 = vsel %vm2774_vm13, %v6345_v30, %v2776_v34 }
 0x302   : > { %v2751_v3 = vmul.f32 %v2750_v40, %v2747_v37  ;;  %v2752_v63 = vmul.f32 %v2750_v40, %v2748_v54  ;;  %v2757_v4 = vmul.f32 %v2756_v24, %v2747_v37  ;;  %v2758_v21 = vmul.f32 %v2756_v24, %v2748_v54 }
 0x303   : > { %v2763_v10 = vmul.f32 %v2762_v11, %v2747_v37  ;;  %v2764_v56 = vmul.f32 %v2762_v11, %v2748_v54  ;;  %v2769_v43 = vmul.f32 %v2768_v23, %v2747_v37  ;;  %v2770_v46 = vmul.f32 %v2768_v23, %v2748_v54 }
 0x304   : > { %vm2803_vm14 = vcmp.gt.f32.partialorder %v6348_v15, 0.0  ;;  %vm2804_vm15 = vcmp.gt.f32.partialorder %v6351_v60, 0.0  ;;  %v2805_v40 = vmul.f32 %v6298_v35, %v6348_v15  ;;  %v2806_v24 = vmul.f32 %v6298_v35, %v6351_v60 }
 0x305   : > { %vm2833_vm0 = vcmp.gt.f32.partialorder %v6354_v5, 0.0  ;;  %vm2834_vm1 = vcmp.gt.f32.partialorder %v6357_v16, 0.0  ;;  %v2835_v11 = vmul.f32 %v6298_v35, %v6354_v5  ;;  %v2836_v23 = vmul.f32 %v6298_v35, %v6357_v16 }
 0x306   : > { %v2807_v30 = vsel %vm2803_vm14, %v6348_v15, %v2805_v40  ;;  %v2808_v39 = vsel %vm2804_vm15, %v6351_v60, %v2806_v24  ;;  %v2723_v50 = vadd.f32 %v2721_v29, %v2693_v2  ;;  %v2724_v6 = vadd.f32 %v2722_v49, %v2694_v27 }
 0x307   : > { %v6506_v22 = vsel %vm2833_vm0, %v6354_v5, %v2835_v11  ;;  %v6509_v36 = vsel %vm2834_vm1, %v6357_v16, %v2836_v23  ;;  %v2729_v38 = vadd.f32 %v2727_v12, %v2699_v48  ;;  %v2730_v0 = vadd.f32 %v2728_v19, %v2700_v41 }
 0x308   : > { %v2735_v35 = vadd.f32 %v2733_v44, %v2705_v28  ;;  %v2736_v15 = vadd.f32 %v2734_v14, %v2706_v42  ;;  %v2741_v60 = vadd.f32 %v2739_v8, %v2711_v62  ;;  %v2742_v57 = vadd.f32 %v2740_v53, %v2712_v61 }
 0x309   : > { %v2753_v17 = vadd.f32 %v2751_v3, %v2723_v50  ;;  %v2754_v5 = vadd.f32 %v2752_v63, %v2724_v6  ;;  %v2759_v55 = vadd.f32 %v2757_v4, %v2729_v38  ;;  %v2760_v16 = vadd.f32 %v2758_v21, %v2730_v0 }
 0x30a   : > { %v2765_v33 = vadd.f32 %v2763_v10, %v2735_v35  ;;  %v2766_v59 = vadd.f32 %v2764_v56, %v2736_v15  ;;  %v2771_v25 = vadd.f32 %v2769_v43, %v2741_v60  ;;  %v2772_v18 = vadd.f32 %v2770_v46, %v2742_v57 }
 0x30b   : > { %v2781_v51 = vmul.f32 %v2780_v47, %v2777_v32  ;;  %v2782_v26 = vmul.f32 %v2780_v47, %v2778_v45  ;;  %v7371_v2 = vstv %s6257_s14  ;;  %v7373_v28 = vstv %s6267_s15  ;;  %s6537_s15 = sld [smem:[#allocation9 + $0x1f]] }
 0x30c   : > { %v2787_v27 = vmul.f32 %v7371_v2, %v2777_v32  ;;  %v7372_v48 = vmov %v7371_v2  ;;  %v2793_v42 = vmul.f32 %v7373_v28, %v2777_v32  ;;  %v7374_v62 = vmov %v7373_v28 }
 0x30d   : > { %v2788_v41 = vmul.f32 %v7372_v48, %v2778_v45  ;;  %v2794_v61 = vmul.f32 %v7374_v62, %v2778_v45  ;;  %v2798_v52 = vstv %s6485_s24  ;;  %v2810_v31 = vstv %s6493_s26 }
 0x30e   : > { %v2783_v20 = vadd.f32 %v2781_v51, %v2753_v17  ;;  %v2784_v9 = vadd.f32 %v2782_v26, %v2754_v5  ;;  %v2789_v58 = vadd.f32 %v2787_v27, %v2759_v55  ;;  %v2795_v13 = vadd.f32 %v2793_v42, %v2765_v33 }
 0x30f   : > { %v2790_v47 = vadd.f32 %v2788_v41, %v2760_v16  ;;  %v2796_v7 = vadd.f32 %v2794_v61, %v2766_v59  ;;  %v2799_v34 = vmul.f32 %v2798_v52, %v2777_v32  ;;  %v2800_v29 = vmul.f32 %v2798_v52, %v2778_v45 }
 0x310   : > { %v2811_v49 = vmul.f32 %v2810_v31, %v2807_v30  ;;  %v2812_v12 = vmul.f32 %v2810_v31, %v2808_v39  ;;  %v2816_v19 = vstv %s6503_s6  ;;  %v2822_v44 = vstv %s6511_s16 }
 0x311   : > { %v2801_v14 = vadd.f32 %v2799_v34, %v2771_v25  ;;  %v2802_v8 = vadd.f32 %v2800_v29, %v2772_v18  ;;  %v2817_v53 = vmul.f32 %v2816_v19, %v2807_v30  ;;  %v2818_v37 = vmul.f32 %v2816_v19, %v2808_v39 }
 0x312   : > { %v2813_v54 = vadd.f32 %v2811_v49, %v2783_v20  ;;  %v2814_v3 = vadd.f32 %v2812_v12, %v2784_v9  ;;  %v2823_v63 = vmul.f32 %v2822_v44, %v2807_v30  ;;  %v2824_v4 = vmul.f32 %v2822_v44, %v2808_v39 }
 0x313   : > { %v2819_v32 = vadd.f32 %v2817_v53, %v2789_v58  ;;  %v2820_v45 = vadd.f32 %v2818_v37, %v2790_v47  ;;  %v2828_v21 = vstv %s6513_s0  ;;  %v2840_v10 = vstv %s6515_s7 }
 0x314   : > { %v2825_v56 = vadd.f32 %v2823_v63, %v2795_v13  ;;  %v2826_v43 = vadd.f32 %v2824_v4, %v2796_v7  ;;  %v2829_v46 = vmul.f32 %v2828_v21, %v2807_v30  ;;  %v2830_v40 = vmul.f32 %v2828_v21, %v2808_v39 }
 0x315   : > { %v2841_v24 = vmul.f32 %v2840_v10, %v6506_v22  ;;  %v2842_v11 = vmul.f32 %v2840_v10, %v6509_v36  ;;  %v2846_v23 = vstv %s6525_s10  ;;  %v2852_v50 = vstv %s6533_s8 }
 0x316   : > { %v2831_v6 = vadd.f32 %v2829_v46, %v2801_v14  ;;  %v2832_v38 = vadd.f32 %v2830_v40, %v2802_v8  ;;  %v2847_v0 = vmul.f32 %v2846_v23, %v6506_v22  ;;  %v2848_v35 = vmul.f32 %v2846_v23, %v6509_v36 }
 0x317   : > { %v2843_v15 = vadd.f32 %v2841_v24, %v2813_v54  ;;  %v2844_v60 = vadd.f32 %v2842_v11, %v2814_v3  ;;  %v2853_v57 = vmul.f32 %v2852_v50, %v6506_v22  ;;  %v2854_v30 = vmul.f32 %v2852_v50, %v6509_v36 }
 0x318   : > { %v2849_v17 = vadd.f32 %v2847_v0, %v2819_v32  ;;  %v2850_v39 = vadd.f32 %v2848_v35, %v2820_v45  ;;  %v2858_v5 = vstv %s6537_s15  ;;  %v3609_v25 = vmov 1966171168  }
 0x319   : > { %v2855_v55 = vadd.f32 %v2853_v57, %v2825_v56  ;;  %v2856_v16 = vadd.f32 %v2854_v30, %v2826_v43  ;;  %v2859_v33 = vmul.f32 %v2858_v5, %v6506_v22  ;;  %v2860_v59 = vmul.f32 %v2858_v5, %v6509_v36 }
 0x31a   : > { %v2867_v18 = vunpack.c.l.s4 %v3609_v25  ;;  %v2865_v2 = vcombine.low %v2843_v15, %v2844_v60  ;;  %v2888_v48 = vcombine.low %v2849_v17, %v2850_v39  ;;  %v7379_v52 = vlaneseq }
 0x31b   : > { %v2861_v51 = vadd.f32 %v2859_v33, %v2831_v6  ;;  %v2862_v26 = vadd.f32 %v2860_v59, %v2832_v38  ;;  %v2907_v41 = vcombine.low %v2855_v55, %v2856_v16 }
 0x31c   : > { %v2868_v27 = vunpack.c.0.s8 %v2867_v18  ;;  %vm2883_vm2 = vcmp.lt.s32.totalorder %v7379_v52, 256 }
 0x31d   : > { %v2926_v28 = vcombine.low %v2861_v51, %v2862_v26 }
 0x31e   : > { %v2871_v42 = vsub.s32 %v2868_v27, %v3778_v1 }
 0x320   : > { %v2872_v62 = vrot.slane %v2865_v2, %v2871_v42  ;;  %v2895_v22 = vrot.slane %v2888_v48, %v2871_v42  ;;  %v2914_v61 = vrot.slane %v2907_v41, %v2871_v42  ;;  %v2933_v36 = vrot.slane %v2926_v28, %v2871_v42 }
 0x322   : > { %v2879_v31 = vrot.slane %v2872_v62, %v2871_v42  ;;  %v2902_v20 = vrot.slane %v2895_v22, %v2871_v42  ;;  %v2921_v9 = vrot.slane %v2914_v61, %v2871_v42  ;;  %v2940_v58 = vrot.slane %v2933_v36, %v2871_v42 }
 0x324   : > { %2885 = vst.msk [vmem:[%s239_s4] sm:$0x3] %vm2883_vm2, %v2879_v31  ;;  %2904 = vst.msk [vmem:[%s239_s4 + $0x2] sm:$0x3] %vm2883_vm2, %v2902_v20 }
 0x325   : > { %2923 = vst.msk [vmem:[%s239_s4 + $0x4] sm:$0x3] %vm2883_vm2, %v2921_v9  ;;  %2942 = vst.msk [vmem:[%s239_s4 + $0x6] sm:$0x3] %vm2883_vm2, %v2940_v58 }
 0x326   : > { %3537 = shalt.err (!%p3534_p5)
}
 0x327   : > { %s3538_s21 = scalar_lea.hbm %s6560_s5, 128  ;;  %s3542_s14 = scalar_lea.hbm %s7381_s23, 256 }
 0x328   : > { %p3539_p7 = scmp.ne.s32.totalorder %s6560_s5, %s3538_s21  ;;  %p3543_p8 = scmp.lt.s32.totalorder %s6560_s5, %s7381_s23 }
 0x329   : > { %p3544_p3 = scmp.lt.s32.totalorder %s3542_s14, %s3538_s21 }
 0x32a   : > { %p3540_p4 = pnand %p3539_p7, %p7382_p10 }
 0x32b   : > { %p3545_p11 = por %p3544_p3, %p3543_p8 }
 0x32c   : > { %p3541_p6 = pneg %p3540_p4 }
 0x32e   : > { %p3546_p12 = pnand %p3545_p11, %p3541_p6 }
 0x330   : > { %3549 = shalt.err (!%p3546_p12)
}
 0x331   : > { %3400 = dma.vmem_to_hbm [thread:$0]  (%p7382_p10), %s6562_s1, 128, %s6560_s5, %s2944_s30  }
 0x332 PF: > { %s7383_s26 = sld [smem:[#allocation15_spill]] }
 0x333   : > { %s7384_s6 = sld [smem:[#allocation20_spill]] }
 0x334   : > { %s7385_s16 = sld [smem:[#allocation18_spill]] }
 0x338   : > { %s2970_s0 = sand.u32 1, %s7383_s26  }
 0x339   : > { %p7386_p13 = scmp.ne.s32.totalorder %s7384_s6, 0  ;;  %s2971_s7 = scalar_lea.sflag [#allocation5], %s2970_s0 }
 0x33a   : > { %p7387_p0 = scmp.ge.s32.totalorder %s7385_s16, 2 }
 0x33c   : > { %p3414_p9 = pnand %p7387_p0, %p7386_p13 }
 0x33e   : > { %p3415_p1 = pneg %p3414_p9 }
 0x340   : > { %3579 = dma.done.wait (%p3415_p1), %s2971_s7, 128  }
 0x341   : > { %3581 = vsyncadd (%p3415_p1), %s2971_s7, 4294967168  ;;  %s7388_s20 = sld [smem:[#allocation21_spill]] }
 0x342   : > { %s7389_s17 = sld [smem:[#allocation16_spill]] }
 0x343   : > { %s7390_s18 = sld [smem:[#allocation17_spill]] }
 0x344   : > { %s7391_s19 = sld [smem:[#allocation22_spill]] }
 0x347   : > { %p20_p2 = scmp.ge.s32.totalorder %s7388_s20, 4  }
 0x349   :  { %22 = sbr.rel (!%p20_p2) target bundleno = 13 (0xd), region = 91 }
 0x34e   :  { %2976 = vsyncpa [#allocation4], 1 }
 0x34f   :  { %2978 = vsyncpa [#allocation4 + $0x1], 1 }
 0x350   :  { %2979 = vsyncpa [#allocation5], 1 }
 0x351   :  { %2981 = vsyncpa [#allocation5 + $0x1], 1 }
 0x352   :  { %2982 = vsyncpa [#allocation6], 1 }
 0x353   :  { %2984 = vsyncpa [#allocation6 + $0x1], 1 }
 0x354   :  { %2985 = vsyncpa [#allocation7], 1 }
 0x355   :  { %2987 = vsyncpa [#allocation7 + $0x1], 1 }

</bundles_post_ra>
